<compile_context>
chip_gen: v7x
topology: tpu7x:2x2x1
jax: 0.10.0
libtpu: 0.0.40
codegen_flags: <defaults>
</compile_context>

<pallas_src>
import jax
import jax.numpy as jnp
import numpy as np
from jax import lax
from jax.experimental import pallas as pl
from jax.experimental.pallas import tpu as pltpu

LANE = 128


def _round_up(v, m):
    return (v + m - 1) // m * m


def _bottleneck_kernel(x_ref, w1_ref, s1_ref, b1_ref,
                       w2_ref, s2_ref, b2_ref,
                       w3_ref, s3_ref, b3_ref,
                       o_ref, h1_ref):
    """One grid step processes Nb whole images.

    x_ref : (Nb, H, W, Cin) bf16 activations (channel-padded to 128).
    w*_ref: bf16 weights; w2 is (9, Cmid, Cmid): one slab per (kh, kw) tap.
    s*/b* : (1, C) f32 folded BatchNorm scale / bias.
    h1_ref: (Nb, H+2, W+2, Cmid) bf16 VMEM scratch holding the zero-padded
            bn1+relu output (halo strips re-zeroed each step: idempotent,
            tiny, and megacore-safe under "parallel" grid sharding).
    """
    Nb, H, W, Cin = x_ref.shape
    Cmid = w1_ref.shape[1]
    Cout = w3_ref.shape[1]
    M = Nb * H * W

    # ---- conv1 (1x1) + bn1 + relu : bf16 MXU matmul, f32 epilogue ----------
    x_bf = x_ref[...].reshape(M, Cin)
    h1 = jnp.dot(x_bf, w1_ref[...], preferred_element_type=jnp.float32)
    h1 = jnp.maximum(h1 * s1_ref[...] + b1_ref[...], 0.0)

    # Zero the 1-pixel halo, then write h1 (single f32->bf16 cast) into the
    # scratch interior; the taps below consume it directly as bf16.
    zrow = jnp.zeros((Nb, 1, W + 2, Cmid), jnp.bfloat16)
    zcol = jnp.zeros((Nb, H, 1, Cmid), jnp.bfloat16)
    h1_ref[:, pl.ds(0, 1), :, :] = zrow
    h1_ref[:, pl.ds(H + 1, 1), :, :] = zrow
    h1_ref[:, pl.ds(1, H), pl.ds(0, 1), :] = zcol
    h1_ref[:, pl.ds(1, H), pl.ds(W + 1, 1), :] = zcol
    h1_ref[:, pl.ds(1, H), pl.ds(1, W), :] = (
        h1.astype(jnp.bfloat16).reshape(Nb, H, W, Cmid))

    # ---- conv2 (3x3, stride 1, pad 1) + bn2 + relu --------------------------
    # Nine (M, Cmid) x (Cmid, Cmid) dots, one per (kh, kw) tap; no patch
    # concatenation and no extra f32 copies of the taps.
    acc = None
    for kh in range(3):
        for kw in range(3):
            tap = h1_ref[:, pl.ds(kh, H), pl.ds(kw, W), :].reshape(M, Cmid)
            part = jnp.dot(tap, w2_ref[kh * 3 + kw],
                           preferred_element_type=jnp.float32)
            acc = part if acc is None else acc + part
    h2 = jnp.maximum(acc * s2_ref[...] + b2_ref[...], 0.0)

    # ---- conv3 (1x1) + bn3 + residual add + relu ----------------------------
    h3 = jnp.dot(h2.astype(jnp.bfloat16), w3_ref[...],
                 preferred_element_type=jnp.float32)
    h3 = h3 * s3_ref[...] + b3_ref[...]
    # Re-read x (bf16) for the identity; upcast only for the f32 add.
    ident = x_ref[...].reshape(M, Cin).astype(jnp.float32)
    h3 = jnp.maximum(h3 + ident, 0.0)

    o_ref[...] = h3.astype(o_ref.dtype).reshape(Nb, H, W, Cout)


def bottleneck_pallas(x, params):
    """x: (N, H, W, Cin) NHWC. params: conv weights + folded BN scale/bias."""
    N, H, W, Cin = x.shape
    w1, s1, b1 = params["w1"], params["s1"], params["b1"]
    w2, s2, b2 = params["w2"], params["s2"], params["b2"]
    w3, s3, b3 = params["w3"], params["s3"], params["b3"]
    width = w1.shape[1]
    Cout = w3.shape[1]
    assert Cin == Cout, "identity residual requires Cin == Cout (no downsample)"

    # Lane-dense channel padding (multiples of 128): unmasked stores and fully
    # used MXU lanes even for narrow channel counts.
    # TODO(synk): for width-64 stages, evaluate keeping Cmid unpadded (full-dim
    #             block is legal) to trade half-filled lanes for 4x less conv2
    #             MXU work and half the scratch.
    Cin_p, Cm_p, Cout_p = (_round_up(c, LANE) for c in (Cin, width, Cout))

    # Activations cross the HBM boundary in bf16: they are only ever consumed
    # as bf16 matmul operands; epilogues / residual upcast to f32 in-kernel.
    xp = jnp.pad(x, ((0, 0), (0, 0), (0, 0), (0, Cin_p - Cin))).astype(jnp.bfloat16)

    pad2 = lambda a, r, c: jnp.pad(a, ((0, r - a.shape[0]), (0, c - a.shape[1])))
    padv = lambda v, c: jnp.pad(jnp.reshape(v, (1, -1)).astype(jnp.float32),
                                ((0, 0), (0, c - jnp.reshape(v, (-1,)).shape[0])))

    w1p = pad2(w1, Cin_p, Cm_p).astype(jnp.bfloat16)
    w3p = pad2(w3, Cm_p, Cout_p).astype(jnp.bfloat16)
    # (3,3,width,width) [kh,kw,cin,cout] -> (9, Cm_p, Cm_p); slab index kh*3+kw.
    w2p = jnp.pad(w2, ((0, 0), (0, 0), (0, Cm_p - width), (0, Cm_p - width)))
    w2p = w2p.reshape(9, Cm_p, Cm_p).astype(jnp.bfloat16)

    s1p, b1p = padv(s1, Cm_p), padv(b1, Cm_p)
    s2p, b2p = padv(s2, Cm_p), padv(b2, Cm_p)
    s3p, b3p = padv(s3, Cout_p), padv(b3, Cout_p)

    # Per-generation sizing knobs (v5e/v6e: 128 MiB VMEM, v7x: 64 MiB).
    try:
        vmem_cap = int(pltpu.get_tpu_info().vmem_capacity_bytes)
    except Exception:
        vmem_cap = 64 << 20                       # conservative (v7x-sized)
    row_cap = 2048 if vmem_cap >= (100 << 20) else 1024

    # Fold several images per grid step when H*W is small so M = Nb*H*W keeps
    # the MXU fed, while keeping the grid length >= 2 where possible so both
    # v7x TensorCores get parallel work under dimension_semantics="parallel".
    Nb = 1
    min_grid = 2 if N >= 2 else 1
    for cand in range(N, 0, -1):
        if N % cand == 0 and cand * H * W <= row_cap and N // cand >= min_grid:
            Nb = cand
            break
    # TODO(synk): if even Nb=1 exceeds row_cap (large H*W), switch to a halo'd
    #             spatial row-block grid axis instead of whole images.

    # Explicit VMEM budget: double-buffered bf16 activation blocks +
    # single-buffered weights + bf16 scratch + live f32 temps, 1.5x headroom.
    M = Nb * H * W
    act_blk = 2 * M * (Cin_p + Cout_p) * 2                 # 2-deep x/o pipelines, bf16
    w_bytes = (Cin_p * Cm_p + 9 * Cm_p * Cm_p + Cm_p * Cout_p) * 2 \
              + (4 * Cm_p + 2 * Cout_p) * 4
    scratch = Nb * (H + 2) * (W + 2) * Cm_p * 2             # bf16
    interm = M * (3 * Cm_p * 4 + Cm_p * 2 + Cout_p * 4)     # h1/acc/h2 f32, tap bf16, h3 f32
    budget = (act_blk + w_bytes + scratch + interm) * 3 // 2
    vmem_limit = int(min(max(budget, 16 << 20),
                         min((vmem_cap * 3) // 4, 96 << 20)))

    out_shape = jax.ShapeDtypeStruct((N, H, W, Cout_p), jnp.bfloat16)
    grid = (N // Nb,)
    x_spec = pl.BlockSpec((Nb, H, W, Cin_p), lambda n: (n, 0, 0, 0))
    o_spec = pl.BlockSpec((Nb, H, W, Cout_p), lambda n: (n, 0, 0, 0))
    scratch_shapes = [pltpu.VMEM((Nb, H + 2, W + 2, Cm_p), jnp.bfloat16)]
    cparams = pltpu.CompilerParams(dimension_semantics=("parallel",),
                                   vmem_limit_bytes=vmem_limit)

    def launch(single_buffer_consts):
        def const(shape):
            idx = lambda n, _s=shape: (0,) * len(_s)
            if single_buffer_consts:
                # Block index never changes -> the second pipeline buffer is
                # dead weight; single-buffer the constants to reclaim VMEM.
                return pl.BlockSpec(shape, idx, pipeline_mode=pl.Buffered(1))
            return pl.BlockSpec(shape, idx)

        return pl.pallas_call(
            _bottleneck_kernel,
            out_shape=out_shape,
            grid=grid,
            in_specs=[
                x_spec,
                const((Cin_p, Cm_p)), const((1, Cm_p)), const((1, Cm_p)),
                const((9, Cm_p, Cm_p)), const((1, Cm_p)), const((1, Cm_p)),
                const((Cm_p, Cout_p)), const((1, Cout_p)), const((1, Cout_p)),
            ],
            out_specs=o_spec,
            scratch_shapes=scratch_shapes,
            compiler_params=cparams,
        )(xp, w1p, s1p, b1p, w2p, s2p, b2p, w3p, s3p, b3p)

    try:
        out = launch(True)
    except Exception:
        # pipeline_mode=pl.Buffered(1) not supported on this jax version;
        # retry with default (double) buffering for the constants.
        out = launch(False)

    if Cout_p != Cout:
        # Lane-padding strip; a no-op for standard (128-multiple) ResNet widths.
        out = out[..., :Cout]
    return out


def _fold_bn(gamma, beta, mean, var, eps=1e-5):
    scale = gamma / jnp.sqrt(var + eps)
    bias = beta - mean * scale
    return scale, bias


def _reference(x, params):
    """Pure-JAX f32 reference (lax convs) to validate the Pallas kernel."""
    dn = ("NHWC", "HWIO", "NHWC")
    w1 = params["w1"][None, None]                    # (1,1,Cin,width)
    w3 = params["w3"][None, None]                    # (1,1,width,Cout)
    w2 = params["w2"]                                # (3,3,width,width)
    h = lax.conv_general_dilated(x, w1, (1, 1), "VALID", dimension_numbers=dn)
    h = jnp.maximum(h * params["s1"] + params["b1"], 0.0)
    h = lax.conv_general_dilated(h, w2, (1, 1), ((1, 1), (1, 1)),
                                 dimension_numbers=dn)
    h = jnp.maximum(h * params["s2"] + params["b2"], 0.0)
    h = lax.conv_general_dilated(h, w3, (1, 1), "VALID", dimension_numbers=dn)
    h = h * params["s3"] + params["b3"]
    return jnp.maximum(h + x, 0.0)


if __name__ == "__main__":
    # Module config: inplanes = planes * expansion so downsample=None is valid.
    N, Hs, Ws = 2, 8, 8
    planes, expansion, base_width, groups = 4, 4, 64, 1
    width = int(planes * (base_width / 64.0)) * groups   # = 4
    inplanes = planes * expansion                         # = 16
    outplanes = planes * expansion                        # = 16

    key = jax.random.PRNGKey(0)
    ks = jax.random.split(key, 16)

    x = jax.random.normal(ks[0], (N, Hs, Ws, inplanes), jnp.float32)

    w1 = 0.1 * jax.random.normal(ks[1], (inplanes, width), jnp.float32)
    w2 = 0.1 * jax.random.normal(ks[2], (3, 3, width, width), jnp.float32)
    w3 = 0.1 * jax.random.normal(ks[3], (width, outplanes), jnp.float32)

    def bn_params(kg, kb, km, kv, c):
        gamma = 1.0 + 0.1 * jax.random.normal(kg, (c,), jnp.float32)
        beta = 0.1 * jax.random.normal(kb, (c,), jnp.float32)
        mean = 0.1 * jax.random.normal(km, (c,), jnp.float32)
        var = jnp.abs(jax.random.normal(kv, (c,), jnp.float32)) + 0.5
        return _fold_bn(gamma, beta, mean, var)

    s1, b1 = bn_params(ks[4], ks[5], ks[6], ks[7], width)
    s2, b2 = bn_params(ks[8], ks[9], ks[10], ks[11], width)
    s3, b3 = bn_params(ks[12], ks[13], ks[14], ks[15], outplanes)

    params = dict(w1=w1, s1=s1, b1=b1, w2=w2, s2=s2, b2=b2,
                  w3=w3, s3=s3, b3=b3)

    out = jax.block_until_ready(bottleneck_pallas(x, params))
    ref = jax.block_until_ready(_reference(x, params))
    # bf16 activations + bf16 matmul operands (f32 accumulation) vs f32
    # reference -> loose tolerance.
    np.testing.assert_allclose(np.asarray(out.astype(jnp.float32)),
                               np.asarray(ref), rtol=3e-2, atol=3e-2)
    print("KERNEL_OK")
</pallas_src>

<mosaic_0001>
module attributes {stable_mosaic.version = 11 : i64} {
  func.func @_bottleneck_kernel(%arg0: i32, %arg1: memref<1x8x8x128xbf16, #tpu.memory_space<vmem>>, %arg2: memref<128x128xbf16, #tpu.memory_space<vmem>>, %arg3: memref<1x128xf32, #tpu.memory_space<vmem>>, %arg4: memref<1x128xf32, #tpu.memory_space<vmem>>, %arg5: memref<9x128x128xbf16, #tpu.memory_space<vmem>>, %arg6: memref<1x128xf32, #tpu.memory_space<vmem>>, %arg7: memref<1x128xf32, #tpu.memory_space<vmem>>, %arg8: memref<128x128xbf16, #tpu.memory_space<vmem>>, %arg9: memref<1x128xf32, #tpu.memory_space<vmem>>, %arg10: memref<1x128xf32, #tpu.memory_space<vmem>>, %arg11: memref<1x8x8x128xbf16, #tpu.memory_space<vmem>>, %arg12: memref<1x10x10x128xbf16, #tpu.memory_space<vmem>>) attributes {dimension_semantics = [#tpu.dimension_semantics<parallel>], iteration_bounds = array<i64: 2>, scalar_prefetch = 0 : i64, scratch_operands = 1 : i64, tpu.core_type = #tpu.core_type<tc>, window_params = [{transform_indices = @transform_0, window_bounds = array<i64: 1, 8, 8, 128>}, {pipeline_mode = #tpu.pipeline_mode<synchronous>, transform_indices = @transform_1, window_bounds = array<i64: 128, 128>}, {pipeline_mode = #tpu.pipeline_mode<synchronous>, transform_indices = @transform_2, window_bounds = array<i64: 1, 128>}, {pipeline_mode = #tpu.pipeline_mode<synchronous>, transform_indices = @transform_3, window_bounds = array<i64: 1, 128>}, {pipeline_mode = #tpu.pipeline_mode<synchronous>, transform_indices = @transform_4, window_bounds = array<i64: 9, 128, 128>}, {pipeline_mode = #tpu.pipeline_mode<synchronous>, transform_indices = @transform_5, window_bounds = array<i64: 1, 128>}, {pipeline_mode = #tpu.pipeline_mode<synchronous>, transform_indices = @transform_6, window_bounds = array<i64: 1, 128>}, {pipeline_mode = #tpu.pipeline_mode<synchronous>, transform_indices = @transform_7, window_bounds = array<i64: 128, 128>}, {pipeline_mode = #tpu.pipeline_mode<synchronous>, transform_indices = @transform_8, window_bounds = array<i64: 1, 128>}, {pipeline_mode = #tpu.pipeline_mode<synchronous>, transform_indices = @transform_9, window_bounds = array<i64: 1, 128>}, {transform_indices = @transform_10, window_bounds = array<i64: 1, 8, 8, 128>}]} {
    %c0 = arith.constant 0 : index
    %c0_0 = arith.constant 0 : index
    %c0_1 = arith.constant 0 : index
    %c0_2 = arith.constant 0 : index
    %0 = vector.load %arg1[%c0, %c0_0, %c0_1, %c0_2] : memref<1x8x8x128xbf16, #tpu.memory_space<vmem>>, vector<1x8x8x128xbf16>
    %1 = vector.shape_cast %0 : vector<1x8x8x128xbf16> to vector<64x128xbf16>
    %c0_3 = arith.constant 0 : index
    %c0_4 = arith.constant 0 : index
    %2 = vector.load %arg2[%c0_3, %c0_4] : memref<128x128xbf16, #tpu.memory_space<vmem>>, vector<128x128xbf16>
    %cst = arith.constant dense<0.000000e+00> : vector<64x128xf32>
    %3 = tpu.matmul %1, %2, %cst {dimension_numbers = #tpu.dot_dimension_numbers<[1], [0], [0], [1], [0, 0, 1, 1], [], []>} : vector<64x128xbf16>, vector<128x128xbf16>, vector<64x128xf32> -> vector<64x128xf32>
    %c0_5 = arith.constant 0 : index
    %c0_6 = arith.constant 0 : index
    %4 = vector.load %arg3[%c0_5, %c0_6] : memref<1x128xf32, #tpu.memory_space<vmem>>, vector<1x128xf32>
    %5 = vector.broadcast %4 : vector<1x128xf32> to vector<64x128xf32>
    %6 = arith.mulf %3, %5 : vector<64x128xf32>
    %c0_7 = arith.constant 0 : index
    %c0_8 = arith.constant 0 : index
    %7 = vector.load %arg4[%c0_7, %c0_8] : memref<1x128xf32, #tpu.memory_space<vmem>>, vector<1x128xf32>
    %8 = vector.broadcast %7 : vector<1x128xf32> to vector<64x128xf32>
    %9 = arith.addf %6, %8 : vector<64x128xf32>
    %cst_9 = arith.constant 0.000000e+00 : f32
    %10 = vector.broadcast %cst_9 : f32 to vector<64x128xf32>
    %11 = arith.maximumf %9, %10 : vector<64x128xf32>
    %cst_10 = arith.constant 0.000000e+00 : bf16
    %12 = vector.broadcast %cst_10 : bf16 to vector<1x1x10x128xbf16>
    %cst_11 = arith.constant 0.000000e+00 : bf16
    %13 = vector.broadcast %cst_11 : bf16 to vector<1x8x1x128xbf16>
    %c0_12 = arith.constant 0 : index
    %c0_13 = arith.constant 0 : index
    %c0_14 = arith.constant 0 : index
    %c0_15 = arith.constant 0 : index
    %14 = vector.load %arg12[%c0_12, %c0_13, %c0_14, %c0_15] : memref<1x10x10x128xbf16, #tpu.memory_space<vmem>>, vector<1x1x10x128xbf16>
    tpu.vector_store %arg12[%c0_12, %c0_13, %c0_14, %c0_15], %12 {strides = array<i32>} : memref<1x10x10x128xbf16, #tpu.memory_space<vmem>>, vector<1x1x10x128xbf16>,
    %c0_16 = arith.constant 0 : index
    %c9 = arith.constant 9 : index
    %c0_17 = arith.constant 0 : index
    %c0_18 = arith.constant 0 : index
    %15 = vector.load %arg12[%c0_16, %c9, %c0_17, %c0_18] : memref<1x10x10x128xbf16, #tpu.memory_space<vmem>>, vector<1x1x10x128xbf16>
    tpu.vector_store %arg12[%c0_16, %c9, %c0_17, %c0_18], %12 {strides = array<i32>} : memref<1x10x10x128xbf16, #tpu.memory_space<vmem>>, vector<1x1x10x128xbf16>,
    %c0_19 = arith.constant 0 : index
    %c1 = arith.constant 1 : index
    %c0_20 = arith.constant 0 : index
    %c0_21 = arith.constant 0 : index
    %16 = vector.load %arg12[%c0_19, %c1, %c0_20, %c0_21] : memref<1x10x10x128xbf16, #tpu.memory_space<vmem>>, vector<1x8x1x128xbf16>
    tpu.vector_store %arg12[%c0_19, %c1, %c0_20, %c0_21], %13 {strides = array<i32>} : memref<1x10x10x128xbf16, #tpu.memory_space<vmem>>, vector<1x8x1x128xbf16>,
    %c0_22 = arith.constant 0 : index
    %c1_23 = arith.constant 1 : index
    %c9_24 = arith.constant 9 : index
    %c0_25 = arith.constant 0 : index
    %17 = vector.load %arg12[%c0_22, %c1_23, %c9_24, %c0_25] : memref<1x10x10x128xbf16, #tpu.memory_space<vmem>>, vector<1x8x1x128xbf16>
    tpu.vector_store %arg12[%c0_22, %c1_23, %c9_24, %c0_25], %13 {strides = array<i32>} : memref<1x10x10x128xbf16, #tpu.memory_space<vmem>>, vector<1x8x1x128xbf16>,
    %18 = arith.truncf %11 : vector<64x128xf32> to vector<64x128xbf16>
    %19 = vector.shape_cast %18 : vector<64x128xbf16> to vector<1x8x8x128xbf16>
    %c0_26 = arith.constant 0 : index
    %c1_27 = arith.constant 1 : index
    %c1_28 = arith.constant 1 : index
    %c0_29 = arith.constant 0 : index
    %20 = vector.load %arg12[%c0_26, %c1_27, %c1_28, %c0_29] : memref<1x10x10x128xbf16, #tpu.memory_space<vmem>>, vector<1x8x8x128xbf16>
    tpu.vector_store %arg12[%c0_26, %c1_27, %c1_28, %c0_29], %19 {strides = array<i32>} : memref<1x10x10x128xbf16, #tpu.memory_space<vmem>>, vector<1x8x8x128xbf16>,
    %c0_30 = arith.constant 0 : index
    %c0_31 = arith.constant 0 : index
    %c0_32 = arith.constant 0 : index
    %c0_33 = arith.constant 0 : index
    %21 = vector.load %arg12[%c0_30, %c0_31, %c0_32, %c0_33] : memref<1x10x10x128xbf16, #tpu.memory_space<vmem>>, vector<1x8x8x128xbf16>
    %22 = vector.shape_cast %21 : vector<1x8x8x128xbf16> to vector<64x128xbf16>
    %c0_34 = arith.constant 0 : index
    %c0_35 = arith.constant 0 : index
    %c0_36 = arith.constant 0 : index
    %23 = vector.load %arg5[%c0_34, %c0_35, %c0_36] : memref<9x128x128xbf16, #tpu.memory_space<vmem>>, vector<1x128x128xbf16>
    %24 = vector.shape_cast %23 : vector<1x128x128xbf16> to vector<128x128xbf16>
    %cst_37 = arith.constant dense<0.000000e+00> : vector<64x128xf32>
    %25 = tpu.matmul %22, %24, %cst_37 {dimension_numbers = #tpu.dot_dimension_numbers<[1], [0], [0], [1], [0, 0, 1, 1], [], []>} : vector<64x128xbf16>, vector<128x128xbf16>, vector<64x128xf32> -> vector<64x128xf32>
    %c0_38 = arith.constant 0 : index
    %c0_39 = arith.constant 0 : index
    %c1_40 = arith.constant 1 : index
    %c0_41 = arith.constant 0 : index
    %26 = vector.load %arg12[%c0_38, %c0_39, %c1_40, %c0_41] : memref<1x10x10x128xbf16, #tpu.memory_space<vmem>>, vector<1x8x8x128xbf16>
    %27 = vector.shape_cast %26 : vector<1x8x8x128xbf16> to vector<64x128xbf16>
    %c1_42 = arith.constant 1 : index
    %c0_43 = arith.constant 0 : index
    %c0_44 = arith.constant 0 : index
    %28 = vector.load %arg5[%c1_42, %c0_43, %c0_44] : memref<9x128x128xbf16, #tpu.memory_space<vmem>>, vector<1x128x128xbf16>
    %29 = vector.shape_cast %28 : vector<1x128x128xbf16> to vector<128x128xbf16>
    %cst_45 = arith.constant dense<0.000000e+00> : vector<64x128xf32>
    %30 = tpu.matmul %27, %29, %cst_45 {dimension_numbers = #tpu.dot_dimension_numbers<[1], [0], [0], [1], [0, 0, 1, 1], [], []>} : vector<64x128xbf16>, vector<128x128xbf16>, vector<64x128xf32> -> vector<64x128xf32>
    %31 = arith.addf %25, %30 : vector<64x128xf32>
    %c0_46 = arith.constant 0 : index
    %c0_47 = arith.constant 0 : index
    %c2 = arith.constant 2 : index
    %c0_48 = arith.constant 0 : index
    %32 = vector.load %arg12[%c0_46, %c0_47, %c2, %c0_48] : memref<1x10x10x128xbf16, #tpu.memory_space<vmem>>, vector<1x8x8x128xbf16>
    %33 = vector.shape_cast %32 : vector<1x8x8x128xbf16> to vector<64x128xbf16>
    %c2_49 = arith.constant 2 : index
    %c0_50 = arith.constant 0 : index
    %c0_51 = arith.constant 0 : index
    %34 = vector.load %arg5[%c2_49, %c0_50, %c0_51] : memref<9x128x128xbf16, #tpu.memory_space<vmem>>, vector<1x128x128xbf16>
    %35 = vector.shape_cast %34 : vector<1x128x128xbf16> to vector<128x128xbf16>
    %cst_52 = arith.constant dense<0.000000e+00> : vector<64x128xf32>
    %36 = tpu.matmul %33, %35, %cst_52 {dimension_numbers = #tpu.dot_dimension_numbers<[1], [0], [0], [1], [0, 0, 1, 1], [], []>} : vector<64x128xbf16>, vector<128x128xbf16>, vector<64x128xf32> -> vector<64x128xf32>
    %37 = arith.addf %31, %36 : vector<64x128xf32>
    %c0_53 = arith.constant 0 : index
    %c1_54 = arith.constant 1 : index
    %c0_55 = arith.constant 0 : index
    %c0_56 = arith.constant 0 : index
    %38 = vector.load %arg12[%c0_53, %c1_54, %c0_55, %c0_56] : memref<1x10x10x128xbf16, #tpu.memory_space<vmem>>, vector<1x8x8x128xbf16>
    %39 = vector.shape_cast %38 : vector<1x8x8x128xbf16> to vector<64x128xbf16>
    %c3 = arith.constant 3 : index
    %c0_57 = arith.constant 0 : index
    %c0_58 = arith.constant 0 : index
    %40 = vector.load %arg5[%c3, %c0_57, %c0_58] : memref<9x128x128xbf16, #tpu.memory_space<vmem>>, vector<1x128x128xbf16>
    %41 = vector.shape_cast %40 : vector<1x128x128xbf16> to vector<128x128xbf16>
    %cst_59 = arith.constant dense<0.000000e+00> : vector<64x128xf32>
    %42 = tpu.matmul %39, %41, %cst_59 {dimension_numbers = #tpu.dot_dimension_numbers<[1], [0], [0], [1], [0, 0, 1, 1], [], []>} : vector<64x128xbf16>, vector<128x128xbf16>, vector<64x128xf32> -> vector<64x128xf32>
    %43 = arith.addf %37, %42 : vector<64x128xf32>
    %c0_60 = arith.constant 0 : index
    %c1_61 = arith.constant 1 : index
    %c1_62 = arith.constant 1 : index
    %c0_63 = arith.constant 0 : index
    %44 = vector.load %arg12[%c0_60, %c1_61, %c1_62, %c0_63] : memref<1x10x10x128xbf16, #tpu.memory_space<vmem>>, vector<1x8x8x128xbf16>
    %45 = vector.shape_cast %44 : vector<1x8x8x128xbf16> to vector<64x128xbf16>
    %c4 = arith.constant 4 : index
    %c0_64 = arith.constant 0 : index
    %c0_65 = arith.constant 0 : index
    %46 = vector.load %arg5[%c4, %c0_64, %c0_65] : memref<9x128x128xbf16, #tpu.memory_space<vmem>>, vector<1x128x128xbf16>
    %47 = vector.shape_cast %46 : vector<1x128x128xbf16> to vector<128x128xbf16>
    %cst_66 = arith.constant dense<0.000000e+00> : vector<64x128xf32>
    %48 = tpu.matmul %45, %47, %cst_66 {dimension_numbers = #tpu.dot_dimension_numbers<[1], [0], [0], [1], [0, 0, 1, 1], [], []>} : vector<64x128xbf16>, vector<128x128xbf16>, vector<64x128xf32> -> vector<64x128xf32>
    %49 = arith.addf %43, %48 : vector<64x128xf32>
    %c0_67 = arith.constant 0 : index
    %c1_68 = arith.constant 1 : index
    %c2_69 = arith.constant 2 : index
    %c0_70 = arith.constant 0 : index
    %50 = vector.load %arg12[%c0_67, %c1_68, %c2_69, %c0_70] : memref<1x10x10x128xbf16, #tpu.memory_space<vmem>>, vector<1x8x8x128xbf16>
    %51 = vector.shape_cast %50 : vector<1x8x8x128xbf16> to vector<64x128xbf16>
    %c5 = arith.constant 5 : index
    %c0_71 = arith.constant 0 : index
    %c0_72 = arith.constant 0 : index
    %52 = vector.load %arg5[%c5, %c0_71, %c0_72] : memref<9x128x128xbf16, #tpu.memory_space<vmem>>, vector<1x128x128xbf16>
    %53 = vector.shape_cast %52 : vector<1x128x128xbf16> to vector<128x128xbf16>
    %cst_73 = arith.constant dense<0.000000e+00> : vector<64x128xf32>
    %54 = tpu.matmul %51, %53, %cst_73 {dimension_numbers = #tpu.dot_dimension_numbers<[1], [0], [0], [1], [0, 0, 1, 1], [], []>} : vector<64x128xbf16>, vector<128x128xbf16>, vector<64x128xf32> -> vector<64x128xf32>
    %55 = arith.addf %49, %54 : vector<64x128xf32>
    %c0_74 = arith.constant 0 : index
    %c2_75 = arith.constant 2 : index
    %c0_76 = arith.constant 0 : index
    %c0_77 = arith.constant 0 : index
    %56 = vector.load %arg12[%c0_74, %c2_75, %c0_76, %c0_77] : memref<1x10x10x128xbf16, #tpu.memory_space<vmem>>, vector<1x8x8x128xbf16>
    %57 = vector.shape_cast %56 : vector<1x8x8x128xbf16> to vector<64x128xbf16>
    %c6 = arith.constant 6 : index
    %c0_78 = arith.constant 0 : index
    %c0_79 = arith.constant 0 : index
    %58 = vector.load %arg5[%c6, %c0_78, %c0_79] : memref<9x128x128xbf16, #tpu.memory_space<vmem>>, vector<1x128x128xbf16>
    %59 = vector.shape_cast %58 : vector<1x128x128xbf16> to vector<128x128xbf16>
    %cst_80 = arith.constant dense<0.000000e+00> : vector<64x128xf32>
    %60 = tpu.matmul %57, %59, %cst_80 {dimension_numbers = #tpu.dot_dimension_numbers<[1], [0], [0], [1], [0, 0, 1, 1], [], []>} : vector<64x128xbf16>, vector<128x128xbf16>, vector<64x128xf32> -> vector<64x128xf32>
    %61 = arith.addf %55, %60 : vector<64x128xf32>
    %c0_81 = arith.constant 0 : index
    %c2_82 = arith.constant 2 : index
    %c1_83 = arith.constant 1 : index
    %c0_84 = arith.constant 0 : index
    %62 = vector.load %arg12[%c0_81, %c2_82, %c1_83, %c0_84] : memref<1x10x10x128xbf16, #tpu.memory_space<vmem>>, vector<1x8x8x128xbf16>
    %63 = vector.shape_cast %62 : vector<1x8x8x128xbf16> to vector<64x128xbf16>
    %c7 = arith.constant 7 : index
    %c0_85 = arith.constant 0 : index
    %c0_86 = arith.constant 0 : index
    %64 = vector.load %arg5[%c7, %c0_85, %c0_86] : memref<9x128x128xbf16, #tpu.memory_space<vmem>>, vector<1x128x128xbf16>
    %65 = vector.shape_cast %64 : vector<1x128x128xbf16> to vector<128x128xbf16>
    %cst_87 = arith.constant dense<0.000000e+00> : vector<64x128xf32>
    %66 = tpu.matmul %63, %65, %cst_87 {dimension_numbers = #tpu.dot_dimension_numbers<[1], [0], [0], [1], [0, 0, 1, 1], [], []>} : vector<64x128xbf16>, vector<128x128xbf16>, vector<64x128xf32> -> vector<64x128xf32>
    %67 = arith.addf %61, %66 : vector<64x128xf32>
    %c0_88 = arith.constant 0 : index
    %c2_89 = arith.constant 2 : index
    %c2_90 = arith.constant 2 : index
    %c0_91 = arith.constant 0 : index
    %68 = vector.load %arg12[%c0_88, %c2_89, %c2_90, %c0_91] : memref<1x10x10x128xbf16, #tpu.memory_space<vmem>>, vector<1x8x8x128xbf16>
    %69 = vector.shape_cast %68 : vector<1x8x8x128xbf16> to vector<64x128xbf16>
    %c8 = arith.constant 8 : index
    %c0_92 = arith.constant 0 : index
    %c0_93 = arith.constant 0 : index
    %70 = vector.load %arg5[%c8, %c0_92, %c0_93] : memref<9x128x128xbf16, #tpu.memory_space<vmem>>, vector<1x128x128xbf16>
    %71 = vector.shape_cast %70 : vector<1x128x128xbf16> to vector<128x128xbf16>
    %cst_94 = arith.constant dense<0.000000e+00> : vector<64x128xf32>
    %72 = tpu.matmul %69, %71, %cst_94 {dimension_numbers = #tpu.dot_dimension_numbers<[1], [0], [0], [1], [0, 0, 1, 1], [], []>} : vector<64x128xbf16>, vector<128x128xbf16>, vector<64x128xf32> -> vector<64x128xf32>
    %73 = arith.addf %67, %72 : vector<64x128xf32>
    %c0_95 = arith.constant 0 : index
    %c0_96 = arith.constant 0 : index
    %74 = vector.load %arg6[%c0_95, %c0_96] : memref<1x128xf32, #tpu.memory_space<vmem>>, vector<1x128xf32>
    %75 = vector.broadcast %74 : vector<1x128xf32> to vector<64x128xf32>
    %76 = arith.mulf %73, %75 : vector<64x128xf32>
    %c0_97 = arith.constant 0 : index
    %c0_98 = arith.constant 0 : index
    %77 = vector.load %arg7[%c0_97, %c0_98] : memref<1x128xf32, #tpu.memory_space<vmem>>, vector<1x128xf32>
    %78 = vector.broadcast %77 : vector<1x128xf32> to vector<64x128xf32>
    %79 = arith.addf %76, %78 : vector<64x128xf32>
    %cst_99 = arith.constant 0.000000e+00 : f32
    %80 = vector.broadcast %cst_99 : f32 to vector<64x128xf32>
    %81 = arith.maximumf %79, %80 : vector<64x128xf32>
    %82 = arith.truncf %81 : vector<64x128xf32> to vector<64x128xbf16>
    %c0_100 = arith.constant 0 : index
    %c0_101 = arith.constant 0 : index
    %83 = vector.load %arg8[%c0_100, %c0_101] : memref<128x128xbf16, #tpu.memory_space<vmem>>, vector<128x128xbf16>
    %cst_102 = arith.constant dense<0.000000e+00> : vector<64x128xf32>
    %84 = tpu.matmul %82, %83, %cst_102 {dimension_numbers = #tpu.dot_dimension_numbers<[1], [0], [0], [1], [0, 0, 1, 1], [], []>} : vector<64x128xbf16>, vector<128x128xbf16>, vector<64x128xf32> -> vector<64x128xf32>
    %c0_103 = arith.constant 0 : index
    %c0_104 = arith.constant 0 : index
    %85 = vector.load %arg9[%c0_103, %c0_104] : memref<1x128xf32, #tpu.memory_space<vmem>>, vector<1x128xf32>
    %86 = vector.broadcast %85 : vector<1x128xf32> to vector<64x128xf32>
    %87 = arith.mulf %84, %86 : vector<64x128xf32>
    %c0_105 = arith.constant 0 : index
    %c0_106 = arith.constant 0 : index
    %88 = vector.load %arg10[%c0_105, %c0_106] : memref<1x128xf32, #tpu.memory_space<vmem>>, vector<1x128xf32>
    %89 = vector.broadcast %88 : vector<1x128xf32> to vector<64x128xf32>
    %90 = arith.addf %87, %89 : vector<64x128xf32>
    %c0_107 = arith.constant 0 : index
    %c0_108 = arith.constant 0 : index
    %c0_109 = arith.constant 0 : index
    %c0_110 = arith.constant 0 : index
    %91 = vector.load %arg1[%c0_107, %c0_108, %c0_109, %c0_110] : memref<1x8x8x128xbf16, #tpu.memory_space<vmem>>, vector<1x8x8x128xbf16>
    %92 = vector.shape_cast %91 : vector<1x8x8x128xbf16> to vector<64x128xbf16>
    %93 = arith.extf %92 : vector<64x128xbf16> to vector<64x128xf32>
    %94 = arith.addf %90, %93 : vector<64x128xf32>
    %cst_111 = arith.constant 0.000000e+00 : f32
    %95 = vector.broadcast %cst_111 : f32 to vector<64x128xf32>
    %96 = arith.maximumf %94, %95 : vector<64x128xf32>
    %97 = arith.truncf %96 : vector<64x128xf32> to vector<64x128xbf16>
    %98 = vector.shape_cast %97 : vector<64x128xbf16> to vector<1x8x8x128xbf16>
    %c0_112 = arith.constant 0 : index
    %c0_113 = arith.constant 0 : index
    %c0_114 = arith.constant 0 : index
    %c0_115 = arith.constant 0 : index
    %99 = vector.load %arg11[%c0_112, %c0_113, %c0_114, %c0_115] : memref<1x8x8x128xbf16, #tpu.memory_space<vmem>>, vector<1x8x8x128xbf16>
    tpu.vector_store %arg11[%c0_112, %c0_113, %c0_114, %c0_115], %98 {strides = array<i32>} : memref<1x8x8x128xbf16, #tpu.memory_space<vmem>>, vector<1x8x8x128xbf16>,
    return
  }
  func.func @transform_0(%arg0: i32) -> (i32, i32, i32, i32) {
    %c0_i32 = arith.constant 0 : i32
    %c0_i32_0 = arith.constant 0 : i32
    %c0_i32_1 = arith.constant 0 : i32
    %c0_i32_2 = arith.constant 0 : i32
    return %arg0, %c0_i32, %c0_i32_0, %c0_i32_1 : i32, i32, i32, i32
  }
  func.func @transform_1(%arg0: i32) -> (i32, i32) {
    %c0_i32 = arith.constant 0 : i32
    %c0_i32_0 = arith.constant 0 : i32
    %c0_i32_1 = arith.constant 0 : i32
    return %c0_i32, %c0_i32_0 : i32, i32
  }
  func.func @transform_2(%arg0: i32) -> (i32, i32) {
    %c0_i32 = arith.constant 0 : i32
    %c0_i32_0 = arith.constant 0 : i32
    %c0_i32_1 = arith.constant 0 : i32
    return %c0_i32, %c0_i32_0 : i32, i32
  }
  func.func @transform_3(%arg0: i32) -> (i32, i32) {
    %c0_i32 = arith.constant 0 : i32
    %c0_i32_0 = arith.constant 0 : i32
    %c0_i32_1 = arith.constant 0 : i32
    return %c0_i32, %c0_i32_0 : i32, i32
  }
  func.func @transform_4(%arg0: i32) -> (i32, i32, i32) {
    %c0_i32 = arith.constant 0 : i32
    %c0_i32_0 = arith.constant 0 : i32
    %c0_i32_1 = arith.constant 0 : i32
    %c0_i32_2 = arith.constant 0 : i32
    return %c0_i32, %c0_i32_0, %c0_i32_1 : i32, i32, i32
  }
  func.func @transform_5(%arg0: i32) -> (i32, i32) {
    %c0_i32 = arith.constant 0 : i32
    %c0_i32_0 = arith.constant 0 : i32
    %c0_i32_1 = arith.constant 0 : i32
    return %c0_i32, %c0_i32_0 : i32, i32
  }
  func.func @transform_6(%arg0: i32) -> (i32, i32) {
    %c0_i32 = arith.constant 0 : i32
    %c0_i32_0 = arith.constant 0 : i32
    %c0_i32_1 = arith.constant 0 : i32
    return %c0_i32, %c0_i32_0 : i32, i32
  }
  func.func @transform_7(%arg0: i32) -> (i32, i32) {
    %c0_i32 = arith.constant 0 : i32
    %c0_i32_0 = arith.constant 0 : i32
    %c0_i32_1 = arith.constant 0 : i32
    return %c0_i32, %c0_i32_0 : i32, i32
  }
  func.func @transform_8(%arg0: i32) -> (i32, i32) {
    %c0_i32 = arith.constant 0 : i32
    %c0_i32_0 = arith.constant 0 : i32
    %c0_i32_1 = arith.constant 0 : i32
    return %c0_i32, %c0_i32_0 : i32, i32
  }
  func.func @transform_9(%arg0: i32) -> (i32, i32) {
    %c0_i32 = arith.constant 0 : i32
    %c0_i32_0 = arith.constant 0 : i32
    %c0_i32_1 = arith.constant 0 : i32
    return %c0_i32, %c0_i32_0 : i32, i32
  }
  func.func @transform_10(%arg0: i32) -> (i32, i32, i32, i32) {
    %c0_i32 = arith.constant 0 : i32
    %c0_i32_0 = arith.constant 0 : i32
    %c0_i32_1 = arith.constant 0 : i32
    %c0_i32_2 = arith.constant 0 : i32
    return %arg0, %c0_i32, %c0_i32_0, %c0_i32_1 : i32, i32, i32, i32
  }
}

module attributes {stable_mosaic.version = 11 : i64} {
  func.func @_bottleneck_kernel(%arg0: i32, %arg1: memref<1x8x8x128xbf16, #tpu.memory_space<vmem>>, %arg2: memref<128x128xbf16, #tpu.memory_space<vmem>>, %arg3: memref<1x128xf32, #tpu.memory_space<vmem>>, %arg4: memref<1x128xf32, #tpu.memory_space<vmem>>, %arg5: memref<9x128x128xbf16, #tpu.memory_space<vmem>>, %arg6: memref<1x128xf32, #tpu.memory_space<vmem>>, %arg7: memref<1x128xf32, #tpu.memory_space<vmem>>, %arg8: memref<128x128xbf16, #tpu.memory_space<vmem>>, %arg9: memref<1x128xf32, #tpu.memory_space<vmem>>, %arg10: memref<1x128xf32, #tpu.memory_space<vmem>>, %arg11: memref<1x8x8x128xbf16, #tpu.memory_space<vmem>>, %arg12: memref<1x10x10x128xbf16, #tpu.memory_space<vmem>>) attributes {dimension_semantics = [#tpu.dimension_semantics<parallel>], iteration_bounds = array<i64: 2>, scalar_prefetch = 0 : i64, scratch_operands = 1 : i64, tpu.core_type = #tpu.core_type<tc>, window_params = [{transform_indices = @transform_0, window_bounds = array<i64: 1, 8, 8, 128>}, {pipeline_mode = #tpu.pipeline_mode<synchronous>, transform_indices = @transform_1, window_bounds = array<i64: 128, 128>}, {pipeline_mode = #tpu.pipeline_mode<synchronous>, transform_indices = @transform_2, window_bounds = array<i64: 1, 128>}, {pipeline_mode = #tpu.pipeline_mode<synchronous>, transform_indices = @transform_3, window_bounds = array<i64: 1, 128>}, {pipeline_mode = #tpu.pipeline_mode<synchronous>, transform_indices = @transform_4, window_bounds = array<i64: 9, 128, 128>}, {pipeline_mode = #tpu.pipeline_mode<synchronous>, transform_indices = @transform_5, window_bounds = array<i64: 1, 128>}, {pipeline_mode = #tpu.pipeline_mode<synchronous>, transform_indices = @transform_6, window_bounds = array<i64: 1, 128>}, {pipeline_mode = #tpu.pipeline_mode<synchronous>, transform_indices = @transform_7, window_bounds = array<i64: 128, 128>}, {pipeline_mode = #tpu.pipeline_mode<synchronous>, transform_indices = @transform_8, window_bounds = array<i64: 1, 128>}, {pipeline_mode = #tpu.pipeline_mode<synchronous>, transform_indices = @transform_9, window_bounds = array<i64: 1, 128>}, {transform_indices = @transform_10, window_bounds = array<i64: 1, 8, 8, 128>}]} {
    %c0 = arith.constant 0 : index
    %c0_0 = arith.constant 0 : index
    %c0_1 = arith.constant 0 : index
    %c0_2 = arith.constant 0 : index
    %0 = vector.load %arg1[%c0, %c0_0, %c0_1, %c0_2] : memref<1x8x8x128xbf16, #tpu.memory_space<vmem>>, vector<1x8x8x128xbf16>
    %1 = vector.shape_cast %0 : vector<1x8x8x128xbf16> to vector<64x128xbf16>
    %c0_3 = arith.constant 0 : index
    %c0_4 = arith.constant 0 : index
    %2 = vector.load %arg2[%c0_3, %c0_4] : memref<128x128xbf16, #tpu.memory_space<vmem>>, vector<128x128xbf16>
    %cst = arith.constant dense<0.000000e+00> : vector<64x128xf32>
    %3 = tpu.matmul %1, %2, %cst {dimension_numbers = #tpu.dot_dimension_numbers<[1], [0], [0], [1], [0, 0, 1, 1], [], []>} : vector<64x128xbf16>, vector<128x128xbf16>, vector<64x128xf32> -> vector<64x128xf32>
    %c0_5 = arith.constant 0 : index
    %c0_6 = arith.constant 0 : index
    %4 = vector.load %arg3[%c0_5, %c0_6] : memref<1x128xf32, #tpu.memory_space<vmem>>, vector<1x128xf32>
    %5 = vector.broadcast %4 : vector<1x128xf32> to vector<64x128xf32>
    %6 = arith.mulf %3, %5 : vector<64x128xf32>
    %c0_7 = arith.constant 0 : index
    %c0_8 = arith.constant 0 : index
    %7 = vector.load %arg4[%c0_7, %c0_8] : memref<1x128xf32, #tpu.memory_space<vmem>>, vector<1x128xf32>
    %8 = vector.broadcast %7 : vector<1x128xf32> to vector<64x128xf32>
    %9 = arith.addf %6, %8 : vector<64x128xf32>
    %cst_9 = arith.constant 0.000000e+00 : f32
    %10 = vector.broadcast %cst_9 : f32 to vector<64x128xf32>
    %11 = arith.maximumf %9, %10 : vector<64x128xf32>
    %cst_10 = arith.constant 0.000000e+00 : bf16
    %12 = vector.broadcast %cst_10 : bf16 to vector<1x1x10x128xbf16>
    %cst_11 = arith.constant 0.000000e+00 : bf16
    %13 = vector.broadcast %cst_11 : bf16 to vector<1x8x1x128xbf16>
    %c0_12 = arith.constant 0 : index
    %c0_13 = arith.constant 0 : index
    %c0_14 = arith.constant 0 : index
    %c0_15 = arith.constant 0 : index
    %14 = vector.load %arg12[%c0_12, %c0_13, %c0_14, %c0_15] : memref<1x10x10x128xbf16, #tpu.memory_space<vmem>>, vector<1x1x10x128xbf16>
    tpu.vector_store %arg12[%c0_12, %c0_13, %c0_14, %c0_15], %12 {strides = array<i32>} : memref<1x10x10x128xbf16, #tpu.memory_space<vmem>>, vector<1x1x10x128xbf16>,
    %c0_16 = arith.constant 0 : index
    %c9 = arith.constant 9 : index
    %c0_17 = arith.constant 0 : index
    %c0_18 = arith.constant 0 : index
    %15 = vector.load %arg12[%c0_16, %c9, %c0_17, %c0_18] : memref<1x10x10x128xbf16, #tpu.memory_space<vmem>>, vector<1x1x10x128xbf16>
    tpu.vector_store %arg12[%c0_16, %c9, %c0_17, %c0_18], %12 {strides = array<i32>} : memref<1x10x10x128xbf16, #tpu.memory_space<vmem>>, vector<1x1x10x128xbf16>,
    %c0_19 = arith.constant 0 : index
    %c1 = arith.constant 1 : index
    %c0_20 = arith.constant 0 : index
    %c0_21 = arith.constant 0 : index
    %16 = vector.load %arg12[%c0_19, %c1, %c0_20, %c0_21] : memref<1x10x10x128xbf16, #tpu.memory_space<vmem>>, vector<1x8x1x128xbf16>
    tpu.vector_store %arg12[%c0_19, %c1, %c0_20, %c0_21], %13 {strides = array<i32>} : memref<1x10x10x128xbf16, #tpu.memory_space<vmem>>, vector<1x8x1x128xbf16>,
    %c0_22 = arith.constant 0 : index
    %c1_23 = arith.constant 1 : index
    %c9_24 = arith.constant 9 : index
    %c0_25 = arith.constant 0 : index
    %17 = vector.load %arg12[%c0_22, %c1_23, %c9_24, %c0_25] : memref<1x10x10x128xbf16, #tpu.memory_space<vmem>>, vector<1x8x1x128xbf16>
    tpu.vector_store %arg12[%c0_22, %c1_23, %c9_24, %c0_25], %13 {strides = array<i32>} : memref<1x10x10x128xbf16, #tpu.memory_space<vmem>>, vector<1x8x1x128xbf16>,
    %18 = arith.truncf %11 : vector<64x128xf32> to vector<64x128xbf16>
    %19 = vector.shape_cast %18 : vector<64x128xbf16> to vector<1x8x8x128xbf16>
    %c0_26 = arith.constant 0 : index
    %c1_27 = arith.constant 1 : index
    %c1_28 = arith.constant 1 : index
    %c0_29 = arith.constant 0 : index
    %20 = vector.load %arg12[%c0_26, %c1_27, %c1_28, %c0_29] : memref<1x10x10x128xbf16, #tpu.memory_space<vmem>>, vector<1x8x8x128xbf16>
    tpu.vector_store %arg12[%c0_26, %c1_27, %c1_28, %c0_29], %19 {strides = array<i32>} : memref<1x10x10x128xbf16, #tpu.memory_space<vmem>>, vector<1x8x8x128xbf16>,
    %c0_30 = arith.constant 0 : index
    %c0_31 = arith.constant 0 : index
    %c0_32 = arith.constant 0 : index
    %c0_33 = arith.constant 0 : index
    %21 = vector.load %arg12[%c0_30, %c0_31, %c0_32, %c0_33] : memref<1x10x10x128xbf16, #tpu.memory_space<vmem>>, vector<1x8x8x128xbf16>
    %22 = vector.shape_cast %21 : vector<1x8x8x128xbf16> to vector<64x128xbf16>
    %c0_34 = arith.constant 0 : index
    %c0_35 = arith.constant 0 : index
    %c0_36 = arith.constant 0 : index
    %23 = vector.load %arg5[%c0_34, %c0_35, %c0_36] : memref<9x128x128xbf16, #tpu.memory_space<vmem>>, vector<1x128x128xbf16>
    %24 = vector.shape_cast %23 : vector<1x128x128xbf16> to vector<128x128xbf16>
    %cst_37 = arith.constant dense<0.000000e+00> : vector<64x128xf32>
    %25 = tpu.matmul %22, %24, %cst_37 {dimension_numbers = #tpu.dot_dimension_numbers<[1], [0], [0], [1], [0, 0, 1, 1], [], []>} : vector<64x128xbf16>, vector<128x128xbf16>, vector<64x128xf32> -> vector<64x128xf32>
    %c0_38 = arith.constant 0 : index
    %c0_39 = arith.constant 0 : index
    %c1_40 = arith.constant 1 : index
    %c0_41 = arith.constant 0 : index
    %26 = vector.load %arg12[%c0_38, %c0_39, %c1_40, %c0_41] : memref<1x10x10x128xbf16, #tpu.memory_space<vmem>>, vector<1x8x8x128xbf16>
    %27 = vector.shape_cast %26 : vector<1x8x8x128xbf16> to vector<64x128xbf16>
    %c1_42 = arith.constant 1 : index
    %c0_43 = arith.constant 0 : index
    %c0_44 = arith.constant 0 : index
    %28 = vector.load %arg5[%c1_42, %c0_43, %c0_44] : memref<9x128x128xbf16, #tpu.memory_space<vmem>>, vector<1x128x128xbf16>
    %29 = vector.shape_cast %28 : vector<1x128x128xbf16> to vector<128x128xbf16>
    %cst_45 = arith.constant dense<0.000000e+00> : vector<64x128xf32>
    %30 = tpu.matmul %27, %29, %cst_45 {dimension_numbers = #tpu.dot_dimension_numbers<[1], [0], [0], [1], [0, 0, 1, 1], [], []>} : vector<64x128xbf16>, vector<128x128xbf16>, vector<64x128xf32> -> vector<64x128xf32>
    %31 = arith.addf %25, %30 : vector<64x128xf32>
    %c0_46 = arith.constant 0 : index
    %c0_47 = arith.constant 0 : index
    %c2 = arith.constant 2 : index
    %c0_48 = arith.constant 0 : index
    %32 = vector.load %arg12[%c0_46, %c0_47, %c2, %c0_48] : memref<1x10x10x128xbf16, #tpu.memory_space<vmem>>, vector<1x8x8x128xbf16>
    %33 = vector.shape_cast %32 : vector<1x8x8x128xbf16> to vector<64x128xbf16>
    %c2_49 = arith.constant 2 : index
    %c0_50 = arith.constant 0 : index
    %c0_51 = arith.constant 0 : index
    %34 = vector.load %arg5[%c2_49, %c0_50, %c0_51] : memref<9x128x128xbf16, #tpu.memory_space<vmem>>, vector<1x128x128xbf16>
    %35 = vector.shape_cast %34 : vector<1x128x128xbf16> to vector<128x128xbf16>
    %cst_52 = arith.constant dense<0.000000e+00> : vector<64x128xf32>
    %36 = tpu.matmul %33, %35, %cst_52 {dimension_numbers = #tpu.dot_dimension_numbers<[1], [0], [0], [1], [0, 0, 1, 1], [], []>} : vector<64x128xbf16>, vector<128x128xbf16>, vector<64x128xf32> -> vector<64x128xf32>
    %37 = arith.addf %31, %36 : vector<64x128xf32>
    %c0_53 = arith.constant 0 : index
    %c1_54 = arith.constant 1 : index
    %c0_55 = arith.constant 0 : index
    %c0_56 = arith.constant 0 : index
    %38 = vector.load %arg12[%c0_53, %c1_54, %c0_55, %c0_56] : memref<1x10x10x128xbf16, #tpu.memory_space<vmem>>, vector<1x8x8x128xbf16>
    %39 = vector.shape_cast %38 : vector<1x8x8x128xbf16> to vector<64x128xbf16>
    %c3 = arith.constant 3 : index
    %c0_57 = arith.constant 0 : index
    %c0_58 = arith.constant 0 : index
    %40 = vector.load %arg5[%c3, %c0_57, %c0_58] : memref<9x128x128xbf16, #tpu.memory_space<vmem>>, vector<1x128x128xbf16>
    %41 = vector.shape_cast %40 : vector<1x128x128xbf16> to vector<128x128xbf16>
    %cst_59 = arith.constant dense<0.000000e+00> : vector<64x128xf32>
    %42 = tpu.matmul %39, %41, %cst_59 {dimension_numbers = #tpu.dot_dimension_numbers<[1], [0], [0], [1], [0, 0, 1, 1], [], []>} : vector<64x128xbf16>, vector<128x128xbf16>, vector<64x128xf32> -> vector<64x128xf32>
    %43 = arith.addf %37, %42 : vector<64x128xf32>
    %c0_60 = arith.constant 0 : index
    %c1_61 = arith.constant 1 : index
    %c1_62 = arith.constant 1 : index
    %c0_63 = arith.constant 0 : index
    %44 = vector.load %arg12[%c0_60, %c1_61, %c1_62, %c0_63] : memref<1x10x10x128xbf16, #tpu.memory_space<vmem>>, vector<1x8x8x128xbf16>
    %45 = vector.shape_cast %44 : vector<1x8x8x128xbf16> to vector<64x128xbf16>
    %c4 = arith.constant 4 : index
    %c0_64 = arith.constant 0 : index
    %c0_65 = arith.constant 0 : index
    %46 = vector.load %arg5[%c4, %c0_64, %c0_65] : memref<9x128x128xbf16, #tpu.memory_space<vmem>>, vector<1x128x128xbf16>
    %47 = vector.shape_cast %46 : vector<1x128x128xbf16> to vector<128x128xbf16>
    %cst_66 = arith.constant dense<0.000000e+00> : vector<64x128xf32>
    %48 = tpu.matmul %45, %47, %cst_66 {dimension_numbers = #tpu.dot_dimension_numbers<[1], [0], [0], [1], [0, 0, 1, 1], [], []>} : vector<64x128xbf16>, vector<128x128xbf16>, vector<64x128xf32> -> vector<64x128xf32>
    %49 = arith.addf %43, %48 : vector<64x128xf32>
    %c0_67 = arith.constant 0 : index
    %c1_68 = arith.constant 1 : index
    %c2_69 = arith.constant 2 : index
    %c0_70 = arith.constant 0 : index
    %50 = vector.load %arg12[%c0_67, %c1_68, %c2_69, %c0_70] : memref<1x10x10x128xbf16, #tpu.memory_space<vmem>>, vector<1x8x8x128xbf16>
    %51 = vector.shape_cast %50 : vector<1x8x8x128xbf16> to vector<64x128xbf16>
    %c5 = arith.constant 5 : index
    %c0_71 = arith.constant 0 : index
    %c0_72 = arith.constant 0 : index
    %52 = vector.load %arg5[%c5, %c0_71, %c0_72] : memref<9x128x128xbf16, #tpu.memory_space<vmem>>, vector<1x128x128xbf16>
    %53 = vector.shape_cast %52 : vector<1x128x128xbf16> to vector<128x128xbf16>
    %cst_73 = arith.constant dense<0.000000e+00> : vector<64x128xf32>
    %54 = tpu.matmul %51, %53, %cst_73 {dimension_numbers = #tpu.dot_dimension_numbers<[1], [0], [0], [1], [0, 0, 1, 1], [], []>} : vector<64x128xbf16>, vector<128x128xbf16>, vector<64x128xf32> -> vector<64x128xf32>
    %55 = arith.addf %49, %54 : vector<64x128xf32>
    %c0_74 = arith.constant 0 : index
    %c2_75 = arith.constant 2 : index
    %c0_76 = arith.constant 0 : index
    %c0_77 = arith.constant 0 : index
    %56 = vector.load %arg12[%c0_74, %c2_75, %c0_76, %c0_77] : memref<1x10x10x128xbf16, #tpu.memory_space<vmem>>, vector<1x8x8x128xbf16>
    %57 = vector.shape_cast %56 : vector<1x8x8x128xbf16> to vector<64x128xbf16>
    %c6 = arith.constant 6 : index
    %c0_78 = arith.constant 0 : index
    %c0_79 = arith.constant 0 : index
    %58 = vector.load %arg5[%c6, %c0_78, %c0_79] : memref<9x128x128xbf16, #tpu.memory_space<vmem>>, vector<1x128x128xbf16>
    %59 = vector.shape_cast %58 : vector<1x128x128xbf16> to vector<128x128xbf16>
    %cst_80 = arith.constant dense<0.000000e+00> : vector<64x128xf32>
    %60 = tpu.matmul %57, %59, %cst_80 {dimension_numbers = #tpu.dot_dimension_numbers<[1], [0], [0], [1], [0, 0, 1, 1], [], []>} : vector<64x128xbf16>, vector<128x128xbf16>, vector<64x128xf32> -> vector<64x128xf32>
    %61 = arith.addf %55, %60 : vector<64x128xf32>
    %c0_81 = arith.constant 0 : index
    %c2_82 = arith.constant 2 : index
    %c1_83 = arith.constant 1 : index
    %c0_84 = arith.constant 0 : index
    %62 = vector.load %arg12[%c0_81, %c2_82, %c1_83, %c0_84] : memref<1x10x10x128xbf16, #tpu.memory_space<vmem>>, vector<1x8x8x128xbf16>
    %63 = vector.shape_cast %62 : vector<1x8x8x128xbf16> to vector<64x128xbf16>
    %c7 = arith.constant 7 : index
    %c0_85 = arith.constant 0 : index
    %c0_86 = arith.constant 0 : index
    %64 = vector.load %arg5[%c7, %c0_85, %c0_86] : memref<9x128x128xbf16, #tpu.memory_space<vmem>>, vector<1x128x128xbf16>
    %65 = vector.shape_cast %64 : vector<1x128x128xbf16> to vector<128x128xbf16>
    %cst_87 = arith.constant dense<0.000000e+00> : vector<64x128xf32>
    %66 = tpu.matmul %63, %65, %cst_87 {dimension_numbers = #tpu.dot_dimension_numbers<[1], [0], [0], [1], [0, 0, 1, 1], [], []>} : vector<64x128xbf16>, vector<128x128xbf16>, vector<64x128xf32> -> vector<64x128xf32>
    %67 = arith.addf %61, %66 : vector<64x128xf32>
    %c0_88 = arith.constant 0 : index
    %c2_89 = arith.constant 2 : index
    %c2_90 = arith.constant 2 : index
    %c0_91 = arith.constant 0 : index
    %68 = vector.load %arg12[%c0_88, %c2_89, %c2_90, %c0_91] : memref<1x10x10x128xbf16, #tpu.memory_space<vmem>>, vector<1x8x8x128xbf16>
    %69 = vector.shape_cast %68 : vector<1x8x8x128xbf16> to vector<64x128xbf16>
    %c8 = arith.constant 8 : index
    %c0_92 = arith.constant 0 : index
    %c0_93 = arith.constant 0 : index
    %70 = vector.load %arg5[%c8, %c0_92, %c0_93] : memref<9x128x128xbf16, #tpu.memory_space<vmem>>, vector<1x128x128xbf16>
    %71 = vector.shape_cast %70 : vector<1x128x128xbf16> to vector<128x128xbf16>
    %cst_94 = arith.constant dense<0.000000e+00> : vector<64x128xf32>
    %72 = tpu.matmul %69, %71, %cst_94 {dimension_numbers = #tpu.dot_dimension_numbers<[1], [0], [0], [1], [0, 0, 1, 1], [], []>} : vector<64x128xbf16>, vector<128x128xbf16>, vector<64x128xf32> -> vector<64x128xf32>
    %73 = arith.addf %67, %72 : vector<64x128xf32>
    %c0_95 = arith.constant 0 : index
    %c0_96 = arith.constant 0 : index
    %74 = vector.load %arg6[%c0_95, %c0_96] : memref<1x128xf32, #tpu.memory_space<vmem>>, vector<1x128xf32>
    %75 = vector.broadcast %74 : vector<1x128xf32> to vector<64x128xf32>
    %76 = arith.mulf %73, %75 : vector<64x128xf32>
    %c0_97 = arith.constant 0 : index
    %c0_98 = arith.constant 0 : index
    %77 = vector.load %arg7[%c0_97, %c0_98] : memref<1x128xf32, #tpu.memory_space<vmem>>, vector<1x128xf32>
    %78 = vector.broadcast %77 : vector<1x128xf32> to vector<64x128xf32>
    %79 = arith.addf %76, %78 : vector<64x128xf32>
    %cst_99 = arith.constant 0.000000e+00 : f32
    %80 = vector.broadcast %cst_99 : f32 to vector<64x128xf32>
    %81 = arith.maximumf %79, %80 : vector<64x128xf32>
    %82 = arith.truncf %81 : vector<64x128xf32> to vector<64x128xbf16>
    %c0_100 = arith.constant 0 : index
    %c0_101 = arith.constant 0 : index
    %83 = vector.load %arg8[%c0_100, %c0_101] : memref<128x128xbf16, #tpu.memory_space<vmem>>, vector<128x128xbf16>
    %cst_102 = arith.constant dense<0.000000e+00> : vector<64x128xf32>
    %84 = tpu.matmul %82, %83, %cst_102 {dimension_numbers = #tpu.dot_dimension_numbers<[1], [0], [0], [1], [0, 0, 1, 1], [], []>} : vector<64x128xbf16>, vector<128x128xbf16>, vector<64x128xf32> -> vector<64x128xf32>
    %c0_103 = arith.constant 0 : index
    %c0_104 = arith.constant 0 : index
    %85 = vector.load %arg9[%c0_103, %c0_104] : memref<1x128xf32, #tpu.memory_space<vmem>>, vector<1x128xf32>
    %86 = vector.broadcast %85 : vector<1x128xf32> to vector<64x128xf32>
    %87 = arith.mulf %84, %86 : vector<64x128xf32>
    %c0_105 = arith.constant 0 : index
    %c0_106 = arith.constant 0 : index
    %88 = vector.load %arg10[%c0_105, %c0_106] : memref<1x128xf32, #tpu.memory_space<vmem>>, vector<1x128xf32>
    %89 = vector.broadcast %88 : vector<1x128xf32> to vector<64x128xf32>
    %90 = arith.addf %87, %89 : vector<64x128xf32>
    %c0_107 = arith.constant 0 : index
    %c0_108 = arith.constant 0 : index
    %c0_109 = arith.constant 0 : index
    %c0_110 = arith.constant 0 : index
    %91 = vector.load %arg1[%c0_107, %c0_108, %c0_109, %c0_110] : memref<1x8x8x128xbf16, #tpu.memory_space<vmem>>, vector<1x8x8x128xbf16>
    %92 = vector.shape_cast %91 : vector<1x8x8x128xbf16> to vector<64x128xbf16>
    %93 = arith.extf %92 : vector<64x128xbf16> to vector<64x128xf32>
    %94 = arith.addf %90, %93 : vector<64x128xf32>
    %cst_111 = arith.constant 0.000000e+00 : f32
    %95 = vector.broadcast %cst_111 : f32 to vector<64x128xf32>
    %96 = arith.maximumf %94, %95 : vector<64x128xf32>
    %97 = arith.truncf %96 : vector<64x128xf32> to vector<64x128xbf16>
    %98 = vector.shape_cast %97 : vector<64x128xbf16> to vector<1x8x8x128xbf16>
    %c0_112 = arith.constant 0 : index
    %c0_113 = arith.constant 0 : index
    %c0_114 = arith.constant 0 : index
    %c0_115 = arith.constant 0 : index
    %99 = vector.load %arg11[%c0_112, %c0_113, %c0_114, %c0_115] : memref<1x8x8x128xbf16, #tpu.memory_space<vmem>>, vector<1x8x8x128xbf16>
    tpu.vector_store %arg11[%c0_112, %c0_113, %c0_114, %c0_115], %98 {strides = array<i32>} : memref<1x8x8x128xbf16, #tpu.memory_space<vmem>>, vector<1x8x8x128xbf16>,
    return
  }
  func.func @transform_0(%arg0: i32) -> (i32, i32, i32, i32) {
    %c0_i32 = arith.constant 0 : i32
    %c0_i32_0 = arith.constant 0 : i32
    %c0_i32_1 = arith.constant 0 : i32
    %c0_i32_2 = arith.constant 0 : i32
    return %arg0, %c0_i32, %c0_i32_0, %c0_i32_1 : i32, i32, i32, i32
  }
  func.func @transform_1(%arg0: i32) -> (i32, i32) {
    %c0_i32 = arith.constant 0 : i32
    %c0_i32_0 = arith.constant 0 : i32
    %c0_i32_1 = arith.constant 0 : i32
    return %c0_i32, %c0_i32_0 : i32, i32
  }
  func.func @transform_2(%arg0: i32) -> (i32, i32) {
    %c0_i32 = arith.constant 0 : i32
    %c0_i32_0 = arith.constant 0 : i32
    %c0_i32_1 = arith.constant 0 : i32
    return %c0_i32, %c0_i32_0 : i32, i32
  }
  func.func @transform_3(%arg0: i32) -> (i32, i32) {
    %c0_i32 = arith.constant 0 : i32
    %c0_i32_0 = arith.constant 0 : i32
    %c0_i32_1 = arith.constant 0 : i32
    return %c0_i32, %c0_i32_0 : i32, i32
  }
  func.func @transform_4(%arg0: i32) -> (i32, i32, i32) {
    %c0_i32 = arith.constant 0 : i32
    %c0_i32_0 = arith.constant 0 : i32
    %c0_i32_1 = arith.constant 0 : i32
    %c0_i32_2 = arith.constant 0 : i32
    return %c0_i32, %c0_i32_0, %c0_i32_1 : i32, i32, i32
  }
  func.func @transform_5(%arg0: i32) -> (i32, i32) {
    %c0_i32 = arith.constant 0 : i32
    %c0_i32_0 = arith.constant 0 : i32
    %c0_i32_1 = arith.constant 0 : i32
    return %c0_i32, %c0_i32_0 : i32, i32
  }
  func.func @transform_6(%arg0: i32) -> (i32, i32) {
    %c0_i32 = arith.constant 0 : i32
    %c0_i32_0 = arith.constant 0 : i32
    %c0_i32_1 = arith.constant 0 : i32
    return %c0_i32, %c0_i32_0 : i32, i32
  }
  func.func @transform_7(%arg0: i32) -> (i32, i32) {
    %c0_i32 = arith.constant 0 : i32
    %c0_i32_0 = arith.constant 0 : i32
    %c0_i32_1 = arith.constant 0 : i32
    return %c0_i32, %c0_i32_0 : i32, i32
  }
  func.func @transform_8(%arg0: i32) -> (i32, i32) {
    %c0_i32 = arith.constant 0 : i32
    %c0_i32_0 = arith.constant 0 : i32
    %c0_i32_1 = arith.constant 0 : i32
    return %c0_i32, %c0_i32_0 : i32, i32
  }
  func.func @transform_9(%arg0: i32) -> (i32, i32) {
    %c0_i32 = arith.constant 0 : i32
    %c0_i32_0 = arith.constant 0 : i32
    %c0_i32_1 = arith.constant 0 : i32
    return %c0_i32, %c0_i32_0 : i32, i32
  }
  func.func @transform_10(%arg0: i32) -> (i32, i32, i32, i32) {
    %c0_i32 = arith.constant 0 : i32
    %c0_i32_0 = arith.constant 0 : i32
    %c0_i32_1 = arith.constant 0 : i32
    %c0_i32_2 = arith.constant 0 : i32
    return %arg0, %c0_i32, %c0_i32_0, %c0_i32_1 : i32, i32, i32, i32
  }
}

</mosaic_0001>

<bundles_post_ra>
// kernel: tpu_custom_call.1
= control target key start
LH: loop header
LB: loop body
LE: loop exit
PB: predicated region body
PF: predicated region fallthrough
CT: control target
= control target key end

     0   :  { %s5029_s0 = inlined_call_operand.hbm [shape: bf16[2,8,8,128], index: 0, kind: input, shape index: {}]   ;;  %s5030_s1 = inlined_call_operand.hbm [shape: bf16[128,128], index: 1, kind: input, shape index: {}]   ;;  %s5031_s2 = inlined_call_operand.vmem [shape: f32[1,128], index: 2, kind: input, shape index: {}]   ;;  %s5032_s3 = inlined_call_operand.vmem [shape: f32[1,128], index: 3, kind: input, shape index: {}]   ;;  %s5033_s4 = inlined_call_operand.hbm [shape: bf16[9,128,128], index: 4, kind: input, shape index: {}]   ;;  %s5034_s5 = inlined_call_operand.vmem [shape: f32[1,128], index: 5, kind: input, shape index: {}]   ;;  %s5035_s6 = inlined_call_operand.vmem [shape: f32[1,128], index: 6, kind: input, shape index: {}]   ;;  %s5036_s7 = inlined_call_operand.hbm [shape: bf16[128,128], index: 7, kind: input, shape index: {}]   ;;  %s5037_s8 = inlined_call_operand.vmem [shape: f32[1,128], index: 8, kind: input, shape index: {}]   ;;  %s5038_s9 = inlined_call_operand.vmem [shape: f32[1,128], index: 9, kind: input, shape index: {}]   ;;  %s5039_s10 = inlined_call_operand.hbm [shape: bf16[2,8,8,128], index: 10, kind: output, shape index: {}]  }
   0x1   :  { %5046 = sst [smem:[#allocation18_spill]] %s5038_s9 }
   0x2   :  { %5047 = sst [smem:[#allocation19_spill]] %s5039_s10 }
   0x3   :  { %15 = vsyncpa [#allocation4], 0 }
   0x4   :  { %17 = vsyncpa [#allocation4 + $0x1], 0 }
   0x5   :  { %18 = vsyncpa [#allocation7], 0 }
   0x6   :  { %19 = vsyncpa [#allocation10], 0 }
   0x7   :  { %20 = vsyncpa [#allocation5], 0 }
   0x8   :  { %22 = vsyncpa [#allocation5 + $0x1], 0  ;;  %s4347_s13 = smov 0   ;;  %s4349_s14 = smov 0  }
   0x9   :  { %s4351_s15 = smov 0   ;;  %s4353_s16 = smov 0  }
   0xa LB: > { %5048 = sst [smem:[#allocation16_spill]] %s4268_s13  ;;  %s4368_s17 = sadd.s32 4294967295, %s4280_s16   ;;  %s4280_s16 = sphi %s4353_s16, %s5084_s16   ;;  %s4276_s15 = sphi %s4351_s15, %s5083_s15   ;;  %s4272_s14 = sphi %s4349_s14, %s5082_s14   ;;  %s4268_s13 = sphi %s4347_s13, %s5081_s13  }
   0xb   : > { %s3192_s18 = sadd.s32 4294967294, %s4280_s16   ;;  %p48_p0 = scmp.ne.s32.totalorder %s4272_s14, %s4268_s13 }
   0xc   : > { %p5040_p1 = scmp.eq.s32.totalorder %s4368_s17, 0  ;;  %p267_p3 = scmp.eq.s32.totalorder %s3192_s18, 1 }
   0xd   : > { %p3193_p5 = scmp.ge.s32.totalorder %s4280_s16, 1  ;;  %p274_p7 = scmp.lt.s32.totalorder %s4280_s16, 3 }
   0xe   : > { %p4377_p4 = por %p5040_p1, %p48_p0  ;;  %p4382_p6 = por %p267_p3, %p48_p0 }
   0xf   : > { %p4387_p8 = pnand %p3193_p5, %p274_p7  ;;  %s4282_s22 = smov [#allocation6]  }
  0x10   : > { %s5049_s19 = scalar_select %p4377_p4, 1, 0 }
  0x11   : > { %s5050_s20 = scalar_select %p4382_p6, 1, 0 }
  0x12   : > { %s5052_s21 = scalar_select %p4387_p8, 1, 0 }
  0x13   : > { %5051 = sst [smem:[#allocation17_spill]] %s5050_s20  ;;  %s286_s23 = sshll.u32 %s4282_s22, 4  ;;  %s4391_s23 = int_to_ptr.vmem [resolvable:$true] %s286_s23 }
  0x14   : > { %p3922_p9 = pneg %p4387_p8  ;;  %s4283_s25 = smov [#allocation8]  }
  0x15   : > { %s305_s26 = sshll.u32 %s4283_s25, 4  ;;  %s4284_s27 = smov [#allocation9]   ;;  %s4402_s26 = int_to_ptr.vmem [resolvable:$true] %s305_s26 }
  0x16   : > { %p4398_p11 = pnand %p3922_p9, %p5040_p1  ;;  %s4404_s28 = sshll.u32 %s4284_s27, 4  ;;  %s325_s28 = int_to_ptr.vmem [resolvable:$true] %s4404_s28 }
  0x17   : > { %s4092_s11 = scalar_lea.hbm %s5030_s1, 1024 }
  0x18   : > { %p4093_p12 = scmp.ne.s32.totalorder %s5030_s1, %s4092_s11  ;;  %p4414_p13 = pneg %p4398_p11 }
  0x19   : > { %p4099_p5 = scmp.lt.u32.totalorder %s4092_s11, %s5030_s1 }
  0x1a   : > { %p4095_p0 = pnand %p4414_p13, %p4093_p12 }
  0x1c   : > { %p4096_p3 = pneg %p4095_p0 }
  0x1e   : > { %p4101_p7 = pnand %p4099_p5, %p4096_p3 }
  0x20   : > { %4104 = shalt.err (!%p4101_p7)
}
  0x21   : > { %s4105_s29 = scalar_lea.vmem %s4391_s23, 1024  ;;  %p4113_p2 = scmp.lt.s32.totalorder %s4391_s23, %s4391_s23 }
  0x22   : > { %p4106_p9 = scmp.ne.s32.totalorder %s4391_s23, %s4105_s29  ;;  %p4114_p6 = scmp.lt.s32.totalorder %s4105_s29, %s4105_s29 }
  0x24   : > { %p4108_p10 = pnand %p4106_p9, %p4414_p13  ;;  %p4115_p12 = por %p4114_p6, %p4113_p2 }
  0x26   : > { %p4109_p1 = pneg %p4108_p10 }
  0x28   : > { %p4116_p0 = pnand %p4115_p12, %p4109_p1 }
  0x2a   : > { %4119 = shalt.err (!%p4116_p0)
}
  0x2b   : > { %s4285_s30 = smov 64   ;;  %s4286_s11 = smov 4  }
  0x2c   : > { %3925 = dma.hbm_to_vmem [thread:$0]  (!%p4398_p11), %s5030_s1, 1024, %s4391_s23, [#allocation7], %s4285_s30, %s4285_s30, %s4286_s11  }
  0x2d   : > { %s4120_s29 = scalar_lea.hbm %s5033_s4, 9216 }
  0x2e   : > { %p4121_p1 = scmp.ne.s32.totalorder %s5033_s4, %s4120_s29  ;;  %p4127_p10 = scmp.lt.u32.totalorder %s4120_s29, %s5033_s4 }
  0x30   : > { %p4123_p2 = pnand %p4121_p1, %p4414_p13 }
  0x32   : > { %p4124_p6 = pneg %p4123_p2 }
  0x34   : > { %p4129_p3 = pnand %p4127_p10, %p4124_p6 }
  0x36   : > { %4132 = shalt.err (!%p4129_p3)
}
  0x37   : > { %s4133_s23 = scalar_lea.vmem %s4402_s26, 9216  ;;  %p4141_p12 = scmp.lt.s32.totalorder %s4402_s26, %s4402_s26 }
  0x38   : > { %p4134_p5 = scmp.ne.s32.totalorder %s4402_s26, %s4133_s23  ;;  %p4142_p0 = scmp.lt.s32.totalorder %s4133_s23, %s4133_s23 }
  0x3a   : > { %p4136_p7 = pnand %p4134_p5, %p4414_p13  ;;  %p4143_p1 = por %p4142_p0, %p4141_p12 }
  0x3c   : > { %p4137_p9 = pneg %p4136_p7 }
  0x3e   : > { %p4144_p2 = pnand %p4143_p1, %p4137_p9 }
  0x40   : > { %4147 = shalt.err (!%p4144_p2)
}
  0x41   : > { %3928 = dma.hbm_to_vmem [thread:$0]  (!%p4398_p11), %s5033_s4, 9216, %s4402_s26, [#allocation7], %s4285_s30, %s4285_s30, %s4286_s11  }
  0x42   : > { %s4148_s12 = scalar_lea.hbm %s5036_s7, 1024 }
  0x43   : > { %p4149_p6 = scmp.ne.s32.totalorder %s5036_s7, %s4148_s12  ;;  %p4155_p5 = scmp.lt.u32.totalorder %s4148_s12, %s5036_s7 }
  0x45   : > { %p4151_p10 = pnand %p4149_p6, %p4414_p13 }
  0x47   : > { %p4152_p3 = pneg %p4151_p10 }
  0x49   : > { %p4157_p7 = pnand %p4155_p5, %p4152_p3 }
  0x4b   : > { %4160 = shalt.err (!%p4157_p7)
}
  0x4c   : > { %s4161_s23 = scalar_lea.vmem %s325_s28, 1024  ;;  %p4169_p1 = scmp.lt.s32.totalorder %s325_s28, %s325_s28 }
  0x4d   : > { %p4162_p9 = scmp.ne.s32.totalorder %s325_s28, %s4161_s23  ;;  %p4170_p2 = scmp.lt.s32.totalorder %s4161_s23, %s4161_s23 }
  0x4f   : > { %p4164_p12 = pnand %p4162_p9, %p4414_p13  ;;  %p4171_p4 = por %p4170_p2, %p4169_p1 }
  0x51   : > { %p4165_p0 = pneg %p4164_p12 }
  0x53   : > { %p4172_p8 = pnand %p4171_p4, %p4165_p0 }
  0x55   : > { %4175 = shalt.err (!%p4172_p8)
}
  0x56   : > { %3931 = dma.hbm_to_vmem [thread:$0]  (!%p4398_p11), %s5036_s7, 1024, %s325_s28, [#allocation10], %s4285_s30, %s4285_s30, %s4286_s11  }
  0x57   : > { %s4487_s22 = sadd.s32 1, %s4280_s16   ;;  %s35_s10 = sadd.s32 1, %s4276_s15 }
  0x58   : > { %s32_s24 = ssub.s32 %s4280_s16, %s4487_s22  ;;  %p42_p8 = scmp.ne.s32.totalorder %s4276_s15, %s4272_s14 }
  0x59   : > { %p33_p4 = scmp.eq.s32.totalorder %s32_s24, 0  ;;  %p43_p13 = scmp.eq.s32.totalorder %s4280_s16, 0 }
  0x5a   : > { %p3943_p6 = scmp.lt.s32.totalorder %s4280_s16, 2  ;;  %p5055_p3 = scmp.eq.s32.totalorder %s4368_s17, 1 }
  0x5b   : > { %s4497_s13 = scalar_select %p33_p4, %s4276_s15, %s35_s10  }
  0x5c   : > { %p44_p10 = por %p43_p13, %p42_p8  ;;  %p4501_p5 = por %p5055_p3, %p42_p8 }
  0x5d   : > { %s344_s12 = sand.u32 1, %s4276_s15   ;;  %s3386_s18 = sshll.u32 %s4280_s16, 9 }
  0x5e   : > { %s3198_s28 = sshll.u32 %s344_s12, 5  ;;  %s4510_s29 = scalar_lea.hbm %s5029_s0, %s3386_s18 }
  0x5f   : > { %s348_s23 = scalar_lea.vmem [#allocation3], %s3198_s28  ;;  %p4512_p11 = pnand %p3943_p6, %p44_p10 }
  0x60   : > { %s355_s26 = sshll.u32 %s348_s23, 4  ;;  %s4518_s24 = scalar_lea.sflag [#allocation4], %s344_s12  ;;  %s4516_s26 = int_to_ptr.vmem [resolvable:$true] %s355_s26 }
  0x61   : > { %s4176_s10 = scalar_lea.hbm %s4510_s29, 512  ;;  %p4178_p9 = pneg %p4512_p11 }
  0x62   : > { %p4177_p7 = scmp.ne.s32.totalorder %s4510_s29, %s4176_s10  ;;  %s4181_s25 = scalar_lea.hbm %s5029_s0, 1024 }
  0x63   : > { %p4182_p1 = scmp.lt.u32.totalorder %s4510_s29, %s5029_s0  ;;  %p4183_p2 = scmp.lt.u32.totalorder %s4181_s25, %s4176_s10 }
  0x64   : > { %p4179_p12 = pnand %p4178_p9, %p4177_p7  ;;  %p4185_p8 = scmp.lt.u32.totalorder %s4176_s10, %s4510_s29 }
  0x65   : > { %p4184_p4 = por %p4183_p2, %p4182_p1 }
  0x66   : > { %p4180_p0 = pneg %p4179_p12 }
  0x67   : > { %p4186_p13 = por %p4185_p8, %p4184_p4 }
  0x69   : > { %p4187_p6 = pnand %p4186_p13, %p4180_p0 }
  0x6b   : > { %4190 = shalt.err (!%p4187_p6)
}
  0x6c   : > { %s4191_s12 = scalar_lea.vmem %s4516_s26, 512  ;;  %s4287_s18 = smov [#allocation3]  }
  0x6d   : > { %p4192_p10 = scmp.ne.s32.totalorder %s4516_s26, %s4191_s12  ;;  %s4196_s28 = sshll.u32 %s4287_s18, 4  ;;  %s4197_s28 = int_to_ptr.vmem [resolvable:$false] %s4196_s28 }
  0x6e   : > { %s4198_s27 = scalar_lea.vmem %s4197_s28, 1024  ;;  %p4199_p12 = scmp.lt.s32.totalorder %s4516_s26, %s4197_s28 }
  0x6f   : > { %p4194_p3 = pnand %p4192_p10, %p4178_p9  ;;  %p4200_p1 = scmp.lt.s32.totalorder %s4198_s27, %s4191_s12 }
  0x71   : > { %p4195_p7 = pneg %p4194_p3  ;;  %p4201_p2 = por %p4200_p1, %p4199_p12 }
  0x73   : > { %p4202_p4 = pnand %p4201_p2, %p4195_p7 }
  0x75   : > { %4205 = shalt.err (!%p4202_p4)
}
  0x76   : > { %3935 = dma.hbm_to_vmem [thread:$0]  (!%p4512_p11), %s4510_s29, 512, %s4516_s26, %s4518_s24, %s4285_s30, %s4285_s30, %s4286_s11  }
  0x77   : > { %p5058_p9 = scmp.ne.s32.totalorder %s5052_s21, 0 }
  0x78   : > { %s4552_s10 = sand.u32 (!%p5058_p9), 1, %s4272_s14   ;;  %p5059_p0 = scmp.ne.s32.totalorder (!%p5058_p9), %s5049_s19, 0 }
  0x79   : > { %367 = sbr.rel (%p5058_p9) target bundleno = 1046 (0x416), region = 60  ;;  %s3202_s25 = sshll.u32 (!%p5058_p9), %s4552_s10, 5 }
  0x7a   : > { %s370_s23 = scalar_lea.sflag (!%p5058_p9), [#allocation4], %s4552_s10  ;;  %s4558_s9 = scalar_lea.vmem (!%p5058_p9), [#allocation3], %s3202_s25 }
  0x80   : > { %4251 = dma.done.wait (%p5059_p0), %s370_s23, 512  }
  0x81   : > { %4253 = vsyncadd (%p5059_p0), %s370_s23, 4294966784  ;;  %p5060_p11 = scmp.eq.s32.totalorder %s4368_s17, 0 }
  0x83   : > { %4255 = dma.done.wait (%p5060_p11), [#allocation7], 10240   ;;  %p5061_p8 = pmov %p5060_p11 }
  0x85   : > { %4257 = vsyncadd (%p5061_p8), [#allocation7], 4294957056  ;;  %p5062_p13 = pmov %p5061_p8 }
  0x86   : > { %p5063_p6 = pmov %p5061_p8 }
  0x87   : > { %4259 = dma.done.wait (%p5062_p13), [#allocation10], 1024  }
  0x88   : > { %4261 = vsyncadd (%p5063_p6), [#allocation10], 4294966272  ;;  %v3988_v0 = vld [vmem:[#allocation6] sm:$0xff]   ;;  %v3989_v1 = vld [vmem:[#allocation6 + $0x8] sm:$0xff]   ;;  %vm628_vm0 = vcmask 1040384   ;;  %v4288_v52 = vmov 0  }
  0x89   : > { %3578 = vmatprep.subr.bf16.mxu0 %v3988_v0  ;;  %v3990_v2 = vld [vmem:[#allocation6 + $0x10] sm:$0xff]   ;;  %v3991_v3 = vld [vmem:[#allocation6 + $0x18] sm:$0xff]   ;;  %v3996_v4 = vld [vmem:[%s4558_s9] sm:$0xff]   ;;  %vm629_vm1 = vsmask.f32 256  ;;  %vm785_vm5 = vcmask 1043456  }
  0x8a   : > { %3579 = vmatpush3.bf16.msra.mxu0 %v3988_v0  ;;  %3594 = vmatprep.mubr.bf16.mxu0 %v3996_v4  ;;  %v3992_v5 = vld [vmem:[#allocation6 + $0x20] sm:$0xff]   ;;  %v3993_v7 = vld [vmem:[#allocation6 + $0x28] sm:$0xff]   ;;  %v3994_v8 = vld [vmem:[#allocation6 + $0x30] sm:$0xff]   ;;  %vm655_vm2 = vsmask.f32 7938  ;;  %vm1289_vm10 = vcmask 1042432  }
  0x8b   : > { %3580 = vmatprep.subr.bf16.mxu0 %v3989_v1  ;;  %v4000_v6 = vld [vmem:[#allocation8 + $0xc0] sm:$0xff]   ;;  %v3995_v9 = vld [vmem:[#allocation6 + $0x38] sm:$0xff]   ;;  %v3997_v10 = vld [vmem:[%s4558_s9 + $0x8] sm:$0xff]   ;;  %622 = vst [vmem:[#allocation2] sm:$0xf] %v4288_v52  ;;  %vm1290_vm11 = vcmask 1046532  }
  0x8c   : > { %3674 = vmatprep.subr.bf16.mxu1 %v4000_v6  ;;  %v3998_v11 = vld [vmem:[%s4558_s9 + $0x10] sm:$0xff]   ;;  %v3999_v12 = vld [vmem:[%s4558_s9 + $0x18] sm:$0xff]   ;;  %v4001_v13 = vld [vmem:[#allocation8 + $0xc8] sm:$0xff]   ;;  %623 = vst [vmem:[#allocation2 + $0x4] sm:$0x1] %v4288_v52  ;;  %s5074_s19 = sld [smem:[#allocation18_spill]] }
  0x8d   : > { %3675 = vmatpush3.bf16.msra.mxu1 %v4000_v6  ;;  %v4003_v14 = vld [vmem:[#allocation8 + $0xd0] sm:$0xff]   ;;  %v4002_v15 = vld [vmem:[#allocation8 + $0x40] sm:$0xff]   ;;  %vm4576_vm3 = vmand %vm628_vm0, %vm629_vm1  ;;  %625 = vst [vmem:[#allocation2 + $0x48] sm:$0xf] %v4288_v52  ;;  %vm867_vm7 = vsmask.f32 3328 }
  0x8e   : > { %3581 = vmatpush3.bf16.msra.mxu0 %v3989_v1  ;;  %3676 = vmatprep.subr.bf16.mxu1 %v4001_v13  ;;  %v637_v17 = vld [vmem:[#allocation2 + $0x18] sm:$0x1]  ;;  %v663_v18 = vld [vmem:[#allocation2 + $0x1c] sm:$0x1]  ;;  %vm4583_vm4 = vmand %vm628_vm0, %vm655_vm2  ;;  %626 = vst [vmem:[#allocation2 + $0x4c] sm:$0x1] %v4288_v52 }
  0x8f   : > { %3582 = vmatprep.subr.bf16.mxu0 %v3990_v2  ;;  %v638_v19 = vsel %vm4576_vm3, 0, %v637_v17  ;;  %v631_v21 = vld [vmem:[#allocation2 + $0x8] sm:$0x1]  ;;  %v657_v22 = vld [vmem:[#allocation2 + $0xc] sm:$0x1]  ;;  %v664_v23 = vsel %vm4583_vm4, 0, %v663_v18  ;;  %vm4659_vm6 = vmand %vm785_vm5, %vm655_vm2 }
  0x90   : > { %639 = vst [vmem:[#allocation2 + $0x18] sm:$0x1] %v638_v19  ;;  %v632_v24 = vsel %vm4576_vm3, 0, %v631_v21  ;;  %v658_v25 = vsel %vm4583_vm4, 0, %v657_v22  ;;  %v640_v26 = vld [vmem:[#allocation2 + $0x20] sm:$0x1]  ;;  %vm4830_vm12 = vmor %vm1289_vm10, %vm1290_vm11 }
  0x91   : > { %3677 = vmatpush3.bf16.msra.mxu1 %v4001_v13  ;;  %v4005_v27 = vld [vmem:[#allocation8 + $0xd8] sm:$0xff]   ;;  %665 = vst [vmem:[#allocation2 + $0x1c] sm:$0x1] %v664_v23  ;;  %633 = vst [vmem:[#allocation2 + $0x8] sm:$0x1] %v632_v24  ;;  %v641_v28 = vsel %vm4576_vm3, 0, %v640_v26 }
  0x92   : > { %3583 = vmatpush3.bf16.msra.mxu0 %v3990_v2  ;;  %3678 = vmatprep.subr.bf16.mxu1 %v4003_v14  ;;  %659 = vst [vmem:[#allocation2 + $0xc] sm:$0x1] %v658_v25  ;;  %v666_v29 = vld [vmem:[#allocation2 + $0x24] sm:$0x1]  ;;  %v634_v30 = vld [vmem:[#allocation2 + $0x10] sm:$0x1] }
  0x93   : > { %3584 = vmatprep.subr.bf16.mxu0 %v3991_v3  ;;  %v4004_v31 = vld [vmem:[#allocation8 + $0x48] sm:$0xff]   ;;  %642 = vst [vmem:[#allocation2 + $0x20] sm:$0x1] %v641_v28  ;;  %v667_v32 = vsel %vm4583_vm4, 0, %v666_v29  ;;  %v635_v33 = vsel %vm4576_vm3, 0, %v634_v30  ;;  %v4007_v39 = vld [vmem:[#allocation8 + $0xe0] sm:$0xff]  }
  0x94   : > { %v660_v34 = vld [vmem:[#allocation2 + $0x14] sm:$0x1]  ;;  %668 = vst [vmem:[#allocation2 + $0x24] sm:$0x1] %v667_v32  ;;  %636 = vst [vmem:[#allocation2 + $0x10] sm:$0x1] %v635_v33 }
  0x95   : > { %3679 = vmatpush3.bf16.msra.mxu1 %v4003_v14  ;;  %v661_v35 = vsel %vm4583_vm4, 0, %v660_v34  ;;  %v643_v36 = vld [vmem:[#allocation2 + $0x28] sm:$0x1]  ;;  %v649_v37 = vld [vmem:[#allocation2 + $0x38] sm:$0x1]  ;;  %v4006_v41 = vld [vmem:[#allocation8 + $0x50] sm:$0xff]  }
  0x96   : > { %3585 = vmatpush3.bf16.msra.mxu0 %v3991_v3  ;;  %3680 = vmatprep.subr.bf16.mxu1 %v4005_v27  ;;  %662 = vst [vmem:[#allocation2 + $0x14] sm:$0x1] %v661_v35  ;;  %v644_v38 = vsel %vm4576_vm3, 0, %v643_v36  ;;  %v650_v40 = vsel %vm4576_vm3, 0, %v649_v37  ;;  %v669_v42 = vld [vmem:[#allocation2 + $0x2c] sm:$0x1] }
  0x97   : > { %3586 = vmatprep.subr.bf16.mxu0 %v3992_v5  ;;  %645 = vst [vmem:[#allocation2 + $0x28] sm:$0x1] %v644_v38  ;;  %651 = vst [vmem:[#allocation2 + $0x38] sm:$0x1] %v650_v40  ;;  %v675_v43 = vld [vmem:[#allocation2 + $0x3c] sm:$0x1] }
  0x98   : > { %v670_v44 = vsel %vm4583_vm4, 0, %v669_v42  ;;  %v676_v45 = vsel %vm4583_vm4, 0, %v675_v43  ;;  %v4009_v46 = vld [vmem:[#allocation8 + $0xe8] sm:$0xff]   ;;  %v4008_v47 = vld [vmem:[#allocation8 + $0x58] sm:$0xff]   ;;  %v652_v48 = vld [vmem:[#allocation2 + $0x40] sm:$0x1] }
  0x99   : > { %3681 = vmatpush3.bf16.msra.mxu1 %v4005_v27  ;;  %671 = vst [vmem:[#allocation2 + $0x2c] sm:$0x1] %v670_v44  ;;  %677 = vst [vmem:[#allocation2 + $0x3c] sm:$0x1] %v676_v45  ;;  %v646_v49 = vld [vmem:[#allocation2 + $0x30] sm:$0x1] }
  0x9a   : > { %3587 = vmatpush3.bf16.msra.mxu0 %v3992_v5  ;;  %3682 = vmatprep.subr.bf16.mxu1 %v4007_v39  ;;  %v653_v50 = vsel %vm4576_vm3, 0, %v652_v48  ;;  %v647_v51 = vsel %vm4576_vm3, 0, %v646_v49  ;;  %v4011_v53 = vld [vmem:[#allocation8 + $0xf0] sm:$0xff]   ;;  %v4010_v54 = vld [vmem:[#allocation8 + $0x60] sm:$0xff]   ;;  %v4013_v59 = vld [vmem:[#allocation8 + $0xf8] sm:$0xff]   ;;  %s3403_s30 = sshll.u32 %s4368_s17, 9 }
  0x9b   : > { %3588 = vmatprep.subr.bf16.mxu0 %v3993_v7  ;;  %654 = vst [vmem:[#allocation2 + $0x40] sm:$0x1] %v653_v50  ;;  %648 = vst [vmem:[#allocation2 + $0x30] sm:$0x1] %v647_v51  ;;  %v678_v55 = vld [vmem:[#allocation2 + $0x44] sm:$0x1] }
  0x9c   : > { %v672_v56 = vld [vmem:[#allocation2 + $0x34] sm:$0x1]  ;;  %v679_v57 = vsel %vm4583_vm4, 0, %v678_v55  ;;  %v4012_v60 = vld [vmem:[#allocation8 + $0x68] sm:$0xff]   ;;  %v4014_v62 = vld [vmem:[#allocation8 + $0x70] sm:$0xff]   ;;  %s5075_s29 = sld [smem:[#allocation19_spill]] }
  0x9d   : > { %3683 = vmatpush3.bf16.msra.mxu1 %v4007_v39  ;;  %v673_v58 = vsel %vm4583_vm4, 0, %v672_v56  ;;  %680 = vst [vmem:[#allocation2 + $0x44] sm:$0x1] %v679_v57  ;;  %v4617_v61 = vld [vmem:[#allocation8 + $0x100] sm:$0xff]   ;;  %v4018_v63 = vld [vmem:[#allocation8 + $0x78] sm:$0xff]   ;;  %s3077_s24 = scalar_lea.sflag [#allocation5], %s4552_s10 }
  0x9e   : > { %3589 = vmatpush3.bf16.msra.mxu0 %v3993_v7  ;;  %3684 = vmatprep.subr.bf16.mxu1 %v4009_v46  ;;  %674 = vst [vmem:[#allocation2 + $0x34] sm:$0x1] %v673_v58  ;;  %v4620_v0 = vld [vmem:[#allocation8] sm:$0xff]   ;;  %v4623_v1 = vld [vmem:[#allocation2] sm:$0xf]  ;;  %s4289_s12 = smov [#allocation11]  }
  0x9f   : > { %3590 = vmatprep.subr.bf16.mxu0 %v3994_v8  ;;  %v4628_v2 = vld [vmem:[%s5031_s2] ss:$0 sm:$0xff]  ;;  %v871_v5 = vshrl.u32 %v4623_v1, 16  ;;  %v874_v6 = vshll.u32 %v4623_v1, 16  ;;  %v4649_v25 = vld [vmem:[#allocation2 + $0x4] sm:$0x1] }
  0xa0   : > { %v4633_v4 = vld [vmem:[%s5032_s3] ss:$0 sm:$0xff]  ;;  %v880_v30 = vshll.u32 %v4649_v25, 16  ;;  %v799_v36 = vld [vmem:[#allocation2 + $0x18] sm:$0xf]  ;;  %s4210_s18 = sshll.u32 %s4289_s12, 4  ;;  %s4211_s18 = int_to_ptr.vmem [resolvable:$false] %s4210_s18 }
  0xa1   : > { %3685 = vmatpush3.bf16.msra.mxu1 %v4009_v46  ;;  %v4643_v17 = vrot.slane %v871_v5, 4  ;;  %v4645_v18 = vrot.slane %v874_v6, 5  ;;  %v802_v37 = vld [vmem:[#allocation2 + $0x1c] sm:$0x1]  ;;  %v787_v44 = vld [vmem:[#allocation2 + $0x8] sm:$0xf] }
  0xa2   : > { %3591 = vmatpush3.bf16.msra.mxu0 %v3994_v8  ;;  %3686 = vmatprep.subr.bf16.mxu1 %v4011_v53  ;;  %v790_v51 = vld [vmem:[#allocation2 + $0xc] sm:$0x1]  ;;  %v805_v58 = vld [vmem:[#allocation2 + $0x20] sm:$0xf]  ;;  %vm868_vm8 = vsmask.f32 7440  ;;  %s4985_s26 = scalar_lea.hbm %s5075_s29, %s3403_s30 }
  0xa3   : > { %3592 = vmatprep.subr.bf16.mxu0 %v3995_v9  ;;  %v877_v29 = vor.u32 %v4645_v18, %v4643_v17  ;;  %vm4707_vm9 = vmor %vm867_vm7, %vm868_vm8  ;;  %s4212_s28 = scalar_lea.vmem %s4211_s18, 1024 }
  0xa5   : > { %3687 = vmatpush3.bf16.msra.mxu1 %v4011_v53 }
  0xa6   : > { %3593 = vmatpush3.bf16.msra.mxu0 %v3995_v9  ;;  %3688 = vmatprep.subr.bf16.mxu1 %v4013_v59 }
  0xa7   : > { %3602 = vmatprep.subr.bf16.mxu0 %v4002_v15 }
  0xa9   : > { %3595 = vmatmul.mubr.bf16.vlgmr.msra.gmra.mrb[0].mxu0 %v3997_v10  ;;  %3689 = vmatpush3.bf16.msra.mxu1 %v4013_v59 }
  0xaa   : > { %3598 = vmatprep.mubr.bf16.mxu0 %v3998_v11  ;;  %3603 = vmatpush3.bf16.msra.mxu0 %v4002_v15 }
  0xab   : > { %3604 = vmatprep.subr.bf16.mxu0 %v4004_v31  ;;  %3698 = vmatprep.subr.bf16.mxu1 %v4617_v61 }
  0xae   : > { %3605 = vmatpush3.bf16.msra.mxu0 %v4004_v31 }
  0xaf   : > { %3606 = vmatprep.subr.bf16.mxu0 %v4006_v41 }
  0xb1   : > { %3599 = vmatmul.mubr.bf16.gmra.mrb[4].mxu0 %v3999_v12 }
  0xb2   : > { %3607 = vmatpush3.bf16.msra.mxu0 %v4006_v41 }
  0xb3   : > { %3608 = vmatprep.subr.bf16.mxu0 %v4008_v47 }
  0xb6   : > { %3609 = vmatpush3.bf16.msra.mxu0 %v4008_v47 }
  0xb7   : > { %3610 = vmatprep.subr.bf16.mxu0 %v4010_v54 }
  0xba   : > { %3611 = vmatpush3.bf16.msra.mxu0 %v4010_v54 }
  0xbb   : > { %3612 = vmatprep.subr.bf16.mxu0 %v4012_v60 }
  0xbe   : > { %3613 = vmatpush3.bf16.msra.mxu0 %v4012_v60 }
  0xbf   : > { %3614 = vmatprep.subr.bf16.mxu0 %v4014_v62 }
  0xc2   : > { %3615 = vmatpush3.bf16.msra.mxu0 %v4014_v62 }
  0xc3   : > { %3616 = vmatprep.subr.bf16.mxu0 %v4018_v63 }
  0xc6   : > { %3617 = vmatpush3.bf16.msra.mxu0 %v4018_v63  ;;  %v808_v63 = vld [vmem:[#allocation2 + $0x24] sm:$0x1] }
  0xc7   : > { %3626 = vmatprep.subr.bf16.mxu0 %v4620_v0 }
 0x17c   : > { %v3596_v3 = vpop.f32.mrb[0].mxu0 }
 0x17d   : > { %v593_v7 = vmul.f32 %v3596_v3, %v4628_v2  ;;  %v553_v8 = vpop.f32.mrb[1].mxu0 }
 0x17e   : > { %v591_v9 = vmul.f32 %v4628_v2, %v553_v8  ;;  %v3597_v10 = vpop.f32.mrb[2].mxu0 }
 0x17f   : > { %v608_v11 = vadd.f32 %v4633_v4, %v593_v7  ;;  %v594_v12 = vmul.f32 %v3597_v10, %v4628_v2  ;;  %v556_v13 = vpop.f32.mrb[3].mxu0  ;;  %v793_v10 = vld [vmem:[#allocation2 + $0x10] sm:$0xf] }
 0x180   : > { %v606_v14 = vadd.f32 %v4633_v4, %v591_v9  ;;  %v592_v15 = vmul.f32 %v4628_v2, %v556_v13 }
 0x181   : > { %v616_v19 = vmax.f32 %v608_v11, 0.0  ;;  %v609_v20 = vadd.f32 %v4633_v4, %v594_v12  ;;  %v796_v11 = vld [vmem:[#allocation2 + $0x14] sm:$0x1] }
 0x182   : > { %v614_v21 = vmax.f32 %v606_v14, 0.0  ;;  %v607_v22 = vadd.f32 %v4633_v4, %v592_v15 }
 0x183   : > { %v3389_v23 = vpack.c.bf16 %v616_v19, %v616_v19  ;;  %v617_v24 = vmax.f32 %v609_v20, 0.0 }
 0x184   : > { %v3387_v26 = vpack.c.bf16 %v614_v21, %v614_v21  ;;  %v615_v27 = vmax.f32 %v607_v22, 0.0  ;;  %v3600_v28 = vpop.f32.mrb[4].mxu0 }
 0x185   : > { %v722_v31 = vshrl.u32 %v3389_v23, 16  ;;  %v725_v32 = vshll.u32 %v3389_v23, 16  ;;  %v3390_v33 = vpack.c.bf16 %v617_v24, %v617_v24  ;;  %v597_v34 = vmul.f32 %v3600_v28, %v4628_v2  ;;  %v569_v35 = vpop.f32.mrb[5].mxu0 }
 0x186   : > { %v706_v38 = vshrl.u32 %v3387_v26, 16  ;;  %v709_v39 = vshll.u32 %v3387_v26, 16  ;;  %v3388_v40 = vpack.c.bf16 %v615_v27, %v615_v27  ;;  %v595_v41 = vmul.f32 %v4628_v2, %v569_v35  ;;  %v3601_v42 = vpop.f32.mrb[6].mxu0  ;;  %v811_v35 = vld [vmem:[#allocation2 + $0x28] sm:$0xf] }
 0x187   : > { %v724_v43 = vrot.slane %v722_v31, 7  ;;  %v730_v45 = vshrl.u32 %v3390_v33, 16  ;;  %v733_v46 = vshll.u32 %v3390_v33, 16  ;;  %v612_v47 = vadd.f32 %v4633_v4, %v597_v34  ;;  %v572_v48 = vpop.f32.mrb[7].mxu0  ;;  %v823_v34 = vld [vmem:[#allocation2 + $0x38] sm:$0xf] }
 0x188   : > { %v708_v50 = vrot.slane %v706_v38, 7  ;;  %v714_v52 = vshrl.u32 %v3388_v40, 16  ;;  %v717_v53 = vshll.u32 %v3388_v40, 16  ;;  %v610_v54 = vadd.f32 %v4633_v4, %v595_v41  ;;  %v826_v41 = vld [vmem:[#allocation2 + $0x3c] sm:$0x1] }
 0x189   : > { %v727_v55 = vor.u32 %v725_v32, %v724_v43  ;;  %v728_v56 = vrot.slane %v724_v43, 4  ;;  %v732_v57 = vrot.slane %v730_v45, 7  ;;  %v620_v59 = vmax.f32 %v612_v47, 0.0 }
 0x18a   : > { %v711_v60 = vor.u32 %v709_v39, %v708_v50  ;;  %v712_v62 = vrot.slane %v708_v50, 4  ;;  %v716_v3 = vrot.slane %v714_v52, 7  ;;  %v618_v5 = vmax.f32 %v610_v54, 0.0 }
 0x18b   : > { %v800_v6 = vsel %vm4659_vm6, %v727_v55, %v799_v36  ;;  %v803_v7 = vsel %vm4576_vm3, %v728_v56, %v802_v37  ;;  %v735_v8 = vor.u32 %v733_v46, %v732_v57  ;;  %v736_v9 = vrot.slane %v732_v57, 4  ;;  %v814_v36 = vld [vmem:[#allocation2 + $0x2c] sm:$0x1] }
 0x18c   : > { %801 = vst [vmem:[#allocation2 + $0x18] sm:$0xf] %v800_v6  ;;  %804 = vst [vmem:[#allocation2 + $0x1c] sm:$0x1] %v803_v7  ;;  %v788_v12 = vsel %vm4659_vm6, %v711_v60, %v787_v44  ;;  %v791_v13 = vsel %vm4576_vm3, %v712_v62, %v790_v51  ;;  %v719_v14 = vor.u32 %v717_v53, %v716_v3  ;;  %v720_v15 = vrot.slane %v716_v3, 4  ;;  %v4019_v3 = vld [vmem:[#allocation8 + $0x108] sm:$0xff]  }
 0x18d   : > { %789 = vst [vmem:[#allocation2 + $0x8] sm:$0xf] %v788_v12  ;;  %792 = vst [vmem:[#allocation2 + $0xc] sm:$0x1] %v791_v13  ;;  %v806_v19 = vsel %vm4659_vm6, %v735_v8, %v805_v58  ;;  %v809_v20 = vsel %vm4576_vm3, %v736_v9, %v808_v63  ;;  %v3393_v21 = vpack.c.bf16 %v620_v59, %v620_v59  ;;  %v4687_v43 = vrot.slane %v877_v29, 4 }
 0x18e   : > { %v3391_v22 = vpack.c.bf16 %v618_v5, %v618_v5  ;;  %807 = vst [vmem:[#allocation2 + $0x20] sm:$0xf] %v806_v19  ;;  %810 = vst [vmem:[#allocation2 + $0x24] sm:$0x1] %v809_v20  ;;  %v794_v23 = vsel %vm4659_vm6, %v719_v14, %v793_v10  ;;  %v797_v24 = vsel %vm4576_vm3, %v720_v15, %v796_v11  ;;  %v4691_v44 = vrot.slane %v880_v30, 5  ;;  %v4081_v30 = vld [vmem:[#allocation8 + $0x228] sm:$0xff]  }
 0x18f   : > { %v598_v26 = vmul.f32 %v3601_v42, %v4628_v2  ;;  %v596_v27 = vmul.f32 %v4628_v2, %v572_v48  ;;  %795 = vst [vmem:[#allocation2 + $0x10] sm:$0xf] %v794_v23  ;;  %798 = vst [vmem:[#allocation2 + $0x14] sm:$0x1] %v797_v24  ;;  %v754_v28 = vshrl.u32 %v3393_v21, 16  ;;  %v757_v31 = vshll.u32 %v3393_v21, 16 }
 0x190   : > { %v738_v32 = vshrl.u32 %v3391_v22, 16  ;;  %v741_v33 = vshll.u32 %v3391_v22, 16  ;;  %v829_v59 = vld [vmem:[#allocation2 + $0x40] sm:$0xf]  ;;  %v832_v60 = vld [vmem:[#allocation2 + $0x44] sm:$0x1]  ;;  %v883_v11 = vsel %vm4707_vm9, %v4687_v43, %v4691_v44 }
 0x191   : > { %v613_v37 = vadd.f32 %v4633_v4, %v598_v26  ;;  %v611_v38 = vadd.f32 %v4633_v4, %v596_v27  ;;  %v756_v39 = vrot.slane %v754_v28, 7  ;;  %v817_v62 = vld [vmem:[#allocation2 + $0x30] sm:$0xf]  ;;  %v820_v13 = vld [vmem:[#allocation2 + $0x34] sm:$0x1] }
 0x192   : > { %v740_v40 = vrot.slane %v738_v32, 7 }
 0x193   : > { %v621_v42 = vmax.f32 %v613_v37, 0.0  ;;  %v619_v2 = vmax.f32 %v611_v38, 0.0  ;;  %v759_v45 = vor.u32 %v757_v31, %v756_v39  ;;  %v760_v46 = vrot.slane %v756_v39, 4  ;;  %v4711_v54 = vld [vmem:[#allocation2 + $0x18] sm:$0xf] }
 0x194   : > { %v743_v47 = vor.u32 %v741_v33, %v740_v40  ;;  %v744_v4 = vrot.slane %v740_v40, 4  ;;  %v4693_v51 = vld [vmem:[#allocation2 + $0x8] sm:$0xf]  ;;  %v4695_v52 = vld [vmem:[#allocation2 + $0xc] sm:$0x1]  ;;  %v913_v20 = vshrl.u32 %v4711_v54, 16 }
 0x195   : > { %v3394_v48 = vpack.c.bf16 %v621_v42, %v621_v42  ;;  %v3392_v50 = vpack.c.bf16 %v619_v2, %v619_v2  ;;  %v824_v53 = vsel %vm4659_vm6, %v759_v45, %v823_v34  ;;  %v827_v17 = vsel %vm4576_vm3, %v760_v46, %v826_v41  ;;  %v4017_v10 = vld [vmem:[#allocation2 + $0x18] ss:$8 sps:$4 sm:$0xff]   ;;  %v4726_v27 = vld [vmem:[#allocation2 + $0x1c] sm:$0x1]  ;;  %v1648_v34 = vld [vmem:[#allocation2 + $0x8] sm:$0xf] }
 0x196   : > { %v812_v18 = vsel %vm4659_vm6, %v743_v47, %v811_v35  ;;  %v815_v29 = vsel %vm4576_vm3, %v744_v4, %v814_v36  ;;  %825 = vst [vmem:[#allocation2 + $0x38] sm:$0xf] %v824_v53  ;;  %828 = vst [vmem:[#allocation2 + $0x3c] sm:$0x1] %v827_v17  ;;  %v4015_v63 = vld [vmem:[#allocation2 + $0x8] ss:$8 sps:$4 sm:$0xff]  }
 0x197   : > { %813 = vst [vmem:[#allocation2 + $0x28] sm:$0xf] %v812_v18  ;;  %816 = vst [vmem:[#allocation2 + $0x2c] sm:$0x1] %v815_v29  ;;  %v762_v55 = vshrl.u32 %v3394_v48, 16  ;;  %v765_v56 = vshll.u32 %v3394_v48, 16  ;;  %3690 = vmatprep.mubr.bf16.mxu1 %v4015_v63 }
 0x198   : > { %v746_v57 = vshrl.u32 %v3392_v50, 16  ;;  %v749_v58 = vshll.u32 %v3392_v50, 16  ;;  %v885_v5 = vshrl.u32 %v4693_v51, 16  ;;  %v888_v6 = vshll.u32 %v4693_v51, 16  ;;  %v4720_v12 = vld [vmem:[#allocation2 + $0x10] sm:$0xf]  ;;  %3691 = vmatmul.mubr.bf16.vlgmr.msra.gmra.mrb[0].mxu1 %v4017_v10 }
 0x199   : > { %v894_v7 = vshll.u32 %v4695_v52, 16  ;;  %v764_v8 = vrot.slane %v762_v55, 7  ;;  %v899_v19 = vshrl.u32 %v4720_v12, 16  ;;  %v4724_v26 = vld [vmem:[#allocation2 + $0x14] sm:$0x1]  ;;  %3699 = vmatpush3.bf16.msra.mxu1 %v4617_v61  ;;  %v902_v33 = vshll.u32 %v4720_v12, 16 }
 0x19a   : > { %v748_v9 = vrot.slane %v746_v57, 7  ;;  %v887_v14 = vrot.slane %v885_v5, 4  ;;  %v890_v15 = vrot.slane %v888_v6, 5  ;;  %3700 = vmatprep.subr.bf16.mxu1 %v4019_v3  ;;  %v4022_v61 = vld [vmem:[#allocation8 + $0x110] sm:$0xff]   ;;  %v4738_v39 = vld [vmem:[#allocation2 + $0xc] sm:$0x1] }
 0x19b   : > { %v767_v21 = vor.u32 %v765_v56, %v764_v8  ;;  %v768_v22 = vrot.slane %v764_v8, 4  ;;  %v896_v31 = vrot.slane %v894_v7, 5  ;;  %v901_v32 = vrot.slane %v899_v19, 4  ;;  %v1650_v40 = vld [vmem:[#allocation2 + $0x10] sm:$0xf]  ;;  %v4025_v55 = vld [vmem:[#allocation8 + $0x118] sm:$0xff]  }
 0x19c   : > { %v751_v23 = vor.u32 %v749_v58, %v748_v9  ;;  %v752_v24 = vrot.slane %v748_v9, 4  ;;  %v891_v28 = vor.u32 %v890_v15, %v887_v14  ;;  %v904_v42 = vrot.slane %v902_v33, 5  ;;  %v4746_v50 = vld [vmem:[#allocation2 + $0x20] sm:$0xf]  ;;  %v4748_v18 = vld [vmem:[#allocation2 + $0x14] sm:$0x1] }
 0x19d   : > { %v830_v35 = vsel %vm4659_vm6, %v767_v21, %v829_v59  ;;  %v833_v36 = vsel %vm4576_vm3, %v768_v22, %v832_v60  ;;  %v908_v2 = vshll.u32 %v4724_v26, 16  ;;  %v915_v43 = vrot.slane %v913_v20, 4  ;;  %3701 = vmatpush3.bf16.msra.mxu1 %v4019_v3  ;;  %v4750_v3 = vld [vmem:[#allocation2 + $0x24] sm:$0x1] }
 0x19e   : > { %v818_v37 = vsel %vm4659_vm6, %v751_v23, %v817_v62  ;;  %v821_v38 = vsel %vm4576_vm3, %v752_v24, %v820_v13  ;;  %831 = vst [vmem:[#allocation2 + $0x40] sm:$0xf] %v830_v35  ;;  %834 = vst [vmem:[#allocation2 + $0x44] sm:$0x1] %v833_v36  ;;  %v892_v41 = vrot.slane %v891_v28, 4  ;;  %v916_v49 = vshll.u32 %v4711_v54, 16  ;;  %3702 = vmatprep.subr.bf16.mxu1 %v4022_v61 }
 0x19f   : > { %819 = vst [vmem:[#allocation2 + $0x30] sm:$0xf] %v818_v37  ;;  %822 = vst [vmem:[#allocation2 + $0x34] sm:$0x1] %v821_v38  ;;  %v922_v44 = vshll.u32 %v4726_v27, 16  ;;  %v1665_v16 = vshrl.u32 %v1648_v34, 16  ;;  %v905_v47 = vor.u32 %v904_v42, %v901_v32  ;;  %v3241_v23 = vcombine.low %v4623_v1, %v4693_v51 }
 0x1a0   : > { %v1668_v45 = vshll.u32 %v1648_v34, 16  ;;  %v897_v46 = vsel %vm4707_vm9, %v892_v41, %v896_v31  ;;  %v1674_v4 = vshll.u32 %v4738_v39, 16  ;;  %v1679_v48 = vshrl.u32 %v1650_v40, 16  ;;  %v4754_v9 = vld [vmem:[#allocation2 + $0x28] sm:$0xf]  ;;  %v4024_v38 = vld [vmem:[#allocation8 + $0x8] sm:$0xff]  }
 0x1a1   : > { %v3229_v53 = vcombine.low %v883_v11, %v897_v46  ;;  %v918_v17 = vrot.slane %v916_v49, 5  ;;  %v1667_v29 = vrot.slane %v1665_v16, 4  ;;  %v906_v56 = vrot.slane %v905_v47, 4  ;;  %3703 = vmatpush3.bf16.msra.mxu1 %v4022_v61  ;;  %v4027_v11 = vld [vmem:[#allocation8 + $0x120] sm:$0xff]   ;;  %v4770_v61 = vld [vmem:[#allocation2 + $0x2c] sm:$0x1] }
 0x1a2   : > { %v910_v57 = vrot.slane %v908_v2, 5  ;;  %v924_v58 = vrot.slane %v922_v44, 5  ;;  %v1670_v59 = vrot.slane %v1668_v45, 5  ;;  %v1681_v62 = vrot.slane %v1679_v48, 4  ;;  %3704 = vmatprep.subr.bf16.mxu1 %v4025_v55  ;;  %v4030_v49 = vld [vmem:[#allocation8 + $0x128] sm:$0xff]  }
 0x1a3   : > { %3618 = vmatprep.mubr.bf16.mxu0 %v3229_v53  ;;  %v919_v60 = vor.u32 %v918_v17, %v915_v43  ;;  %v1682_v63 = vshll.u32 %v1650_v40, 16  ;;  %v927_v5 = vshrl.u32 %v4746_v50, 16  ;;  %v1676_v7 = vrot.slane %v1674_v4, 5  ;;  %v1652_v44 = vld [vmem:[#allocation2 + $0x18] sm:$0xf] }
 0x1a4   : > { %v1671_v6 = vor.u32 %v1670_v59, %v1667_v29  ;;  %v1688_v8 = vshll.u32 %v4748_v18, 16  ;;  %v930_v10 = vshll.u32 %v4746_v50, 16  ;;  %v911_v14 = vsel %vm4707_vm9, %v906_v56, %v910_v57  ;;  %v4775_v45 = vld [vmem:[#allocation2 + $0x38] sm:$0xf] }
 0x1a5   : > { %v920_v15 = vrot.slane %v919_v60, 4  ;;  %v1684_v19 = vrot.slane %v1682_v63, 5  ;;  %v4023_v20 = vld [vmem:[#allocation2 + $0x38] ss:$8 sps:$4 sm:$0xff]   ;;  %v936_v22 = vshll.u32 %v4750_v3, 16  ;;  %v929_v31 = vrot.slane %v927_v5, 4  ;;  %3705 = vmatpush3.bf16.msra.mxu1 %v4025_v55 }
 0x1a6   : > { %v4021_v13 = vld [vmem:[#allocation2 + $0x28] ss:$8 sps:$4 sm:$0xff]   ;;  %v1672_v21 = vrot.slane %v1671_v6, 4  ;;  %v932_v32 = vrot.slane %v930_v10, 5  ;;  %v4766_v34 = vld [vmem:[#allocation2 + $0x34] sm:$0x1]  ;;  %3706 = vmatprep.subr.bf16.mxu1 %v4027_v11 }
 0x1a7   : > { %3694 = vmatprep.mubr.bf16.mxu1 %v4021_v13  ;;  %v925_v24 = vsel %vm4707_vm9, %v920_v15, %v924_v58  ;;  %v1685_v28 = vor.u32 %v1684_v19, %v1681_v62  ;;  %v4764_v33 = vld [vmem:[#allocation2 + $0x30] sm:$0xf]  ;;  %v1690_v37 = vrot.slane %v1688_v8, 5  ;;  %v941_v40 = vshrl.u32 %v4754_v9, 16  ;;  %v4783_v55 = vld [vmem:[#allocation2 + $0x3c] sm:$0x1] }
 0x1a8   : > { %v3230_v35 = vcombine.low %v911_v14, %v925_v24  ;;  %3695 = vmatmul.mubr.bf16.gmra.mrb[4].mxu1 %v4023_v20  ;;  %v1677_v36 = vsel %vm4707_vm9, %v1672_v21, %v1676_v7  ;;  %v933_v42 = vor.u32 %v932_v32, %v929_v31  ;;  %v944_v2 = vshll.u32 %v4754_v9, 16  ;;  %v4026_v58 = vld [vmem:[#allocation8 + $0x10] sm:$0xff]   ;;  %v4787_v6 = vld [vmem:[#allocation2 + $0x1c] sm:$0x1]  ;;  %v4029_v24 = vld [vmem:[#allocation8 + $0x18] sm:$0xff]  }
 0x1a9   : > { %v1686_v41 = vrot.slane %v1685_v28, 4  ;;  %v950_v43 = vshll.u32 %v4770_v61, 16  ;;  %v943_v16 = vrot.slane %v941_v40, 4  ;;  %v955_v46 = vshrl.u32 %v4764_v33, 16  ;;  %3707 = vmatpush3.bf16.msra.mxu1 %v4027_v11  ;;  %v4032_v10 = vld [vmem:[#allocation8 + $0x130] sm:$0xff]  }
 0x1aa   : > { %3619 = vmatmul.mubr.bf16.vlgmr.msra.gmra.mrb[8].mxu0 %v3230_v35  ;;  %v958_v47 = vshll.u32 %v4764_v33, 16  ;;  %v964_v4 = vshll.u32 %v4766_v34, 16  ;;  %v934_v53 = vrot.slane %v933_v42, 4  ;;  %v938_v17 = vrot.slane %v936_v22, 5  ;;  %3708 = vmatprep.subr.bf16.mxu1 %v4030_v49  ;;  %v1654_v13 = vld [vmem:[#allocation2 + $0x20] sm:$0xf] }
 0x1ab   : > { %3627 = vmatpush3.bf16.msra.mxu0 %v4620_v0  ;;  %v1691_v48 = vsel %vm4707_vm9, %v1686_v41, %v1690_v37  ;;  %v946_v29 = vrot.slane %v944_v2, 5  ;;  %v952_v57 = vrot.slane %v950_v43, 5  ;;  %v957_v59 = vrot.slane %v955_v46, 4  ;;  %v4792_v11 = vld [vmem:[#allocation2 + $0x24] sm:$0x1]  ;;  %v4034_v43 = vld [vmem:[#allocation8 + $0x138] sm:$0xff]  }
 0x1ac   : > { %v3285_v56 = vcombine.low %v1677_v36, %v1691_v48  ;;  %3628 = vmatprep.subr.bf16.mxu0 %v4024_v38  ;;  %v960_v60 = vrot.slane %v958_v47, 5  ;;  %v966_v63 = vrot.slane %v964_v4, 5  ;;  %v969_v5 = vshrl.u32 %v4775_v45, 16  ;;  %v1656_v36 = vld [vmem:[#allocation2 + $0x28] sm:$0xf]  ;;  %v4031_v4 = vld [vmem:[#allocation8 + $0x20] sm:$0xff]  }
 0x1ad   : > { %v947_v62 = vor.u32 %v946_v29, %v943_v16  ;;  %v972_v0 = vshll.u32 %v4775_v45, 16  ;;  %v978_v8 = vshll.u32 %v4783_v55, 16  ;;  %v1693_v14 = vshrl.u32 %v1652_v44, 16  ;;  %3709 = vmatpush3.bf16.msra.mxu1 %v4030_v49  ;;  %v1658_v46 = vld [vmem:[#allocation2 + $0x30] sm:$0xf] }
 0x1ae   : > { %3714 = vmatprep.mubr.bf16.mxu1 %v3285_v56  ;;  %v961_v7 = vor.u32 %v960_v60, %v957_v59  ;;  %v1696_v15 = vshll.u32 %v1652_v44, 16  ;;  %v939_v19 = vsel %vm4707_vm9, %v934_v53, %v938_v17  ;;  %v971_v21 = vrot.slane %v969_v5, 4  ;;  %3710 = vmatprep.subr.bf16.mxu1 %v4032_v10  ;;  %v4818_v51 = vld [vmem:[#allocation2 + $0x44] sm:$0x1] }
 0x1af   : > { %3629 = vmatpush3.bf16.msra.mxu0 %v4024_v38  ;;  %v948_v20 = vrot.slane %v947_v62, 4  ;;  %v974_v22 = vrot.slane %v972_v0, 5  ;;  %v1695_v31 = vrot.slane %v1693_v14, 4  ;;  %v1702_v35 = vshll.u32 %v4787_v6, 16  ;;  %v4036_v62 = vld [vmem:[#allocation8 + $0x140] sm:$0xff]  }
 0x1b0   : > { %3630 = vmatprep.subr.bf16.mxu0 %v4026_v58  ;;  %v962_v28 = vrot.slane %v961_v7, 4  ;;  %v1698_v32 = vrot.slane %v1696_v15, 5  ;;  %v980_v40 = vrot.slane %v978_v8, 5  ;;  %v1707_v41 = vshrl.u32 %v1654_v13, 16  ;;  %v1660_v0 = vld [vmem:[#allocation2 + $0x38] sm:$0xf] }
 0x1b1   : > { %v953_v37 = vsel %vm4707_vm9, %v948_v20, %v952_v57  ;;  %v975_v38 = vor.u32 %v974_v22, %v971_v21  ;;  %v1710_v16 = vshll.u32 %v1654_v13, 16  ;;  %v1716_v53 = vshll.u32 %v4792_v11, 16  ;;  %v4800_v57 = vld [vmem:[#allocation2 + $0x2c] sm:$0x1]  ;;  %3711 = vmatpush3.bf16.msra.mxu1 %v4032_v10  ;;  %v4805_v14 = vld [vmem:[#allocation2 + $0x34] sm:$0x1] }
 0x1b2   : > { %v3231_v42 = vcombine.low %v939_v19, %v953_v37  ;;  %v967_v2 = vsel %vm4707_vm9, %v962_v28, %v966_v63  ;;  %v1699_v44 = vor.u32 %v1698_v32, %v1695_v31  ;;  %v1709_v48 = vrot.slane %v1707_v41, 4  ;;  %3712 = vmatprep.subr.bf16.mxu1 %v4034_v43  ;;  %v1662_v19 = vld [vmem:[#allocation2 + $0x40] sm:$0xf]  ;;  %v4810_v28 = vld [vmem:[#allocation2 + $0x3c] sm:$0x1] }
 0x1b3   : > { %v976_v47 = vrot.slane %v975_v38, 4  ;;  %3631 = vmatpush3.bf16.msra.mxu0 %v4026_v58  ;;  %v1721_v17 = vshrl.u32 %v1656_v36, 16  ;;  %v1704_v29 = vrot.slane %v1702_v35, 5  ;;  %v1712_v56 = vrot.slane %v1710_v16, 5  ;;  %v4033_v31 = vld [vmem:[#allocation8 + $0x28] sm:$0xff]  }
 0x1b4   : > { %3622 = vmatprep.mubr.bf16.mxu0 %v3231_v42  ;;  %3632 = vmatprep.subr.bf16.mxu0 %v4029_v24  ;;  %v1700_v49 = vrot.slane %v1699_v44, 4  ;;  %v1724_v59 = vshll.u32 %v1656_v36, 16  ;;  %v1730_v58 = vshll.u32 %v4800_v57, 16  ;;  %v1735_v5 = vshrl.u32 %v1658_v46, 16  ;;  %v4035_v42 = vld [vmem:[#allocation8 + $0x30] sm:$0xff]   ;;  %v4038_v16 = vld [vmem:[#allocation8 + $0x148] sm:$0xff]  }
 0x1b5   : > { %v981_v60 = vsel %vm4707_vm9, %v976_v47, %v980_v40  ;;  %v1723_v63 = vrot.slane %v1721_v17, 4  ;;  %v1713_v8 = vor.u32 %v1712_v56, %v1709_v48  ;;  %v1718_v13 = vrot.slane %v1716_v53, 5  ;;  %3713 = vmatpush3.bf16.msra.mxu1 %v4034_v43  ;;  %v1931_v43 = vld [vmem:[#allocation2 + $0x10] sm:$0xe] }
 0x1b6   : > { %v3232_v7 = vcombine.low %v967_v2, %v981_v60  ;;  %v1726_v15 = vrot.slane %v1724_v59, 5  ;;  %v1705_v20 = vsel %vm4707_vm9, %v1700_v49, %v1704_v29  ;;  %v1737_v21 = vrot.slane %v1735_v5, 4  ;;  %3722 = vmatprep.subr.bf16.mxu1 %v4036_v62  ;;  %v1930_v60 = vld [vmem:[#allocation2 + $0x8] sm:$0xe] }
 0x1b7   : > { %3633 = vmatpush3.bf16.msra.mxu0 %v4029_v24  ;;  %v1738_v10 = vshll.u32 %v1658_v46, 16  ;;  %v1744_v22 = vshll.u32 %v4805_v14, 16  ;;  %v1714_v32 = vrot.slane %v1713_v8, 4  ;;  %v1749_v36 = vshrl.u32 %v1660_v0, 16 }
 0x1b8   : > { %3623 = vmatmul.mubr.bf16.gmra.mrb[12].mxu0 %v3232_v7  ;;  %3634 = vmatprep.subr.bf16.mxu0 %v4031_v4  ;;  %v1727_v35 = vor.u32 %v1726_v15, %v1723_v63  ;;  %v1752_v37 = vshll.u32 %v1660_v0, 16  ;;  %v1732_v24 = vrot.slane %v1730_v58, 5  ;;  %v1758_v40 = vshll.u32 %v4810_v28, 16  ;;  %v4041_v0 = vld [vmem:[#allocation8 + $0x150] sm:$0xff]   ;;  %v4037_v15 = vld [vmem:[#allocation8 + $0x38] sm:$0xff]  }
 0x1b9   : > { %3642 = vmatprep.mubr.bf16.mxu0 %v3241_v23  ;;  %v1740_v38 = vrot.slane %v1738_v10, 5  ;;  %v1763_v41 = vshrl.u32 %v1662_v19, 16  ;;  %v1719_v2 = vsel %vm4707_vm9, %v1714_v32, %v1718_v13  ;;  %v1751_v46 = vrot.slane %v1749_v36, 4 }
 0x1ba   : > { %v1728_v44 = vrot.slane %v1727_v35, 4  ;;  %v1754_v47 = vrot.slane %v1752_v37, 5  ;;  %v3286_v48 = vcombine.low %v1705_v20, %v1719_v2  ;;  %v1746_v1 = vrot.slane %v1744_v22, 5  ;;  %v1268_v35 = vld [vmem:[#allocation2 + $0x18] sm:$0xe] }
 0x1bb   : > { %3635 = vmatpush3.bf16.msra.mxu0 %v4031_v4  ;;  %v1741_v53 = vor.u32 %v1740_v38, %v1737_v21  ;;  %v1765_v23 = vrot.slane %v1763_v41, 4  ;;  %v1766_v49 = vshll.u32 %v1662_v19, 16  ;;  %v1772_v29 = vshll.u32 %v4818_v51, 16  ;;  %v4044_v38 = vld [vmem:[#allocation8 + $0x158] sm:$0xff]  }
 0x1bc   : > { %3636 = vmatprep.subr.bf16.mxu0 %v4033_v31  ;;  %v1755_v17 = vor.u32 %v1754_v47, %v1751_v46  ;;  %3715 = vmatmul.mubr.bf16.vlgmr.msra.gmra.mrb[0].mxu1 %v3286_v48  ;;  %v1733_v56 = vsel %vm4707_vm9, %v1728_v44, %v1732_v24  ;;  %v1760_v63 = vrot.slane %v1758_v40, 5  ;;  %v3298_v7 = vrot.slane %v1931_v43, 9  ;;  %v1266_v46 = vld [vmem:[#allocation2 + $0x8] sm:$0xe]  ;;  %v4043_v48 = vld [vmem:[#allocation8 + $0x88] sm:$0xff]  }
 0x1bd   : > { %v1742_v59 = vrot.slane %v1741_v53, 4  ;;  %3723 = vmatpush3.bf16.msra.mxu1 %v4036_v62  ;;  %v1768_v58 = vrot.slane %v1766_v49, 5  ;;  %v1960_v8 = vrot.slane %v4748_v18, 5  ;;  %v1774_v20 = vrot.slane %v1772_v29, 5  ;;  %v1267_v18 = vld [vmem:[#allocation2 + $0x10] sm:$0xe] }
 0x1be   : > { %v1756_v4 = vrot.slane %v1755_v17, 4  ;;  %3724 = vmatprep.subr.bf16.mxu1 %v4038_v16  ;;  %v3297_v62 = vrot.slane %v1930_v60, 9  ;;  %v1956_v21 = vrot.slane %v4738_v39, 5  ;;  %v4040_v39 = vld [vmem:[#allocation8 + $0x80] sm:$0xff]   ;;  %v3255_v40 = vrot.slane %v1267_v18, 9  ;;  %v4049_v49 = vld [vmem:[#allocation8 + $0x168] sm:$0xff]  }
 0x1bf   : > { %3637 = vmatpush3.bf16.msra.mxu0 %v4033_v31  ;;  %v1747_v5 = vsel %vm4707_vm9, %v1742_v59, %v1746_v1  ;;  %v1769_v19 = vor.u32 %v1768_v58, %v1765_v23  ;;  %v1961_v32 = vsel %vm4830_vm12, %v3298_v7, %v1960_v8  ;;  %v3256_v2 = vrot.slane %v1268_v35, 9  ;;  %v4047_v53 = vld [vmem:[#allocation8 + $0x160] sm:$0xff]   ;;  %v4046_v29 = vld [vmem:[#allocation8 + $0x90] sm:$0xff]   ;;  %v4053_v58 = vld [vmem:[#allocation8 + $0x178] sm:$0xff]  }
 0x1c0   : > { %3638 = vmatprep.subr.bf16.mxu0 %v4035_v42  ;;  %v3287_v13 = vcombine.low %v1733_v56, %v1747_v5  ;;  %v1761_v10 = vsel %vm4707_vm9, %v1756_v4, %v1760_v63  ;;  %v1957_v24 = vsel %vm4830_vm12, %v3297_v62, %v1956_v21  ;;  %v1306_v44 = vrot.slane %v4726_v27, 5  ;;  %v4051_v56 = vld [vmem:[#allocation8 + $0x170] sm:$0xff]   ;;  %v1934_v4 = vld [vmem:[#allocation2 + $0x28] sm:$0xe]  ;;  %v1935_v63 = vld [vmem:[#allocation2 + $0x30] sm:$0xe] }
 0x1c1   : > { %3725 = vmatpush3.bf16.msra.mxu1 %v4038_v16  ;;  %v1770_v22 = vrot.slane %v1769_v19, 4  ;;  %v3305_v41 = vcombine.low %v1957_v24, %v1961_v32  ;;  %v1265_v16 = vld [vmem:[#allocation2] sm:$0xe]  ;;  %v3242_v47 = vcombine.low %v4720_v12, %v4711_v54  ;;  %v3243_v27 = vcombine.low %v4746_v50, %v4754_v9  ;;  %v1932_v5 = vld [vmem:[#allocation2 + $0x18] sm:$0xe]  ;;  %v4050_v8 = vld [vmem:[#allocation8 + $0xa0] sm:$0xff]  }
 0x1c2   : > { %3718 = vmatprep.mubr.bf16.mxu1 %v3287_v13  ;;  %3726 = vmatprep.subr.bf16.mxu1 %v4041_v0  ;;  %v3253_v54 = vrot.slane %v1265_v16, 9  ;;  %v1294_v12 = vrot.slane %v4649_v25, 5  ;;  %v3254_v43 = vrot.slane %v1266_v46, 9  ;;  %v1298_v17 = vrot.slane %v4695_v52, 5  ;;  %v4048_v52 = vld [vmem:[#allocation8 + $0x98] sm:$0xff]   ;;  %v4055_v62 = vld [vmem:[#allocation8 + $0x180] sm:$0xff]  }
 0x1c3   : > { %3639 = vmatpush3.bf16.msra.mxu0 %v4035_v42  ;;  %v1775_v36 = vsel %vm4707_vm9, %v1770_v22, %v1774_v20  ;;  %v1302_v42 = vrot.slane %v4724_v26, 5  ;;  %v4850_v26 = vsel %vm4830_vm12, %v3256_v2, %v1306_v44  ;;  %v3244_v25 = vcombine.low %v4764_v33, %v4775_v45  ;;  %v1933_v59 = vld [vmem:[#allocation2 + $0x20] sm:$0xe]  ;;  %v4052_v21 = vld [vmem:[#allocation8 + $0xa8] sm:$0xff]  }
 0x1c4   : > { %3640 = vmatprep.subr.bf16.mxu0 %v4037_v15  ;;  %v3288_v37 = vcombine.low %v1761_v10, %v1775_v36  ;;  %v1295_v50 = vsel %vm4830_vm12, %v3253_v54, %v1294_v12  ;;  %v1299_v9 = vsel %vm4830_vm12, %v3254_v43, %v1298_v17  ;;  %v1968_v7 = vrot.slane %v4792_v11, 5  ;;  %v1936_v22 = vld [vmem:[#allocation2 + $0x38] sm:$0xe]  ;;  %v1269_v16 = vld [vmem:[#allocation2 + $0x20] sm:$0xe] }
 0x1c5   : > { %3727 = vmatpush3.bf16.msra.mxu1 %v4041_v0  ;;  %v4846_v1 = vsel %vm4830_vm12, %v3255_v40, %v1302_v42  ;;  %v3261_v60 = vcombine.low %v1295_v50, %v1299_v9  ;;  %v3300_v0 = vrot.slane %v1933_v59, 9  ;;  %v3301_v33 = vrot.slane %v1934_v4, 9  ;;  %v4057_v35 = vld [vmem:[#allocation8 + $0x188] sm:$0xff]   ;;  %v4058_v40 = vld [vmem:[#allocation8 + $0x190] sm:$0xff]   ;;  %v4056_v42 = vld [vmem:[#allocation8 + $0xb8] sm:$0xff]  }
 0x1c6   : > { %3719 = vmatmul.mubr.bf16.gmra.mrb[4].mxu1 %v3288_v37  ;;  %3728 = vmatprep.subr.bf16.mxu1 %v4044_v38  ;;  %v3262_v23 = vcombine.low %v4846_v1, %v4850_v26  ;;  %v1972_v45 = vrot.slane %v4800_v57, 5  ;;  %v3302_v13 = vrot.slane %v1935_v63, 9  ;;  %v3299_v19 = vrot.slane %v1932_v5, 9  ;;  %v1271_v54 = vld [vmem:[#allocation2 + $0x30] sm:$0xe]  ;;  %v4064_v1 = vld [vmem:[#allocation8 + $0x1b8] sm:$0xff]  }
 0x1c7   : > { %3641 = vmatpush3.bf16.msra.mxu0 %v4037_v15  ;;  %3738 = vmatprep.mubr.bf16.mxu1 %v3305_v41  ;;  %v1976_v15 = vrot.slane %v4805_v14, 5  ;;  %v1964_v20 = vrot.slane %v4787_v6, 5  ;;  %v1969_v11 = vsel %vm4830_vm12, %v3300_v0, %v1968_v7  ;;  %v1937_v14 = vld [vmem:[#allocation2 + $0x40] sm:$0xe]  ;;  %v3303_v36 = vrot.slane %v1936_v22, 9  ;;  %v4066_v0 = vld [vmem:[#allocation8 + $0x1c0] sm:$0xff]  }
 0x1c8   : > { %3650 = vmatprep.subr.bf16.mxu0 %v4040_v39  ;;  %v1973_v10 = vsel %vm4830_vm12, %v3301_v33, %v1972_v45  ;;  %v1980_v37 = vrot.slane %v4810_v28, 5  ;;  %v3304_v24 = vrot.slane %v1937_v14, 9  ;;  %v1270_v41 = vld [vmem:[#allocation2 + $0x28] sm:$0xe]  ;;  %v1272_v43 = vld [vmem:[#allocation2 + $0x38] sm:$0xe] }
 0x1c9   : > { %3729 = vmatpush3.bf16.msra.mxu1 %v4044_v38  ;;  %v1977_v57 = vsel %vm4830_vm12, %v3302_v13, %v1976_v15  ;;  %v1965_v6 = vsel %vm4830_vm12, %v3299_v19, %v1964_v20  ;;  %v1984_v38 = vrot.slane %v4818_v51, 5  ;;  %v3258_v28 = vrot.slane %v1270_v41, 9  ;;  %v2311_v59 = vld [vmem:[#allocation2 + $0x10] sm:$0xf]  ;;  %v4897_v33 = vld [vmem:[#allocation2 + $0x14] sm:$0x1] }
 0x1ca   : > { %3643 = vmatmul.mubr.bf16.vlgmr.msra.gmra.mrb[8].mxu0 %v3242_v47  ;;  %3730 = vmatprep.subr.bf16.mxu1 %v4047_v53  ;;  %v3306_v18 = vcombine.low %v1965_v6, %v1969_v11  ;;  %v3307_v32 = vcombine.low %v1973_v10, %v1977_v57  ;;  %v1981_v2 = vsel %vm4830_vm12, %v3303_v36, %v1980_v37  ;;  %v1314_v51 = vrot.slane %v4770_v61, 5  ;;  %v4060_v47 = vld [vmem:[#allocation8 + $0x198] sm:$0xff]   ;;  %v4061_v61 = vld [vmem:[#allocation8 + $0x1a0] sm:$0xff]   ;;  %v4899_v13 = vld [vmem:[#allocation2 + $0x1c] sm:$0x1] }
 0x1cb   : > { %3646 = vmatprep.mubr.bf16.mxu0 %v3243_v27  ;;  %3651 = vmatpush3.bf16.msra.mxu0 %v4040_v39  ;;  %v4054_v39 = vld [vmem:[#allocation8 + $0xb0] sm:$0xff]   ;;  %v1985_v44 = vsel %vm4830_vm12, %v3304_v24, %v1984_v38  ;;  %v4059_v27 = vld [vmem:[#allocation2 + $0x10] ss:$8 sps:$4 sm:$0xff]   ;;  %v1318_v50 = vrot.slane %v4766_v34, 5  ;;  %v1322_v9 = vrot.slane %v4783_v55, 5  ;;  %v2328_v4 = vshrl.u32 %v2311_v59, 16 }
 0x1cc   : > { %3652 = vmatprep.subr.bf16.mxu0 %v4043_v48  ;;  %v3308_v46 = vcombine.low %v1981_v2, %v1985_v44  ;;  %v1315_v12 = vsel %vm4830_vm12, %v3258_v28, %v1314_v51  ;;  %v4063_v34 = vld [vmem:[#allocation8 + $0x1b0] sm:$0xff]   ;;  %v2313_v55 = vld [vmem:[#allocation2 + $0x18] sm:$0xf]  ;;  %v2331_v63 = vshll.u32 %v2311_v59, 16  ;;  %v2337_v20 = vshll.u32 %v4897_v33, 16 }
 0x1cd   : > { %3731 = vmatpush3.bf16.msra.mxu1 %v4047_v53  ;;  %v1310_v53 = vrot.slane %v4750_v3, 5  ;;  %v3260_v3 = vrot.slane %v1272_v43, 9  ;;  %v2342_v26 = vshrl.u32 %v2313_v55, 16  ;;  %v4065_v15 = vld [vmem:[#allocation2 + $0x20] ss:$8 sps:$4 sm:$0xff]   ;;  %v4068_v19 = vld [vmem:[#allocation8 + $0x1c8] sm:$0xff]  }
 0x1ce   : > { %3732 = vmatprep.subr.bf16.mxu1 %v4049_v49  ;;  %v2333_v5 = vrot.slane %v2331_v63, 5  ;;  %v2351_v10 = vshll.u32 %v4899_v13, 16  ;;  %v4070_v57 = vld [vmem:[#allocation8 + $0x1d0] sm:$0xff]   ;;  %v2339_v22 = vrot.slane %v2337_v20, 5  ;;  %v2317_v37 = vld [vmem:[#allocation2 + $0x28] sm:$0xf] }
 0x1cf   : > { %3653 = vmatpush3.bf16.msra.mxu0 %v4043_v48  ;;  %v3257_v48 = vrot.slane %v1269_v16, 9  ;;  %v2344_v7 = vrot.slane %v2342_v26, 4  ;;  %v2319_v24 = vld [vmem:[#allocation2 + $0x30] sm:$0xf]  ;;  %v2321_v38 = vld [vmem:[#allocation2 + $0x38] sm:$0xf] }
 0x1d0   : > { %3654 = vmatprep.subr.bf16.mxu0 %v4046_v29  ;;  %v2315_v41 = vld [vmem:[#allocation2 + $0x20] sm:$0xf]  ;;  %v2373_v2 = vshll.u32 %v2317_v37, 16  ;;  %v2384_v44 = vshrl.u32 %v2319_v24, 16  ;;  %v2387_v16 = vshll.u32 %v2319_v24, 16  ;;  %v2398_v28 = vshrl.u32 %v2321_v38, 16 }
 0x1d1   : > { %3733 = vmatpush3.bf16.msra.mxu1 %v4049_v49  ;;  %v1311_v17 = vsel %vm4830_vm12, %v3257_v48, %v1310_v53  ;;  %v3259_v49 = vrot.slane %v1271_v54, 9  ;;  %v2401_v51 = vshll.u32 %v2321_v38, 16  ;;  %v4073_v48 = vld [vmem:[#allocation8 + $0x1e8] sm:$0xff]   ;;  %v2325_v53 = vld [vmem:[#allocation2 + $0x48] sm:$0xf]  ;;  %v4090_v31 = vld [vmem:[#allocation9 + $0x30] sm:$0xff]  }
 0x1d2   : > { %3647 = vmatmul.mubr.bf16.gmra.mrb[12].mxu0 %v3244_v25  ;;  %3734 = vmatprep.subr.bf16.mxu1 %v4051_v56  ;;  %v4062_v25 = vld [vmem:[#allocation8 + $0x1a8] sm:$0xff]   ;;  %v2375_v54 = vrot.slane %v2373_v2, 5  ;;  %v2389_v43 = vrot.slane %v2387_v16, 5  ;;  %v4911_v59 = vld [vmem:[#allocation2 + $0x34] sm:$0x1] }
 0x1d3   : > { %3655 = vmatpush3.bf16.msra.mxu0 %v4046_v29  ;;  %3666 = vmatprep.mubr.bf16.mxu0 %v3261_v60  ;;  %v3263_v29 = vcombine.low %v1311_v17, %v1315_v12  ;;  %v2386_v12 = vrot.slane %v2384_v44, 4  ;;  %v2403_v17 = vrot.slane %v2401_v51, 5  ;;  %v2393_v26 = vshll.u32 %v4911_v59, 16  ;;  %v4077_v44 = vld [vmem:[#allocation8 + $0x208] sm:$0xff]  }
 0x1d4   : > { %3656 = vmatprep.subr.bf16.mxu0 %v4048_v52 }
 0x1d5   : > { %3735 = vmatpush3.bf16.msra.mxu1 %v4051_v56  ;;  %v1323_v56 = vsel %vm4830_vm12, %v3260_v3, %v1322_v9  ;;  %v2426_v9 = vshrl.u32 %v2325_v53, 16 }
 0x1d6   : > { %3736 = vmatprep.subr.bf16.mxu1 %v4053_v58 }
 0x1d7   : > { %3657 = vmatpush3.bf16.msra.mxu0 %v4048_v52  ;;  %v1319_v52 = vsel %vm4830_vm12, %v3259_v49, %v1318_v50  ;;  %v2323_v49 = vld [vmem:[#allocation2 + $0x40] sm:$0xf] }
 0x1d8   : > { %3658 = vmatprep.subr.bf16.mxu0 %v4050_v8  ;;  %v3264_v60 = vcombine.low %v1319_v52, %v1323_v56  ;;  %v4907_v52 = vld [vmem:[#allocation2 + $0x24] sm:$0x1]  ;;  %v4909_v56 = vld [vmem:[#allocation2 + $0x2c] sm:$0x1]  ;;  %v2415_v63 = vshll.u32 %v2323_v49, 16 }
 0x1d9   : > { %3737 = vmatpush3.bf16.msra.mxu1 %v4053_v58  ;;  %v2330_v58 = vrot.slane %v2328_v4, 4  ;;  %v2412_v4 = vshrl.u32 %v2323_v49, 16 }
 0x1da   : > { %3746 = vmatprep.subr.bf16.mxu1 %v4055_v62 }
 0x1db   : > { %3659 = vmatpush3.bf16.msra.mxu0 %v4050_v8  ;;  %v2334_v45 = vor.u32 %v2333_v5, %v2330_v58  ;;  %v2414_v20 = vrot.slane %v2412_v4, 4  ;;  %v4083_v4 = vld [vmem:[#allocation8 + $0x238] sm:$0xff]  }
 0x1dc   : > { %3660 = vmatprep.subr.bf16.mxu0 %v4052_v21  ;;  %3739 = vmatmul.mubr.bf16.vlgmr.msra.gmra.mrb[0].mxu1 %v3306_v18  ;;  %v2353_v18 = vrot.slane %v2351_v10, 5 }
 0x1dd   : > { %3742 = vmatprep.mubr.bf16.mxu1 %v3307_v32  ;;  %3747 = vmatpush3.bf16.msra.mxu1 %v4055_v62  ;;  %v2335_v11 = vrot.slane %v2334_v45, 4  ;;  %v4069_v32 = vld [vmem:[#allocation2 + $0x40] ss:$8 sps:$4 sm:$0xff]  }
 0x1de   : > { %3748 = vmatprep.subr.bf16.mxu1 %v4057_v35 }
 0x1df   : > { %3661 = vmatpush3.bf16.msra.mxu0 %v4052_v21  ;;  %v4067_v21 = vld [vmem:[#allocation2 + $0x30] ss:$8 sps:$4 sm:$0xff]   ;;  %v2340_v6 = vsel %vm4707_vm9, %v2335_v11, %v2339_v22  ;;  %v2395_v11 = vrot.slane %v2393_v26, 5  ;;  %v2631_v26 = vrot.slane %v4909_v56, 5 }
 0x1e0   : > { %3662 = vmatprep.subr.bf16.mxu0 %v4054_v39 }
 0x1e1   : > { %3749 = vmatpush3.bf16.msra.mxu1 %v4057_v35 }
 0x1e2   : > { %3750 = vmatprep.subr.bf16.mxu1 %v4058_v40 }
 0x1e3   : > { %3663 = vmatpush3.bf16.msra.mxu0 %v4054_v39  ;;  %v4071_v39 = vld [vmem:[#allocation8 + $0x1d8] sm:$0xff]  }
 0x1e4   : > { %3664 = vmatprep.subr.bf16.mxu0 %v4056_v42  ;;  %3743 = vmatmul.mubr.bf16.gmra.mrb[4].mxu1 %v3308_v46  ;;  %v2356_v46 = vshrl.u32 %v2315_v41, 16 }
 0x1e5   : > { %3751 = vmatpush3.bf16.msra.mxu1 %v4058_v40  ;;  %3762 = vmatprep.mubr.bf16.mxu1 %v4059_v27  ;;  %v4072_v40 = vld [vmem:[#allocation8 + $0x1e0] sm:$0xff]  }
 0x1e6   : > { %3752 = vmatprep.subr.bf16.mxu1 %v4060_v47  ;;  %v2358_v50 = vrot.slane %v2356_v46, 4 }
 0x1e7   : > { %3665 = vmatpush3.bf16.msra.mxu0 %v4056_v42  ;;  %v2370_v42 = vshrl.u32 %v2317_v37, 16 }
 0x1e9   : > { %3753 = vmatpush3.bf16.msra.mxu1 %v4060_v47  ;;  %v2359_v47 = vshll.u32 %v2315_v41, 16  ;;  %v2372_v27 = vrot.slane %v2370_v42, 4  ;;  %v2593_v42 = vld [vmem:[#allocation2 + $0x10] sm:$0xe] }
 0x1ea   : > { %3667 = vmatmul.mubr.bf16.vlgmr.msra.gmra.mrb[8].mxu0 %v3262_v23  ;;  %3754 = vmatprep.subr.bf16.mxu1 %v4061_v61  ;;  %v2345_v23 = vshll.u32 %v2313_v55, 16  ;;  %v4914_v55 = vld [vmem:[#allocation2 + $0x3c] sm:$0x1] }
 0x1eb   : > { %3670 = vmatprep.mubr.bf16.mxu0 %v3263_v29  ;;  %v4074_v29 = vld [vmem:[#allocation8 + $0x1f0] sm:$0xff]   ;;  %v2361_v3 = vrot.slane %v2359_v47, 5  ;;  %v2407_v58 = vshll.u32 %v4914_v55, 16 }
 0x1ec   : > { %v2347_v8 = vrot.slane %v2345_v23, 5 }
 0x1ed   : > { %3755 = vmatpush3.bf16.msra.mxu1 %v4061_v61  ;;  %v2400_v61 = vrot.slane %v2398_v28, 4  ;;  %v2362_v5 = vor.u32 %v2361_v3, %v2358_v50  ;;  %v4079_v50 = vld [vmem:[#allocation8 + $0x218] sm:$0xff]  }
 0x1ee   : > { %3756 = vmatprep.subr.bf16.mxu1 %v4062_v25  ;;  %v2348_v62 = vor.u32 %v2347_v8, %v2344_v7  ;;  %v2365_v7 = vshll.u32 %v4907_v52, 16  ;;  %v2428_v8 = vrot.slane %v2426_v9, 4  ;;  %v4082_v9 = vld [vmem:[#allocation8 + $0x230] sm:$0xff]  }
 0x1ef   : > { %v2404_v23 = vor.u32 %v2403_v17, %v2400_v61  ;;  %v2363_v22 = vrot.slane %v2362_v5, 4 }
 0x1f0   : > { %v2349_v14 = vrot.slane %v2348_v62, 4  ;;  %v2417_v62 = vrot.slane %v2415_v63, 5  ;;  %v2595_v63 = vld [vmem:[#allocation2 + $0x20] sm:$0xe] }
 0x1f1   : > { %3757 = vmatpush3.bf16.msra.mxu1 %v4062_v25  ;;  %v2429_v25 = vshll.u32 %v2325_v53, 16  ;;  %v2405_v10 = vrot.slane %v2404_v23, 4  ;;  %v3341_v53 = vrot.slane %v2593_v42, 9 }
 0x1f2   : > { %3671 = vmatmul.mubr.bf16.gmra.mrb[12].mxu0 %v3264_v60  ;;  %3758 = vmatprep.subr.bf16.mxu1 %v4063_v34  ;;  %v2354_v35 = vsel %vm4707_vm9, %v2349_v14, %v2353_v18  ;;  %v2379_v60 = vshll.u32 %v4909_v56, 16  ;;  %v4919_v14 = vld [vmem:[#allocation2 + $0x4c] sm:$0x1]  ;;  %v4921_v18 = vld [vmem:[#allocation2 + $0x44] sm:$0x1]  ;;  %v2418_v37 = vor.u32 %v2417_v62, %v2414_v20 }
 0x1f3   : > { %v3329_v36 = vcombine.low %v2340_v6, %v2354_v35  ;;  %v2431_v45 = vrot.slane %v2429_v25, 5  ;;  %v4076_v6 = vld [vmem:[#allocation8 + $0x200] sm:$0xff]   ;;  %v2435_v35 = vshll.u32 %v4919_v14, 16  ;;  %v2421_v24 = vshll.u32 %v4921_v18, 16  ;;  %v2596_v25 = vld [vmem:[#allocation2 + $0x28] sm:$0xe] }
 0x1f4   : > { %v2419_v51 = vrot.slane %v2418_v37, 4  ;;  %v2600_v20 = vld [vmem:[#allocation2 + $0x48] sm:$0xe]  ;;  %v2647_v62 = vrot.slane %v4919_v14, 5  ;;  %v4086_v14 = vld [vmem:[#allocation9 + $0x10] sm:$0xff]  }
 0x1f5   : > { %3759 = vmatpush3.bf16.msra.mxu1 %v4063_v34  ;;  %v2376_v34 = vor.u32 %v2375_v54, %v2372_v27  ;;  %v2423_v46 = vrot.slane %v2421_v24, 5  ;;  %v2437_v47 = vrot.slane %v2435_v35, 5  ;;  %v2619_v27 = vrot.slane %v4897_v33, 5  ;;  %v4078_v54 = vld [vmem:[#allocation8 + $0x210] sm:$0xff]   ;;  %v4085_v35 = vld [vmem:[#allocation9 + $0x8] sm:$0xff]   ;;  %v4091_v37 = vld [vmem:[#allocation9 + $0x38] sm:$0xff]  }
 0x1f6   : > { %3760 = vmatprep.subr.bf16.mxu1 %v4064_v1 }
 0x1f7   : > { %v2424_v61 = vsel %vm4707_vm9, %v2419_v51, %v2423_v46  ;;  %v2620_v49 = vsel %vm4830_vm12, %v3341_v53, %v2619_v27  ;;  %v3361_v51 = vld [vmem:[%s5034_s5] ss:$0 sm:$0xff] }
 0x1f9   : > { %3761 = vmatpush3.bf16.msra.mxu1 %v4064_v1  ;;  %v2390_v1 = vor.u32 %v2389_v43, %v2386_v12  ;;  %v2623_v43 = vrot.slane %v4899_v13, 5  ;;  %v4080_v13 = vld [vmem:[#allocation8 + $0x220] sm:$0xff]  }
 0x1fa   : > { %3770 = vmatprep.subr.bf16.mxu1 %v4066_v0 }
 0x1fc   : > { %3763 = vmatmul.mubr.bf16.vlgmr.msra.gmra.mrb[0].mxu1 %v4065_v15  ;;  %v2377_v15 = vrot.slane %v2376_v34, 4  ;;  %v2597_v34 = vld [vmem:[#allocation2 + $0x30] sm:$0xe] }
 0x1fd   : > { %3766 = vmatprep.mubr.bf16.mxu1 %v4067_v21  ;;  %3771 = vmatpush3.bf16.msra.mxu1 %v4066_v0  ;;  %v4075_v0 = vld [vmem:[#allocation8 + $0x1f8] sm:$0xff]   ;;  %v2391_v21 = vrot.slane %v2390_v1, 4  ;;  %v3344_v1 = vrot.slane %v2596_v25, 9  ;;  %v3345_v23 = vrot.slane %v2597_v34, 9 }
 0x1fe   : > { %3772 = vmatprep.subr.bf16.mxu1 %v4068_v19 }
 0x1ff   : > { %v2396_v38 = vsel %vm4707_vm9, %v2391_v21, %v2395_v11  ;;  %v2643_v11 = vrot.slane %v4921_v18, 5  ;;  %v4087_v18 = vld [vmem:[#allocation9 + $0x18] sm:$0xff]  }
 0x201   : > { %3773 = vmatpush3.bf16.msra.mxu1 %v4068_v19  ;;  %v2381_v19 = vrot.slane %v2379_v60, 5  ;;  %v2598_v60 = vld [vmem:[#allocation2 + $0x38] sm:$0xe] }
 0x202   : > { %3774 = vmatprep.subr.bf16.mxu1 %v4070_v57  ;;  %v3346_v5 = vrot.slane %v2598_v60, 9 }
 0x204   : > { %3767 = vmatmul.mubr.bf16.gmra.mrb[4].mxu1 %v4069_v32  ;;  %v2432_v32 = vor.u32 %v2431_v45, %v2428_v8  ;;  %v2627_v8 = vrot.slane %v4907_v52, 5  ;;  %v2632_v45 = vsel %vm4830_vm12, %v3344_v1, %v2631_v26 }
 0x205   : > { %3775 = vmatpush3.bf16.msra.mxu1 %v4070_v57  ;;  %3786 = vmatprep.mubr.bf16.mxu1 %v3329_v36  ;;  %v2409_v57 = vrot.slane %v2407_v58, 5  ;;  %v2382_v36 = vsel %vm4707_vm9, %v2377_v15, %v2381_v19  ;;  %v2635_v58 = vrot.slane %v4911_v59, 5  ;;  %v2599_v19 = vld [vmem:[#allocation2 + $0x40] sm:$0xe] }
 0x206   : > { %3776 = vmatprep.subr.bf16.mxu1 %v4071_v39  ;;  %v2433_v16 = vrot.slane %v2432_v32, 4  ;;  %v3347_v21 = vrot.slane %v2599_v19, 9  ;;  %v4084_v32 = vld [vmem:[#allocation9] sm:$0xff]  }
 0x207   : > { %v2636_v15 = vsel %vm4830_vm12, %v3345_v23, %v2635_v58  ;;  %3818 = vmatprep.subr.bf16.mxu0 %v4084_v32 }
 0x208   : > { %v2438_v17 = vsel %vm4707_vm9, %v2433_v16, %v2437_v47  ;;  %3819 = vmatpush3.bf16.msra.mxu0 %v4084_v32  ;;  %v3405_v32 = vld [vmem:[%s4558_s9] sm:$0xff]  }
 0x209   : > { %3777 = vmatpush3.bf16.msra.mxu1 %v4071_v39  ;;  %v2367_v39 = vrot.slane %v2365_v7, 5  ;;  %v3343_v7 = vrot.slane %v2595_v63, 9  ;;  %3820 = vmatprep.subr.bf16.mxu0 %v4085_v35 }
 0x20a   : > { %3778 = vmatprep.subr.bf16.mxu1 %v4072_v40 }
 0x20b   : > { %v2368_v41 = vsel %vm4707_vm9, %v2363_v22, %v2367_v39  ;;  %v2628_v59 = vsel %vm4830_vm12, %v3343_v7, %v2627_v8  ;;  %v4088_v39 = vld [vmem:[#allocation9 + $0x20] sm:$0xff]  }
 0x20c   : > { %v3330_v2 = vcombine.low %v2368_v41, %v2382_v36  ;;  %3821 = vmatpush3.bf16.msra.mxu0 %v4085_v35  ;;  %v4089_v36 = vld [vmem:[#allocation9 + $0x28] sm:$0xff]  }
 0x20d   : > { %3779 = vmatpush3.bf16.msra.mxu1 %v4072_v40  ;;  %v2410_v40 = vsel %vm4707_vm9, %v2405_v10, %v2409_v57  ;;  %v3348_v10 = vrot.slane %v2600_v20, 9  ;;  %v2644_v57 = vsel %vm4830_vm12, %v3347_v21, %v2643_v11  ;;  %3822 = vmatprep.subr.bf16.mxu0 %v4086_v14 }
 0x20e   : > { %3780 = vmatprep.subr.bf16.mxu1 %v4073_v48  ;;  %v3331_v28 = vcombine.low %v2396_v38, %v2410_v40 }
 0x20f   : > { %v2648_v22 = vsel %vm4830_vm12, %v3348_v10, %v2647_v62 }
 0x210   : > { %3823 = vmatpush3.bf16.msra.mxu0 %v4086_v14  ;;  %v3372_v14 = vld [vmem:[%s5074_s19] ss:$0 sm:$0xff] }
 0x211   : > { %3781 = vmatpush3.bf16.msra.mxu1 %v4073_v48  ;;  %v2594_v48 = vld [vmem:[#allocation2 + $0x18] sm:$0xe]  ;;  %3824 = vmatprep.subr.bf16.mxu0 %v4087_v18 }
 0x212   : > { %3782 = vmatprep.subr.bf16.mxu1 %v4074_v29  ;;  %v3342_v12 = vrot.slane %v2594_v48, 9  ;;  %v3362_v48 = vld [vmem:[%s5035_s6] ss:$0 sm:$0xff] }
 0x214   : > { %v2624_v33 = vsel %vm4830_vm12, %v3342_v12, %v2623_v43  ;;  %3825 = vmatpush3.bf16.msra.mxu0 %v4087_v18 }
 0x215   : > { %3783 = vmatpush3.bf16.msra.mxu1 %v4074_v29  ;;  %v3332_v29 = vcombine.low %v2424_v61, %v2438_v17  ;;  %v3349_v3 = vcombine.low %v2620_v49, %v2624_v33  ;;  %3826 = vmatprep.subr.bf16.mxu0 %v4088_v39 }
 0x216   : > { %3784 = vmatprep.subr.bf16.mxu1 %v4075_v0 }
 0x218   : > { %3827 = vmatpush3.bf16.msra.mxu0 %v4088_v39 }
 0x219   : > { %3785 = vmatpush3.bf16.msra.mxu1 %v4075_v0  ;;  %v2639_v0 = vrot.slane %v4914_v55, 5  ;;  %v3350_v55 = vcombine.low %v2628_v59, %v2632_v45  ;;  %3828 = vmatprep.subr.bf16.mxu0 %v4089_v36 }
 0x21a   : > { %3794 = vmatprep.subr.bf16.mxu1 %v4076_v6 }
 0x21b   : > { %v2640_v56 = vsel %vm4830_vm12, %v3346_v5, %v2639_v0 }
 0x21c   : > { %3787 = vmatmul.mubr.bf16.vlgmr.msra.gmra.mrb[0].mxu1 %v3330_v2  ;;  %v3351_v52 = vcombine.low %v2636_v15, %v2640_v56  ;;  %3829 = vmatpush3.bf16.msra.mxu0 %v4089_v36 }
 0x21d   : > { %3790 = vmatprep.mubr.bf16.mxu1 %v3331_v28  ;;  %3795 = vmatpush3.bf16.msra.mxu1 %v4076_v6  ;;  %v3352_v6 = vcombine.low %v2644_v57, %v2648_v22  ;;  %v3371_v22 = vld [vmem:[%s5037_s8] ss:$0 sm:$0xff] }
 0x21e   : > { %3796 = vmatprep.subr.bf16.mxu1 %v4077_v44  ;;  %3830 = vmatprep.subr.bf16.mxu0 %v4090_v31 }
 0x220   : > { %3831 = vmatpush3.bf16.msra.mxu0 %v4090_v31 }
 0x221   : > { %3797 = vmatpush3.bf16.msra.mxu1 %v4077_v44  ;;  %3832 = vmatprep.subr.bf16.mxu0 %v4091_v37 }
 0x222   : > { %3798 = vmatprep.subr.bf16.mxu1 %v4078_v54 }
 0x224   : > { %3791 = vmatmul.mubr.bf16.gmra.mrb[4].mxu1 %v3332_v29  ;;  %3833 = vmatpush3.bf16.msra.mxu0 %v4091_v37  ;;  %v3406_v37 = vunpack.c.l.bf16 %v3405_v32 }
 0x225   : > { %3799 = vmatpush3.bf16.msra.mxu1 %v4078_v54  ;;  %3810 = vmatprep.mubr.bf16.mxu1 %v3349_v3 }
 0x226   : > { %3800 = vmatprep.subr.bf16.mxu1 %v4079_v50 }
 0x229   : > { %3801 = vmatpush3.bf16.msra.mxu1 %v4079_v50 }
 0x22a   : > { %3802 = vmatprep.subr.bf16.mxu1 %v4080_v13 }
 0x22d   : > { %3803 = vmatpush3.bf16.msra.mxu1 %v4080_v13 }
 0x22e   : > { %3804 = vmatprep.subr.bf16.mxu1 %v4081_v30 }
 0x231   : > { %3805 = vmatpush3.bf16.msra.mxu1 %v4081_v30 }
 0x232   : > { %3806 = vmatprep.subr.bf16.mxu1 %v4082_v9 }
 0x235   : > { %3807 = vmatpush3.bf16.msra.mxu1 %v4082_v9 }
 0x236   : > { %3808 = vmatprep.subr.bf16.mxu1 %v4083_v4 }
 0x239   : > { %3809 = vmatpush3.bf16.msra.mxu1 %v4083_v4 }
 0x23c   : > { %3811 = vmatmul.mubr.bf16.vlgmr.msra.gmra.mrb[0].mxu1 %v3350_v55 }
 0x23d   : > { %3814 = vmatprep.mubr.bf16.mxu1 %v3351_v52 }
 0x244   : > { %3815 = vmatmul.mubr.bf16.gmra.mrb[4].mxu1 %v3352_v6  ;;  %v3440_v6 = vld [vmem:[%s4558_s9 + $0x8] sm:$0xff]  }
 0x245   : > { %v3410_v39 = vunpack.c.l.bf16 %v3440_v6 }
 0x2bd   : > { %v3668_v24 = vpop.f32.mrb[8].mxu0 }
 0x2be   : > { %v1439_v38 = vpop.f32.mrb[9].mxu0 }
 0x2bf   : > { %v3669_v40 = vpop.f32.mrb[10].mxu0 }
 0x2c0   : > { %v1442_v41 = vpop.f32.mrb[11].mxu0 }
 0x2c5   : > { %v3672_v42 = vpop.f32.mrb[12].mxu0 }
 0x2c6   : > { %v1455_v2 = vpop.f32.mrb[13].mxu0 }
 0x2c7   : > { %v3673_v44 = vpop.f32.mrb[14].mxu0 }
 0x2c8   : > { %v1458_v16 = vpop.f32.mrb[15].mxu0 }
 0x30f   : > { %v3812_v28 = vpop.f32.mrb[0].mxu1 }
 0x310   : > { %v3842_v46 = vadd.f32 %v3812_v28, %v3668_v24  ;;  %v2764_v47 = vpop.f32.mrb[1].mxu1 }
 0x311   : > { %v3843_v53 = vadd.f32 %v2764_v47, %v1439_v38  ;;  %v3813_v27 = vpop.f32.mrb[2].mxu1 }
 0x312   : > { %v2812_v54 = vmul.f32 %v3842_v46, %v3361_v51  ;;  %v3844_v12 = vadd.f32 %v3813_v27, %v3669_v40  ;;  %v2767_v43 = vpop.f32.mrb[3].mxu1  ;;  %v3441_v27 = vld [vmem:[%s4558_s9 + $0x10] sm:$0xff]  }
 0x313   : > { %v2810_v61 = vmul.f32 %v3843_v53, %v3361_v51  ;;  %v3845_v17 = vadd.f32 %v2767_v43, %v1442_v41  ;;  %v3411_v41 = vunpack.c.h.bf16 %v3440_v6 }
 0x314   : > { %v2827_v49 = vadd.f32 %v3362_v48, %v2812_v54  ;;  %v2813_v29 = vmul.f32 %v3844_v12, %v3361_v51 }
 0x315   : > { %v2825_v33 = vadd.f32 %v3362_v48, %v2810_v61  ;;  %v2811_v50 = vmul.f32 %v3845_v17, %v3361_v51 }
 0x316   : > { %v2828_v3 = vadd.f32 %v3362_v48, %v2813_v29  ;;  %v2835_v9 = vmax.f32 %v2827_v49, 0.0 }
 0x317   : > { %v2826_v13 = vadd.f32 %v3362_v48, %v2811_v50  ;;  %v3816_v30 = vpop.f32.mrb[4].mxu1  ;;  %v2833_v4 = vmax.f32 %v2825_v33, 0.0 }
 0x318   : > { %v2836_v25 = vmax.f32 %v2828_v3, 0.0  ;;  %v3846_v34 = vadd.f32 %v3816_v30, %v3672_v42  ;;  %v2780_v60 = vpop.f32.mrb[5].mxu1 }
 0x319   : > { %v2834_v63 = vmax.f32 %v2826_v13, 0.0  ;;  %v3847_v1 = vadd.f32 %v2780_v60, %v1455_v2  ;;  %v3817_v26 = vpop.f32.mrb[6].mxu1  ;;  %v3414_v13 = vunpack.c.l.bf16 %v3441_v27 }
 0x31a   : > { %v2842_v23 = vpack.c.bf16 %v2836_v25, %v2835_v9  ;;  %v2816_v58 = vmul.f32 %v3846_v34, %v3361_v51  ;;  %v3848_v5 = vadd.f32 %v3817_v26, %v3673_v44  ;;  %v2783_v0 = vpop.f32.mrb[7].mxu1 }
 0x31b   : > { %v2814_v7 = vmul.f32 %v3847_v1, %v3361_v51  ;;  %v3849_v8 = vadd.f32 %v2783_v0, %v1458_v16  ;;  %v2841_v45 = vpack.c.bf16 %v2834_v63, %v2833_v4  ;;  %v3407_v16 = vunpack.c.h.bf16 %v3405_v32 }
 0x31c   : > { %v2831_v15 = vadd.f32 %v3362_v48, %v2816_v58  ;;  %v2817_v56 = vmul.f32 %v3848_v5, %v3361_v51 }
 0x31d   : > { %v2829_v19 = vadd.f32 %v3362_v48, %v2814_v7  ;;  %v2815_v20 = vmul.f32 %v3849_v8, %v3361_v51  ;;  %3834 = vmatprep.mubr.bf16.mxu0 %v2841_v45 }
 0x31e   : > { %v2832_v59 = vadd.f32 %v3362_v48, %v2817_v56  ;;  %3835 = vmatmul.mubr.bf16.vlgmr.msra.gmra.mrb[16].mxu0 %v2842_v23  ;;  %v2839_v62 = vmax.f32 %v2831_v15, 0.0  ;;  %v3415_v23 = vunpack.c.h.bf16 %v3441_v27 }
 0x31f   : > { %v2830_v55 = vadd.f32 %v3362_v48, %v2815_v20  ;;  %v2837_v21 = vmax.f32 %v2829_v19, 0.0  ;;  %v3442_v48 = vld [vmem:[%s4558_s9 + $0x18] sm:$0xff]   ;;  %s421_s9 = scalar_lea.vmem [#allocation11], %s3202_s25 }
 0x320   : > { %v2840_v52 = vmax.f32 %v2832_v59, 0.0  ;;  %v3418_v49 = vunpack.c.l.bf16 %v3442_v48  ;;  %v3419_v60 = vunpack.c.h.bf16 %v3442_v48  ;;  %s3090_s21 = sshll.u32 %s421_s9, 4  ;;  %s4980_s21 = int_to_ptr.vmem [resolvable:$true] %s3090_s21 }
 0x321   : > { %v2838_v11 = vmax.f32 %v2830_v55, 0.0  ;;  %s4206_s17 = scalar_lea.vmem %s4980_s21, 512  ;;  %p4213_p12 = scmp.lt.s32.totalorder %s4980_s21, %s4211_s18 }
 0x322   : > { %v2844_v10 = vpack.c.bf16 %v2840_v52, %v2839_v62  ;;  %p4207_p10 = scmp.ne.s32.totalorder %s4980_s21, %s4206_s17  ;;  %p4214_p1 = scmp.lt.s32.totalorder %s4212_s28, %s4206_s17 }
 0x323   : > { %v2843_v57 = vpack.c.bf16 %v2838_v11, %v2837_v21 }
 0x324   : > { %p4208_p3 = pnand %p4207_p10, %p4501_p5  ;;  %p4215_p2 = por %p4214_p1, %p4213_p12 }
 0x325   : > { %3838 = vmatprep.mubr.bf16.mxu0 %v2843_v57 }
 0x326   : > { %3839 = vmatmul.mubr.bf16.gmra.mrb[20].mxu0 %v2844_v10  ;;  %p4209_p7 = pneg %p4208_p3 }
 0x328   : > { %p4216_p4 = pnand %p4215_p2, %p4209_p7 }
 0x3f1   : > { %v3836_v35 = vpop.f32.mrb[16].mxu0 }
 0x3f2   : > { %v2983_v18 = vmul.f32 %v3836_v35, %v3371_v22  ;;  %v2943_v36 = vpop.f32.mrb[17].mxu0 }
 0x3f3   : > { %v2981_v31 = vmul.f32 %v3371_v22, %v2943_v36  ;;  %v3837_v24 = vpop.f32.mrb[18].mxu0 }
 0x3f4   : > { %v2998_v38 = vadd.f32 %v3372_v14, %v2983_v18  ;;  %v2984_v40 = vmul.f32 %v3837_v24, %v3371_v22  ;;  %v2946_v42 = vpop.f32.mrb[19].mxu0 }
 0x3f5   : > { %v2996_v2 = vadd.f32 %v3372_v14, %v2981_v31  ;;  %v2982_v44 = vmul.f32 %v3371_v22, %v2946_v42 }
 0x3f6   : > { %v3022_v28 = vadd.f32 %v3410_v39, %v2998_v38  ;;  %v2999_v51 = vadd.f32 %v3372_v14, %v2984_v40 }
 0x3f7   : > { %v3020_v46 = vadd.f32 %v3406_v37, %v2996_v2  ;;  %v2997_v47 = vadd.f32 %v3372_v14, %v2982_v44 }
 0x3f8   : > { %v3023_v53 = vadd.f32 %v3411_v41, %v2999_v51  ;;  %v3030_v43 = vmax.f32 %v3022_v28, 0.0 }
 0x3f9   : > { %v3021_v54 = vadd.f32 %v3407_v16, %v2997_v47  ;;  %v3840_v12 = vpop.f32.mrb[20].mxu0  ;;  %v3028_v33 = vmax.f32 %v3020_v46, 0.0 }
 0x3fa   : > { %v3031_v61 = vmax.f32 %v3023_v53, 0.0  ;;  %v2987_v17 = vmul.f32 %v3840_v12, %v3371_v22  ;;  %v2959_v29 = vpop.f32.mrb[21].mxu0 }
 0x3fb   : > { %v3029_v50 = vmax.f32 %v3021_v54, 0.0  ;;  %v2985_v3 = vmul.f32 %v3371_v22, %v2959_v29  ;;  %v3841_v30 = vpop.f32.mrb[22].mxu0 }
 0x3fc   : > { %v3428_v9 = vpack.c.bf16 %v3031_v61, %v3030_v43  ;;  %v3002_v25 = vadd.f32 %v3372_v14, %v2987_v17  ;;  %v2988_v34 = vmul.f32 %v3841_v30, %v3371_v22  ;;  %v2962_v4 = vpop.f32.mrb[23].mxu0 }
 0x3fd   : > { %v3423_v63 = vpack.c.bf16 %v3029_v50, %v3028_v33  ;;  %v3000_v1 = vadd.f32 %v3372_v14, %v2985_v3  ;;  %v2986_v26 = vmul.f32 %v3371_v22, %v2962_v4 }
 0x3fe   : > { %3443 = vst [vmem:[%s421_s9 + $0x8] sm:$0xff] %v3428_v9   ;;  %v3026_v58 = vadd.f32 %v3418_v49, %v3002_v25  ;;  %v3003_v5 = vadd.f32 %v3372_v14, %v2988_v34 }
 0x3ff   : > { %3424 = vst [vmem:[%s421_s9] sm:$0xff] %v3423_v63   ;;  %v3024_v0 = vadd.f32 %v3414_v13, %v3000_v1  ;;  %v3001_v7 = vadd.f32 %v3372_v14, %v2986_v26 }
 0x400   : > { %v3027_v8 = vadd.f32 %v3419_v60, %v3003_v5  ;;  %v3034_v15 = vmax.f32 %v3026_v58, 0.0 }
 0x401   : > { %v3025_v45 = vadd.f32 %v3415_v23, %v3001_v7  ;;  %v3032_v19 = vmax.f32 %v3024_v0, 0.0 }
 0x402   : > { %v3035_v56 = vmax.f32 %v3027_v8, 0.0 }
 0x403   : > { %v3033_v20 = vmax.f32 %v3025_v45, 0.0 }
 0x404   : > { %v3438_v59 = vpack.c.bf16 %v3035_v56, %v3034_v15 }
 0x405   : > { %v3433_v55 = vpack.c.bf16 %v3033_v20, %v3032_v19 }
 0x406   : > { %3445 = vst [vmem:[%s421_s9 + $0x18] sm:$0xff] %v3438_v59  }
 0x407   : > { %3444 = vst [vmem:[%s421_s9 + $0x10] sm:$0xff] %v3433_v55  }
 0x408   : > { %4219 = shalt.err (!%p4216_p4)
}
 0x409   : > { %s4220_s27 = scalar_lea.hbm %s4985_s26, 512  ;;  %s4224_s9 = scalar_lea.hbm %s5075_s29, 1024 }
 0x40a   : > { %p4221_p9 = scmp.ne.s32.totalorder %s4985_s26, %s4220_s27  ;;  %p4225_p8 = scmp.lt.u32.totalorder %s4985_s26, %s5075_s29 }
 0x40b   : > { %p4226_p13 = scmp.lt.u32.totalorder %s4224_s9, %s4220_s27  ;;  %p4228_p10 = scmp.lt.u32.totalorder %s4220_s27, %s4985_s26 }
 0x40c   : > { %p4222_p0 = pnand %p4221_p9, %p4501_p5 }
 0x40d   : > { %p4227_p6 = por %p4226_p13, %p4225_p8 }
 0x40e   : > { %p4223_p11 = pneg %p4222_p0 }
 0x40f   : > { %p4229_p3 = por %p4228_p10, %p4227_p6 }
 0x411   : > { %p4230_p7 = pnand %p4229_p3, %p4223_p11 }
 0x413   : > { %4233 = shalt.err (!%p4230_p7)
}
 0x414   : > { %s4290_s11 = smov 64   ;;  %s4291_s17 = smov 4  }
 0x415   : > { %3920 = dma.vmem_to_hbm [thread:$0]  (%p4501_p5), %s4980_s21, 512, %s4985_s26, %s3077_s24, %s4290_s11, %s4290_s11, %s4291_s17  }
 0x416 PF: > { %s5076_s12 = sld [smem:[#allocation16_spill]]  ;;  %s5077_s18 = sld [smem:[#allocation17_spill]] }
 0x417   : > { %p5079_p1 = scmp.ge.s32.totalorder %s4280_s16, 2 }
 0x41c   : > { %s3105_s28 = sand.u32 1, %s5076_s12   ;;  %p5078_p12 = scmp.ne.s32.totalorder %s5077_s18, 0 }
 0x41d   : > { %s3106_s27 = scalar_lea.sflag [#allocation5], %s3105_s28 }
 0x41e   : > { %p3937_p2 = pnand %p5079_p1, %p5078_p12 }
 0x420   : > { %4263 = dma.done.wait (!%p3937_p2), %s3106_s27, 512  }
 0x421   : > { %4265 = vsyncadd (!%p3937_p2), %s3106_s27, 4294966784  ;;  %s5080_s23 = smov %s4497_s13  ;;  %p25_p4 = scmp.ge.s32.totalorder %s4487_s22, 4  }
 0x422   : > { %s5081_s13 = smov %s4272_s14  ;;  %s5082_s14 = smov %s4276_s15 }
 0x423   : > { %s5083_s15 = smov %s5080_s23  ;;  %s5084_s16 = smov %s4487_s22 }
 0x424   :  { %27 = sbr.rel (!%p25_p4) target bundleno = 10 (0xa), region = 128 }
 0x42b   :  { %3111 = vsyncpa [#allocation4], 1 }
 0x42c   :  { %3113 = vsyncpa [#allocation4 + $0x1], 1 }
 0x42d   :  { %3114 = vsyncpa [#allocation7], 1 }
 0x42e   :  { %3115 = vsyncpa [#allocation10], 1 }
 0x42f   :  { %3116 = vsyncpa [#allocation5], 1 }
 0x430   :  { %3118 = vsyncpa [#allocation5 + $0x1], 1 }

// kernel: tpu_custom_call.1
= control target key start
LH: loop header
LB: loop body
LE: loop exit
PB: predicated region body
PF: predicated region fallthrough
CT: control target
= control target key end

     0   :  { %s5029_s0 = inlined_call_operand.hbm [shape: bf16[2,8,8,128], index: 0, kind: input, shape index: {}]   ;;  %s5030_s1 = inlined_call_operand.hbm [shape: bf16[128,128], index: 1, kind: input, shape index: {}]   ;;  %s5031_s2 = inlined_call_operand.vmem [shape: f32[1,128], index: 2, kind: input, shape index: {}]   ;;  %s5032_s3 = inlined_call_operand.vmem [shape: f32[1,128], index: 3, kind: input, shape index: {}]   ;;  %s5033_s4 = inlined_call_operand.hbm [shape: bf16[9,128,128], index: 4, kind: input, shape index: {}]   ;;  %s5034_s5 = inlined_call_operand.vmem [shape: f32[1,128], index: 5, kind: input, shape index: {}]   ;;  %s5035_s6 = inlined_call_operand.vmem [shape: f32[1,128], index: 6, kind: input, shape index: {}]   ;;  %s5036_s7 = inlined_call_operand.hbm [shape: bf16[128,128], index: 7, kind: input, shape index: {}]   ;;  %s5037_s8 = inlined_call_operand.vmem [shape: f32[1,128], index: 8, kind: input, shape index: {}]   ;;  %s5038_s9 = inlined_call_operand.vmem [shape: f32[1,128], index: 9, kind: input, shape index: {}]   ;;  %s5039_s10 = inlined_call_operand.hbm [shape: bf16[2,8,8,128], index: 10, kind: output, shape index: {}]  }
   0x1   :  { %5046 = sst [smem:[#allocation18_spill]] %s5038_s9 }
   0x2   :  { %5047 = sst [smem:[#allocation19_spill]] %s5039_s10 }
   0x3   :  { %15 = vsyncpa [#allocation4], 0 }
   0x4   :  { %17 = vsyncpa [#allocation4 + $0x1], 0 }
   0x5   :  { %18 = vsyncpa [#allocation7], 0 }
   0x6   :  { %19 = vsyncpa [#allocation10], 0 }
   0x7   :  { %20 = vsyncpa [#allocation5], 0 }
   0x8   :  { %22 = vsyncpa [#allocation5 + $0x1], 0  ;;  %s4347_s13 = smov 0   ;;  %s4349_s14 = smov 0  }
   0x9   :  { %s4351_s15 = smov 0   ;;  %s4353_s16 = smov 0  }
   0xa LB: > { %5048 = sst [smem:[#allocation16_spill]] %s4268_s13  ;;  %s4368_s17 = sadd.s32 4294967295, %s4280_s16   ;;  %s4280_s16 = sphi %s4353_s16, %s5084_s16   ;;  %s4276_s15 = sphi %s4351_s15, %s5083_s15   ;;  %s4272_s14 = sphi %s4349_s14, %s5082_s14   ;;  %s4268_s13 = sphi %s4347_s13, %s5081_s13  }
   0xb   : > { %s3192_s18 = sadd.s32 4294967294, %s4280_s16   ;;  %p48_p0 = scmp.ne.s32.totalorder %s4272_s14, %s4268_s13 }
   0xc   : > { %p5040_p1 = scmp.eq.s32.totalorder %s4368_s17, 0  ;;  %p267_p3 = scmp.eq.s32.totalorder %s3192_s18, 1 }
   0xd   : > { %p3193_p5 = scmp.ge.s32.totalorder %s4280_s16, 1  ;;  %p274_p7 = scmp.lt.s32.totalorder %s4280_s16, 3 }
   0xe   : > { %p4377_p4 = por %p5040_p1, %p48_p0  ;;  %p4382_p6 = por %p267_p3, %p48_p0 }
   0xf   : > { %p4387_p8 = pnand %p3193_p5, %p274_p7  ;;  %s4282_s22 = smov [#allocation6]  }
  0x10   : > { %s5049_s19 = scalar_select %p4377_p4, 1, 0 }
  0x11   : > { %s5050_s20 = scalar_select %p4382_p6, 1, 0 }
  0x12   : > { %s5052_s21 = scalar_select %p4387_p8, 1, 0 }
  0x13   : > { %5051 = sst [smem:[#allocation17_spill]] %s5050_s20  ;;  %s286_s23 = sshll.u32 %s4282_s22, 4  ;;  %s4391_s23 = int_to_ptr.vmem [resolvable:$true] %s286_s23 }
  0x14   : > { %p3922_p9 = pneg %p4387_p8  ;;  %s4283_s25 = smov [#allocation8]  }
  0x15   : > { %s305_s26 = sshll.u32 %s4283_s25, 4  ;;  %s4284_s27 = smov [#allocation9]   ;;  %s4402_s26 = int_to_ptr.vmem [resolvable:$true] %s305_s26 }
  0x16   : > { %p4398_p11 = pnand %p3922_p9, %p5040_p1  ;;  %s4404_s28 = sshll.u32 %s4284_s27, 4  ;;  %s325_s28 = int_to_ptr.vmem [resolvable:$true] %s4404_s28 }
  0x17   : > { %s4092_s11 = scalar_lea.hbm %s5030_s1, 1024 }
  0x18   : > { %p4093_p12 = scmp.ne.s32.totalorder %s5030_s1, %s4092_s11  ;;  %p4414_p13 = pneg %p4398_p11 }
  0x19   : > { %p4099_p5 = scmp.lt.u32.totalorder %s4092_s11, %s5030_s1 }
  0x1a   : > { %p4095_p0 = pnand %p4414_p13, %p4093_p12 }
  0x1c   : > { %p4096_p3 = pneg %p4095_p0 }
  0x1e   : > { %p4101_p7 = pnand %p4099_p5, %p4096_p3 }
  0x20   : > { %4104 = shalt.err (!%p4101_p7)
}
  0x21   : > { %s4105_s29 = scalar_lea.vmem %s4391_s23, 1024  ;;  %p4113_p2 = scmp.lt.s32.totalorder %s4391_s23, %s4391_s23 }
  0x22   : > { %p4106_p9 = scmp.ne.s32.totalorder %s4391_s23, %s4105_s29  ;;  %p4114_p6 = scmp.lt.s32.totalorder %s4105_s29, %s4105_s29 }
  0x24   : > { %p4108_p10 = pnand %p4106_p9, %p4414_p13  ;;  %p4115_p12 = por %p4114_p6, %p4113_p2 }
  0x26   : > { %p4109_p1 = pneg %p4108_p10 }
  0x28   : > { %p4116_p0 = pnand %p4115_p12, %p4109_p1 }
  0x2a   : > { %4119 = shalt.err (!%p4116_p0)
}
  0x2b   : > { %s4285_s30 = smov 64   ;;  %s4286_s11 = smov 4  }
  0x2c   : > { %3925 = dma.hbm_to_vmem [thread:$0]  (!%p4398_p11), %s5030_s1, 1024, %s4391_s23, [#allocation7], %s4285_s30, %s4285_s30, %s4286_s11  }
  0x2d   : > { %s4120_s29 = scalar_lea.hbm %s5033_s4, 9216 }
  0x2e   : > { %p4121_p1 = scmp.ne.s32.totalorder %s5033_s4, %s4120_s29  ;;  %p4127_p10 = scmp.lt.u32.totalorder %s4120_s29, %s5033_s4 }
  0x30   : > { %p4123_p2 = pnand %p4121_p1, %p4414_p13 }
  0x32   : > { %p4124_p6 = pneg %p4123_p2 }
  0x34   : > { %p4129_p3 = pnand %p4127_p10, %p4124_p6 }
  0x36   : > { %4132 = shalt.err (!%p4129_p3)
}
  0x37   : > { %s4133_s23 = scalar_lea.vmem %s4402_s26, 9216  ;;  %p4141_p12 = scmp.lt.s32.totalorder %s4402_s26, %s4402_s26 }
  0x38   : > { %p4134_p5 = scmp.ne.s32.totalorder %s4402_s26, %s4133_s23  ;;  %p4142_p0 = scmp.lt.s32.totalorder %s4133_s23, %s4133_s23 }
  0x3a   : > { %p4136_p7 = pnand %p4134_p5, %p4414_p13  ;;  %p4143_p1 = por %p4142_p0, %p4141_p12 }
  0x3c   : > { %p4137_p9 = pneg %p4136_p7 }
  0x3e   : > { %p4144_p2 = pnand %p4143_p1, %p4137_p9 }
  0x40   : > { %4147 = shalt.err (!%p4144_p2)
}
  0x41   : > { %3928 = dma.hbm_to_vmem [thread:$0]  (!%p4398_p11), %s5033_s4, 9216, %s4402_s26, [#allocation7], %s4285_s30, %s4285_s30, %s4286_s11  }
  0x42   : > { %s4148_s12 = scalar_lea.hbm %s5036_s7, 1024 }
  0x43   : > { %p4149_p6 = scmp.ne.s32.totalorder %s5036_s7, %s4148_s12  ;;  %p4155_p5 = scmp.lt.u32.totalorder %s4148_s12, %s5036_s7 }
  0x45   : > { %p4151_p10 = pnand %p4149_p6, %p4414_p13 }
  0x47   : > { %p4152_p3 = pneg %p4151_p10 }
  0x49   : > { %p4157_p7 = pnand %p4155_p5, %p4152_p3 }
  0x4b   : > { %4160 = shalt.err (!%p4157_p7)
}
  0x4c   : > { %s4161_s23 = scalar_lea.vmem %s325_s28, 1024  ;;  %p4169_p1 = scmp.lt.s32.totalorder %s325_s28, %s325_s28 }
  0x4d   : > { %p4162_p9 = scmp.ne.s32.totalorder %s325_s28, %s4161_s23  ;;  %p4170_p2 = scmp.lt.s32.totalorder %s4161_s23, %s4161_s23 }
  0x4f   : > { %p4164_p12 = pnand %p4162_p9, %p4414_p13  ;;  %p4171_p4 = por %p4170_p2, %p4169_p1 }
  0x51   : > { %p4165_p0 = pneg %p4164_p12 }
  0x53   : > { %p4172_p8 = pnand %p4171_p4, %p4165_p0 }
  0x55   : > { %4175 = shalt.err (!%p4172_p8)
}
  0x56   : > { %3931 = dma.hbm_to_vmem [thread:$0]  (!%p4398_p11), %s5036_s7, 1024, %s325_s28, [#allocation10], %s4285_s30, %s4285_s30, %s4286_s11  }
  0x57   : > { %s4487_s22 = sadd.s32 1, %s4280_s16   ;;  %s35_s10 = sadd.s32 1, %s4276_s15 }
  0x58   : > { %s32_s24 = ssub.s32 %s4280_s16, %s4487_s22  ;;  %p42_p8 = scmp.ne.s32.totalorder %s4276_s15, %s4272_s14 }
  0x59   : > { %p33_p4 = scmp.eq.s32.totalorder %s32_s24, 0  ;;  %p43_p13 = scmp.eq.s32.totalorder %s4280_s16, 0 }
  0x5a   : > { %p3943_p6 = scmp.lt.s32.totalorder %s4280_s16, 2  ;;  %p5055_p3 = scmp.eq.s32.totalorder %s4368_s17, 1 }
  0x5b   : > { %s4497_s13 = scalar_select %p33_p4, %s4276_s15, %s35_s10  }
  0x5c   : > { %p44_p10 = por %p43_p13, %p42_p8  ;;  %p4501_p5 = por %p5055_p3, %p42_p8 }
  0x5d   : > { %s344_s12 = sand.u32 1, %s4276_s15   ;;  %s3386_s18 = sshll.u32 %s4280_s16, 9 }
  0x5e   : > { %s3198_s28 = sshll.u32 %s344_s12, 5  ;;  %s4510_s29 = scalar_lea.hbm %s5029_s0, %s3386_s18 }
  0x5f   : > { %s348_s23 = scalar_lea.vmem [#allocation3], %s3198_s28  ;;  %p4512_p11 = pnand %p3943_p6, %p44_p10 }
  0x60   : > { %s355_s26 = sshll.u32 %s348_s23, 4  ;;  %s4518_s24 = scalar_lea.sflag [#allocation4], %s344_s12  ;;  %s4516_s26 = int_to_ptr.vmem [resolvable:$true] %s355_s26 }
  0x61   : > { %s4176_s10 = scalar_lea.hbm %s4510_s29, 512  ;;  %p4178_p9 = pneg %p4512_p11 }
  0x62   : > { %p4177_p7 = scmp.ne.s32.totalorder %s4510_s29, %s4176_s10  ;;  %s4181_s25 = scalar_lea.hbm %s5029_s0, 1024 }
  0x63   : > { %p4182_p1 = scmp.lt.u32.totalorder %s4510_s29, %s5029_s0  ;;  %p4183_p2 = scmp.lt.u32.totalorder %s4181_s25, %s4176_s10 }
  0x64   : > { %p4179_p12 = pnand %p4178_p9, %p4177_p7  ;;  %p4185_p8 = scmp.lt.u32.totalorder %s4176_s10, %s4510_s29 }
  0x65   : > { %p4184_p4 = por %p4183_p2, %p4182_p1 }
  0x66   : > { %p4180_p0 = pneg %p4179_p12 }
  0x67   : > { %p4186_p13 = por %p4185_p8, %p4184_p4 }
  0x69   : > { %p4187_p6 = pnand %p4186_p13, %p4180_p0 }
  0x6b   : > { %4190 = shalt.err (!%p4187_p6)
}
  0x6c   : > { %s4191_s12 = scalar_lea.vmem %s4516_s26, 512  ;;  %s4287_s18 = smov [#allocation3]  }
  0x6d   : > { %p4192_p10 = scmp.ne.s32.totalorder %s4516_s26, %s4191_s12  ;;  %s4196_s28 = sshll.u32 %s4287_s18, 4  ;;  %s4197_s28 = int_to_ptr.vmem [resolvable:$false] %s4196_s28 }
  0x6e   : > { %s4198_s27 = scalar_lea.vmem %s4197_s28, 1024  ;;  %p4199_p12 = scmp.lt.s32.totalorder %s4516_s26, %s4197_s28 }
  0x6f   : > { %p4194_p3 = pnand %p4192_p10, %p4178_p9  ;;  %p4200_p1 = scmp.lt.s32.totalorder %s4198_s27, %s4191_s12 }
  0x71   : > { %p4195_p7 = pneg %p4194_p3  ;;  %p4201_p2 = por %p4200_p1, %p4199_p12 }
  0x73   : > { %p4202_p4 = pnand %p4201_p2, %p4195_p7 }
  0x75   : > { %4205 = shalt.err (!%p4202_p4)
}
  0x76   : > { %3935 = dma.hbm_to_vmem [thread:$0]  (!%p4512_p11), %s4510_s29, 512, %s4516_s26, %s4518_s24, %s4285_s30, %s4285_s30, %s4286_s11  }
  0x77   : > { %p5058_p9 = scmp.ne.s32.totalorder %s5052_s21, 0 }
  0x78   : > { %s4552_s10 = sand.u32 (!%p5058_p9), 1, %s4272_s14   ;;  %p5059_p0 = scmp.ne.s32.totalorder (!%p5058_p9), %s5049_s19, 0 }
  0x79   : > { %367 = sbr.rel (%p5058_p9) target bundleno = 1046 (0x416), region = 60  ;;  %s3202_s25 = sshll.u32 (!%p5058_p9), %s4552_s10, 5 }
  0x7a   : > { %s370_s23 = scalar_lea.sflag (!%p5058_p9), [#allocation4], %s4552_s10  ;;  %s4558_s9 = scalar_lea.vmem (!%p5058_p9), [#allocation3], %s3202_s25 }
  0x80   : > { %4251 = dma.done.wait (%p5059_p0), %s370_s23, 512  }
  0x81   : > { %4253 = vsyncadd (%p5059_p0), %s370_s23, 4294966784  ;;  %p5060_p11 = scmp.eq.s32.totalorder %s4368_s17, 0 }
  0x83   : > { %4255 = dma.done.wait (%p5060_p11), [#allocation7], 10240   ;;  %p5061_p8 = pmov %p5060_p11 }
  0x85   : > { %4257 = vsyncadd (%p5061_p8), [#allocation7], 4294957056  ;;  %p5062_p13 = pmov %p5061_p8 }
  0x86   : > { %p5063_p6 = pmov %p5061_p8 }
  0x87   : > { %4259 = dma.done.wait (%p5062_p13), [#allocation10], 1024  }
  0x88   : > { %4261 = vsyncadd (%p5063_p6), [#allocation10], 4294966272  ;;  %v3988_v0 = vld [vmem:[#allocation6] sm:$0xff]   ;;  %v3989_v1 = vld [vmem:[#allocation6 + $0x8] sm:$0xff]   ;;  %vm628_vm0 = vcmask 1040384   ;;  %v4288_v52 = vmov 0  }
  0x89   : > { %3578 = vmatprep.subr.bf16.mxu0 %v3988_v0  ;;  %v3990_v2 = vld [vmem:[#allocation6 + $0x10] sm:$0xff]   ;;  %v3991_v3 = vld [vmem:[#allocation6 + $0x18] sm:$0xff]   ;;  %v3996_v4 = vld [vmem:[%s4558_s9] sm:$0xff]   ;;  %vm629_vm1 = vsmask.f32 256  ;;  %vm785_vm5 = vcmask 1043456  }
  0x8a   : > { %3579 = vmatpush3.bf16.msra.mxu0 %v3988_v0  ;;  %3594 = vmatprep.mubr.bf16.mxu0 %v3996_v4  ;;  %v3992_v5 = vld [vmem:[#allocation6 + $0x20] sm:$0xff]   ;;  %v3993_v7 = vld [vmem:[#allocation6 + $0x28] sm:$0xff]   ;;  %v3994_v8 = vld [vmem:[#allocation6 + $0x30] sm:$0xff]   ;;  %vm655_vm2 = vsmask.f32 7938  ;;  %vm1289_vm10 = vcmask 1042432  }
  0x8b   : > { %3580 = vmatprep.subr.bf16.mxu0 %v3989_v1  ;;  %v4000_v6 = vld [vmem:[#allocation8 + $0xc0] sm:$0xff]   ;;  %v3995_v9 = vld [vmem:[#allocation6 + $0x38] sm:$0xff]   ;;  %v3997_v10 = vld [vmem:[%s4558_s9 + $0x8] sm:$0xff]   ;;  %622 = vst [vmem:[#allocation2] sm:$0xf] %v4288_v52  ;;  %vm1290_vm11 = vcmask 1046532  }
  0x8c   : > { %3674 = vmatprep.subr.bf16.mxu1 %v4000_v6  ;;  %v3998_v11 = vld [vmem:[%s4558_s9 + $0x10] sm:$0xff]   ;;  %v3999_v12 = vld [vmem:[%s4558_s9 + $0x18] sm:$0xff]   ;;  %v4001_v13 = vld [vmem:[#allocation8 + $0xc8] sm:$0xff]   ;;  %623 = vst [vmem:[#allocation2 + $0x4] sm:$0x1] %v4288_v52  ;;  %s5074_s19 = sld [smem:[#allocation18_spill]] }
  0x8d   : > { %3675 = vmatpush3.bf16.msra.mxu1 %v4000_v6  ;;  %v4003_v14 = vld [vmem:[#allocation8 + $0xd0] sm:$0xff]   ;;  %v4002_v15 = vld [vmem:[#allocation8 + $0x40] sm:$0xff]   ;;  %vm4576_vm3 = vmand %vm628_vm0, %vm629_vm1  ;;  %625 = vst [vmem:[#allocation2 + $0x48] sm:$0xf] %v4288_v52  ;;  %vm867_vm7 = vsmask.f32 3328 }
  0x8e   : > { %3581 = vmatpush3.bf16.msra.mxu0 %v3989_v1  ;;  %3676 = vmatprep.subr.bf16.mxu1 %v4001_v13  ;;  %v637_v17 = vld [vmem:[#allocation2 + $0x18] sm:$0x1]  ;;  %v663_v18 = vld [vmem:[#allocation2 + $0x1c] sm:$0x1]  ;;  %vm4583_vm4 = vmand %vm628_vm0, %vm655_vm2  ;;  %626 = vst [vmem:[#allocation2 + $0x4c] sm:$0x1] %v4288_v52 }
  0x8f   : > { %3582 = vmatprep.subr.bf16.mxu0 %v3990_v2  ;;  %v638_v19 = vsel %vm4576_vm3, 0, %v637_v17  ;;  %v631_v21 = vld [vmem:[#allocation2 + $0x8] sm:$0x1]  ;;  %v657_v22 = vld [vmem:[#allocation2 + $0xc] sm:$0x1]  ;;  %v664_v23 = vsel %vm4583_vm4, 0, %v663_v18  ;;  %vm4659_vm6 = vmand %vm785_vm5, %vm655_vm2 }
  0x90   : > { %639 = vst [vmem:[#allocation2 + $0x18] sm:$0x1] %v638_v19  ;;  %v632_v24 = vsel %vm4576_vm3, 0, %v631_v21  ;;  %v658_v25 = vsel %vm4583_vm4, 0, %v657_v22  ;;  %v640_v26 = vld [vmem:[#allocation2 + $0x20] sm:$0x1]  ;;  %vm4830_vm12 = vmor %vm1289_vm10, %vm1290_vm11 }
  0x91   : > { %3677 = vmatpush3.bf16.msra.mxu1 %v4001_v13  ;;  %v4005_v27 = vld [vmem:[#allocation8 + $0xd8] sm:$0xff]   ;;  %665 = vst [vmem:[#allocation2 + $0x1c] sm:$0x1] %v664_v23  ;;  %633 = vst [vmem:[#allocation2 + $0x8] sm:$0x1] %v632_v24  ;;  %v641_v28 = vsel %vm4576_vm3, 0, %v640_v26 }
  0x92   : > { %3583 = vmatpush3.bf16.msra.mxu0 %v3990_v2  ;;  %3678 = vmatprep.subr.bf16.mxu1 %v4003_v14  ;;  %659 = vst [vmem:[#allocation2 + $0xc] sm:$0x1] %v658_v25  ;;  %v666_v29 = vld [vmem:[#allocation2 + $0x24] sm:$0x1]  ;;  %v634_v30 = vld [vmem:[#allocation2 + $0x10] sm:$0x1] }
  0x93   : > { %3584 = vmatprep.subr.bf16.mxu0 %v3991_v3  ;;  %v4004_v31 = vld [vmem:[#allocation8 + $0x48] sm:$0xff]   ;;  %642 = vst [vmem:[#allocation2 + $0x20] sm:$0x1] %v641_v28  ;;  %v667_v32 = vsel %vm4583_vm4, 0, %v666_v29  ;;  %v635_v33 = vsel %vm4576_vm3, 0, %v634_v30  ;;  %v4007_v39 = vld [vmem:[#allocation8 + $0xe0] sm:$0xff]  }
  0x94   : > { %v660_v34 = vld [vmem:[#allocation2 + $0x14] sm:$0x1]  ;;  %668 = vst [vmem:[#allocation2 + $0x24] sm:$0x1] %v667_v32  ;;  %636 = vst [vmem:[#allocation2 + $0x10] sm:$0x1] %v635_v33 }
  0x95   : > { %3679 = vmatpush3.bf16.msra.mxu1 %v4003_v14  ;;  %v661_v35 = vsel %vm4583_vm4, 0, %v660_v34  ;;  %v643_v36 = vld [vmem:[#allocation2 + $0x28] sm:$0x1]  ;;  %v649_v37 = vld [vmem:[#allocation2 + $0x38] sm:$0x1]  ;;  %v4006_v41 = vld [vmem:[#allocation8 + $0x50] sm:$0xff]  }
  0x96   : > { %3585 = vmatpush3.bf16.msra.mxu0 %v3991_v3  ;;  %3680 = vmatprep.subr.bf16.mxu1 %v4005_v27  ;;  %662 = vst [vmem:[#allocation2 + $0x14] sm:$0x1] %v661_v35  ;;  %v644_v38 = vsel %vm4576_vm3, 0, %v643_v36  ;;  %v650_v40 = vsel %vm4576_vm3, 0, %v649_v37  ;;  %v669_v42 = vld [vmem:[#allocation2 + $0x2c] sm:$0x1] }
  0x97   : > { %3586 = vmatprep.subr.bf16.mxu0 %v3992_v5  ;;  %645 = vst [vmem:[#allocation2 + $0x28] sm:$0x1] %v644_v38  ;;  %651 = vst [vmem:[#allocation2 + $0x38] sm:$0x1] %v650_v40  ;;  %v675_v43 = vld [vmem:[#allocation2 + $0x3c] sm:$0x1] }
  0x98   : > { %v670_v44 = vsel %vm4583_vm4, 0, %v669_v42  ;;  %v676_v45 = vsel %vm4583_vm4, 0, %v675_v43  ;;  %v4009_v46 = vld [vmem:[#allocation8 + $0xe8] sm:$0xff]   ;;  %v4008_v47 = vld [vmem:[#allocation8 + $0x58] sm:$0xff]   ;;  %v652_v48 = vld [vmem:[#allocation2 + $0x40] sm:$0x1] }
  0x99   : > { %3681 = vmatpush3.bf16.msra.mxu1 %v4005_v27  ;;  %671 = vst [vmem:[#allocation2 + $0x2c] sm:$0x1] %v670_v44  ;;  %677 = vst [vmem:[#allocation2 + $0x3c] sm:$0x1] %v676_v45  ;;  %v646_v49 = vld [vmem:[#allocation2 + $0x30] sm:$0x1] }
  0x9a   : > { %3587 = vmatpush3.bf16.msra.mxu0 %v3992_v5  ;;  %3682 = vmatprep.subr.bf16.mxu1 %v4007_v39  ;;  %v653_v50 = vsel %vm4576_vm3, 0, %v652_v48  ;;  %v647_v51 = vsel %vm4576_vm3, 0, %v646_v49  ;;  %v4011_v53 = vld [vmem:[#allocation8 + $0xf0] sm:$0xff]   ;;  %v4010_v54 = vld [vmem:[#allocation8 + $0x60] sm:$0xff]   ;;  %v4013_v59 = vld [vmem:[#allocation8 + $0xf8] sm:$0xff]   ;;  %s3403_s30 = sshll.u32 %s4368_s17, 9 }
  0x9b   : > { %3588 = vmatprep.subr.bf16.mxu0 %v3993_v7  ;;  %654 = vst [vmem:[#allocation2 + $0x40] sm:$0x1] %v653_v50  ;;  %648 = vst [vmem:[#allocation2 + $0x30] sm:$0x1] %v647_v51  ;;  %v678_v55 = vld [vmem:[#allocation2 + $0x44] sm:$0x1] }
  0x9c   : > { %v672_v56 = vld [vmem:[#allocation2 + $0x34] sm:$0x1]  ;;  %v679_v57 = vsel %vm4583_vm4, 0, %v678_v55  ;;  %v4012_v60 = vld [vmem:[#allocation8 + $0x68] sm:$0xff]   ;;  %v4014_v62 = vld [vmem:[#allocation8 + $0x70] sm:$0xff]   ;;  %s5075_s29 = sld [smem:[#allocation19_spill]] }
  0x9d   : > { %3683 = vmatpush3.bf16.msra.mxu1 %v4007_v39  ;;  %v673_v58 = vsel %vm4583_vm4, 0, %v672_v56  ;;  %680 = vst [vmem:[#allocation2 + $0x44] sm:$0x1] %v679_v57  ;;  %v4617_v61 = vld [vmem:[#allocation8 + $0x100] sm:$0xff]   ;;  %v4018_v63 = vld [vmem:[#allocation8 + $0x78] sm:$0xff]   ;;  %s3077_s24 = scalar_lea.sflag [#allocation5], %s4552_s10 }
  0x9e   : > { %3589 = vmatpush3.bf16.msra.mxu0 %v3993_v7  ;;  %3684 = vmatprep.subr.bf16.mxu1 %v4009_v46  ;;  %674 = vst [vmem:[#allocation2 + $0x34] sm:$0x1] %v673_v58  ;;  %v4620_v0 = vld [vmem:[#allocation8] sm:$0xff]   ;;  %v4623_v1 = vld [vmem:[#allocation2] sm:$0xf]  ;;  %s4289_s12 = smov [#allocation11]  }
  0x9f   : > { %3590 = vmatprep.subr.bf16.mxu0 %v3994_v8  ;;  %v4628_v2 = vld [vmem:[%s5031_s2] ss:$0 sm:$0xff]  ;;  %v871_v5 = vshrl.u32 %v4623_v1, 16  ;;  %v874_v6 = vshll.u32 %v4623_v1, 16  ;;  %v4649_v25 = vld [vmem:[#allocation2 + $0x4] sm:$0x1] }
  0xa0   : > { %v4633_v4 = vld [vmem:[%s5032_s3] ss:$0 sm:$0xff]  ;;  %v880_v30 = vshll.u32 %v4649_v25, 16  ;;  %v799_v36 = vld [vmem:[#allocation2 + $0x18] sm:$0xf]  ;;  %s4210_s18 = sshll.u32 %s4289_s12, 4  ;;  %s4211_s18 = int_to_ptr.vmem [resolvable:$false] %s4210_s18 }
  0xa1   : > { %3685 = vmatpush3.bf16.msra.mxu1 %v4009_v46  ;;  %v4643_v17 = vrot.slane %v871_v5, 4  ;;  %v4645_v18 = vrot.slane %v874_v6, 5  ;;  %v802_v37 = vld [vmem:[#allocation2 + $0x1c] sm:$0x1]  ;;  %v787_v44 = vld [vmem:[#allocation2 + $0x8] sm:$0xf] }
  0xa2   : > { %3591 = vmatpush3.bf16.msra.mxu0 %v3994_v8  ;;  %3686 = vmatprep.subr.bf16.mxu1 %v4011_v53  ;;  %v790_v51 = vld [vmem:[#allocation2 + $0xc] sm:$0x1]  ;;  %v805_v58 = vld [vmem:[#allocation2 + $0x20] sm:$0xf]  ;;  %vm868_vm8 = vsmask.f32 7440  ;;  %s4985_s26 = scalar_lea.hbm %s5075_s29, %s3403_s30 }
  0xa3   : > { %3592 = vmatprep.subr.bf16.mxu0 %v3995_v9  ;;  %v877_v29 = vor.u32 %v4645_v18, %v4643_v17  ;;  %vm4707_vm9 = vmor %vm867_vm7, %vm868_vm8  ;;  %s4212_s28 = scalar_lea.vmem %s4211_s18, 1024 }
  0xa5   : > { %3687 = vmatpush3.bf16.msra.mxu1 %v4011_v53 }
  0xa6   : > { %3593 = vmatpush3.bf16.msra.mxu0 %v3995_v9  ;;  %3688 = vmatprep.subr.bf16.mxu1 %v4013_v59 }
  0xa7   : > { %3602 = vmatprep.subr.bf16.mxu0 %v4002_v15 }
  0xa9   : > { %3595 = vmatmul.mubr.bf16.vlgmr.msra.gmra.mrb[0].mxu0 %v3997_v10  ;;  %3689 = vmatpush3.bf16.msra.mxu1 %v4013_v59 }
  0xaa   : > { %3598 = vmatprep.mubr.bf16.mxu0 %v3998_v11  ;;  %3603 = vmatpush3.bf16.msra.mxu0 %v4002_v15 }
  0xab   : > { %3604 = vmatprep.subr.bf16.mxu0 %v4004_v31  ;;  %3698 = vmatprep.subr.bf16.mxu1 %v4617_v61 }
  0xae   : > { %3605 = vmatpush3.bf16.msra.mxu0 %v4004_v31 }
  0xaf   : > { %3606 = vmatprep.subr.bf16.mxu0 %v4006_v41 }
  0xb1   : > { %3599 = vmatmul.mubr.bf16.gmra.mrb[4].mxu0 %v3999_v12 }
  0xb2   : > { %3607 = vmatpush3.bf16.msra.mxu0 %v4006_v41 }
  0xb3   : > { %3608 = vmatprep.subr.bf16.mxu0 %v4008_v47 }
  0xb6   : > { %3609 = vmatpush3.bf16.msra.mxu0 %v4008_v47 }
  0xb7   : > { %3610 = vmatprep.subr.bf16.mxu0 %v4010_v54 }
  0xba   : > { %3611 = vmatpush3.bf16.msra.mxu0 %v4010_v54 }
  0xbb   : > { %3612 = vmatprep.subr.bf16.mxu0 %v4012_v60 }
  0xbe   : > { %3613 = vmatpush3.bf16.msra.mxu0 %v4012_v60 }
  0xbf   : > { %3614 = vmatprep.subr.bf16.mxu0 %v4014_v62 }
  0xc2   : > { %3615 = vmatpush3.bf16.msra.mxu0 %v4014_v62 }
  0xc3   : > { %3616 = vmatprep.subr.bf16.mxu0 %v4018_v63 }
  0xc6   : > { %3617 = vmatpush3.bf16.msra.mxu0 %v4018_v63  ;;  %v808_v63 = vld [vmem:[#allocation2 + $0x24] sm:$0x1] }
  0xc7   : > { %3626 = vmatprep.subr.bf16.mxu0 %v4620_v0 }
 0x17c   : > { %v3596_v3 = vpop.f32.mrb[0].mxu0 }
 0x17d   : > { %v593_v7 = vmul.f32 %v3596_v3, %v4628_v2  ;;  %v553_v8 = vpop.f32.mrb[1].mxu0 }
 0x17e   : > { %v591_v9 = vmul.f32 %v4628_v2, %v553_v8  ;;  %v3597_v10 = vpop.f32.mrb[2].mxu0 }
 0x17f   : > { %v608_v11 = vadd.f32 %v4633_v4, %v593_v7  ;;  %v594_v12 = vmul.f32 %v3597_v10, %v4628_v2  ;;  %v556_v13 = vpop.f32.mrb[3].mxu0  ;;  %v793_v10 = vld [vmem:[#allocation2 + $0x10] sm:$0xf] }
 0x180   : > { %v606_v14 = vadd.f32 %v4633_v4, %v591_v9  ;;  %v592_v15 = vmul.f32 %v4628_v2, %v556_v13 }
 0x181   : > { %v616_v19 = vmax.f32 %v608_v11, 0.0  ;;  %v609_v20 = vadd.f32 %v4633_v4, %v594_v12  ;;  %v796_v11 = vld [vmem:[#allocation2 + $0x14] sm:$0x1] }
 0x182   : > { %v614_v21 = vmax.f32 %v606_v14, 0.0  ;;  %v607_v22 = vadd.f32 %v4633_v4, %v592_v15 }
 0x183   : > { %v3389_v23 = vpack.c.bf16 %v616_v19, %v616_v19  ;;  %v617_v24 = vmax.f32 %v609_v20, 0.0 }
 0x184   : > { %v3387_v26 = vpack.c.bf16 %v614_v21, %v614_v21  ;;  %v615_v27 = vmax.f32 %v607_v22, 0.0  ;;  %v3600_v28 = vpop.f32.mrb[4].mxu0 }
 0x185   : > { %v722_v31 = vshrl.u32 %v3389_v23, 16  ;;  %v725_v32 = vshll.u32 %v3389_v23, 16  ;;  %v3390_v33 = vpack.c.bf16 %v617_v24, %v617_v24  ;;  %v597_v34 = vmul.f32 %v3600_v28, %v4628_v2  ;;  %v569_v35 = vpop.f32.mrb[5].mxu0 }
 0x186   : > { %v706_v38 = vshrl.u32 %v3387_v26, 16  ;;  %v709_v39 = vshll.u32 %v3387_v26, 16  ;;  %v3388_v40 = vpack.c.bf16 %v615_v27, %v615_v27  ;;  %v595_v41 = vmul.f32 %v4628_v2, %v569_v35  ;;  %v3601_v42 = vpop.f32.mrb[6].mxu0  ;;  %v811_v35 = vld [vmem:[#allocation2 + $0x28] sm:$0xf] }
 0x187   : > { %v724_v43 = vrot.slane %v722_v31, 7  ;;  %v730_v45 = vshrl.u32 %v3390_v33, 16  ;;  %v733_v46 = vshll.u32 %v3390_v33, 16  ;;  %v612_v47 = vadd.f32 %v4633_v4, %v597_v34  ;;  %v572_v48 = vpop.f32.mrb[7].mxu0  ;;  %v823_v34 = vld [vmem:[#allocation2 + $0x38] sm:$0xf] }
 0x188   : > { %v708_v50 = vrot.slane %v706_v38, 7  ;;  %v714_v52 = vshrl.u32 %v3388_v40, 16  ;;  %v717_v53 = vshll.u32 %v3388_v40, 16  ;;  %v610_v54 = vadd.f32 %v4633_v4, %v595_v41  ;;  %v826_v41 = vld [vmem:[#allocation2 + $0x3c] sm:$0x1] }
 0x189   : > { %v727_v55 = vor.u32 %v725_v32, %v724_v43  ;;  %v728_v56 = vrot.slane %v724_v43, 4  ;;  %v732_v57 = vrot.slane %v730_v45, 7  ;;  %v620_v59 = vmax.f32 %v612_v47, 0.0 }
 0x18a   : > { %v711_v60 = vor.u32 %v709_v39, %v708_v50  ;;  %v712_v62 = vrot.slane %v708_v50, 4  ;;  %v716_v3 = vrot.slane %v714_v52, 7  ;;  %v618_v5 = vmax.f32 %v610_v54, 0.0 }
 0x18b   : > { %v800_v6 = vsel %vm4659_vm6, %v727_v55, %v799_v36  ;;  %v803_v7 = vsel %vm4576_vm3, %v728_v56, %v802_v37  ;;  %v735_v8 = vor.u32 %v733_v46, %v732_v57  ;;  %v736_v9 = vrot.slane %v732_v57, 4  ;;  %v814_v36 = vld [vmem:[#allocation2 + $0x2c] sm:$0x1] }
 0x18c   : > { %801 = vst [vmem:[#allocation2 + $0x18] sm:$0xf] %v800_v6  ;;  %804 = vst [vmem:[#allocation2 + $0x1c] sm:$0x1] %v803_v7  ;;  %v788_v12 = vsel %vm4659_vm6, %v711_v60, %v787_v44  ;;  %v791_v13 = vsel %vm4576_vm3, %v712_v62, %v790_v51  ;;  %v719_v14 = vor.u32 %v717_v53, %v716_v3  ;;  %v720_v15 = vrot.slane %v716_v3, 4  ;;  %v4019_v3 = vld [vmem:[#allocation8 + $0x108] sm:$0xff]  }
 0x18d   : > { %789 = vst [vmem:[#allocation2 + $0x8] sm:$0xf] %v788_v12  ;;  %792 = vst [vmem:[#allocation2 + $0xc] sm:$0x1] %v791_v13  ;;  %v806_v19 = vsel %vm4659_vm6, %v735_v8, %v805_v58  ;;  %v809_v20 = vsel %vm4576_vm3, %v736_v9, %v808_v63  ;;  %v3393_v21 = vpack.c.bf16 %v620_v59, %v620_v59  ;;  %v4687_v43 = vrot.slane %v877_v29, 4 }
 0x18e   : > { %v3391_v22 = vpack.c.bf16 %v618_v5, %v618_v5  ;;  %807 = vst [vmem:[#allocation2 + $0x20] sm:$0xf] %v806_v19  ;;  %810 = vst [vmem:[#allocation2 + $0x24] sm:$0x1] %v809_v20  ;;  %v794_v23 = vsel %vm4659_vm6, %v719_v14, %v793_v10  ;;  %v797_v24 = vsel %vm4576_vm3, %v720_v15, %v796_v11  ;;  %v4691_v44 = vrot.slane %v880_v30, 5  ;;  %v4081_v30 = vld [vmem:[#allocation8 + $0x228] sm:$0xff]  }
 0x18f   : > { %v598_v26 = vmul.f32 %v3601_v42, %v4628_v2  ;;  %v596_v27 = vmul.f32 %v4628_v2, %v572_v48  ;;  %795 = vst [vmem:[#allocation2 + $0x10] sm:$0xf] %v794_v23  ;;  %798 = vst [vmem:[#allocation2 + $0x14] sm:$0x1] %v797_v24  ;;  %v754_v28 = vshrl.u32 %v3393_v21, 16  ;;  %v757_v31 = vshll.u32 %v3393_v21, 16 }
 0x190   : > { %v738_v32 = vshrl.u32 %v3391_v22, 16  ;;  %v741_v33 = vshll.u32 %v3391_v22, 16  ;;  %v829_v59 = vld [vmem:[#allocation2 + $0x40] sm:$0xf]  ;;  %v832_v60 = vld [vmem:[#allocation2 + $0x44] sm:$0x1]  ;;  %v883_v11 = vsel %vm4707_vm9, %v4687_v43, %v4691_v44 }
 0x191   : > { %v613_v37 = vadd.f32 %v4633_v4, %v598_v26  ;;  %v611_v38 = vadd.f32 %v4633_v4, %v596_v27  ;;  %v756_v39 = vrot.slane %v754_v28, 7  ;;  %v817_v62 = vld [vmem:[#allocation2 + $0x30] sm:$0xf]  ;;  %v820_v13 = vld [vmem:[#allocation2 + $0x34] sm:$0x1] }
 0x192   : > { %v740_v40 = vrot.slane %v738_v32, 7 }
 0x193   : > { %v621_v42 = vmax.f32 %v613_v37, 0.0  ;;  %v619_v2 = vmax.f32 %v611_v38, 0.0  ;;  %v759_v45 = vor.u32 %v757_v31, %v756_v39  ;;  %v760_v46 = vrot.slane %v756_v39, 4  ;;  %v4711_v54 = vld [vmem:[#allocation2 + $0x18] sm:$0xf] }
 0x194   : > { %v743_v47 = vor.u32 %v741_v33, %v740_v40  ;;  %v744_v4 = vrot.slane %v740_v40, 4  ;;  %v4693_v51 = vld [vmem:[#allocation2 + $0x8] sm:$0xf]  ;;  %v4695_v52 = vld [vmem:[#allocation2 + $0xc] sm:$0x1]  ;;  %v913_v20 = vshrl.u32 %v4711_v54, 16 }
 0x195   : > { %v3394_v48 = vpack.c.bf16 %v621_v42, %v621_v42  ;;  %v3392_v50 = vpack.c.bf16 %v619_v2, %v619_v2  ;;  %v824_v53 = vsel %vm4659_vm6, %v759_v45, %v823_v34  ;;  %v827_v17 = vsel %vm4576_vm3, %v760_v46, %v826_v41  ;;  %v4017_v10 = vld [vmem:[#allocation2 + $0x18] ss:$8 sps:$4 sm:$0xff]   ;;  %v4726_v27 = vld [vmem:[#allocation2 + $0x1c] sm:$0x1]  ;;  %v1648_v34 = vld [vmem:[#allocation2 + $0x8] sm:$0xf] }
 0x196   : > { %v812_v18 = vsel %vm4659_vm6, %v743_v47, %v811_v35  ;;  %v815_v29 = vsel %vm4576_vm3, %v744_v4, %v814_v36  ;;  %825 = vst [vmem:[#allocation2 + $0x38] sm:$0xf] %v824_v53  ;;  %828 = vst [vmem:[#allocation2 + $0x3c] sm:$0x1] %v827_v17  ;;  %v4015_v63 = vld [vmem:[#allocation2 + $0x8] ss:$8 sps:$4 sm:$0xff]  }
 0x197   : > { %813 = vst [vmem:[#allocation2 + $0x28] sm:$0xf] %v812_v18  ;;  %816 = vst [vmem:[#allocation2 + $0x2c] sm:$0x1] %v815_v29  ;;  %v762_v55 = vshrl.u32 %v3394_v48, 16  ;;  %v765_v56 = vshll.u32 %v3394_v48, 16  ;;  %3690 = vmatprep.mubr.bf16.mxu1 %v4015_v63 }
 0x198   : > { %v746_v57 = vshrl.u32 %v3392_v50, 16  ;;  %v749_v58 = vshll.u32 %v3392_v50, 16  ;;  %v885_v5 = vshrl.u32 %v4693_v51, 16  ;;  %v888_v6 = vshll.u32 %v4693_v51, 16  ;;  %v4720_v12 = vld [vmem:[#allocation2 + $0x10] sm:$0xf]  ;;  %3691 = vmatmul.mubr.bf16.vlgmr.msra.gmra.mrb[0].mxu1 %v4017_v10 }
 0x199   : > { %v894_v7 = vshll.u32 %v4695_v52, 16  ;;  %v764_v8 = vrot.slane %v762_v55, 7  ;;  %v899_v19 = vshrl.u32 %v4720_v12, 16  ;;  %v4724_v26 = vld [vmem:[#allocation2 + $0x14] sm:$0x1]  ;;  %3699 = vmatpush3.bf16.msra.mxu1 %v4617_v61  ;;  %v902_v33 = vshll.u32 %v4720_v12, 16 }
 0x19a   : > { %v748_v9 = vrot.slane %v746_v57, 7  ;;  %v887_v14 = vrot.slane %v885_v5, 4  ;;  %v890_v15 = vrot.slane %v888_v6, 5  ;;  %3700 = vmatprep.subr.bf16.mxu1 %v4019_v3  ;;  %v4022_v61 = vld [vmem:[#allocation8 + $0x110] sm:$0xff]   ;;  %v4738_v39 = vld [vmem:[#allocation2 + $0xc] sm:$0x1] }
 0x19b   : > { %v767_v21 = vor.u32 %v765_v56, %v764_v8  ;;  %v768_v22 = vrot.slane %v764_v8, 4  ;;  %v896_v31 = vrot.slane %v894_v7, 5  ;;  %v901_v32 = vrot.slane %v899_v19, 4  ;;  %v1650_v40 = vld [vmem:[#allocation2 + $0x10] sm:$0xf]  ;;  %v4025_v55 = vld [vmem:[#allocation8 + $0x118] sm:$0xff]  }
 0x19c   : > { %v751_v23 = vor.u32 %v749_v58, %v748_v9  ;;  %v752_v24 = vrot.slane %v748_v9, 4  ;;  %v891_v28 = vor.u32 %v890_v15, %v887_v14  ;;  %v904_v42 = vrot.slane %v902_v33, 5  ;;  %v4746_v50 = vld [vmem:[#allocation2 + $0x20] sm:$0xf]  ;;  %v4748_v18 = vld [vmem:[#allocation2 + $0x14] sm:$0x1] }
 0x19d   : > { %v830_v35 = vsel %vm4659_vm6, %v767_v21, %v829_v59  ;;  %v833_v36 = vsel %vm4576_vm3, %v768_v22, %v832_v60  ;;  %v908_v2 = vshll.u32 %v4724_v26, 16  ;;  %v915_v43 = vrot.slane %v913_v20, 4  ;;  %3701 = vmatpush3.bf16.msra.mxu1 %v4019_v3  ;;  %v4750_v3 = vld [vmem:[#allocation2 + $0x24] sm:$0x1] }
 0x19e   : > { %v818_v37 = vsel %vm4659_vm6, %v751_v23, %v817_v62  ;;  %v821_v38 = vsel %vm4576_vm3, %v752_v24, %v820_v13  ;;  %831 = vst [vmem:[#allocation2 + $0x40] sm:$0xf] %v830_v35  ;;  %834 = vst [vmem:[#allocation2 + $0x44] sm:$0x1] %v833_v36  ;;  %v892_v41 = vrot.slane %v891_v28, 4  ;;  %v916_v49 = vshll.u32 %v4711_v54, 16  ;;  %3702 = vmatprep.subr.bf16.mxu1 %v4022_v61 }
 0x19f   : > { %819 = vst [vmem:[#allocation2 + $0x30] sm:$0xf] %v818_v37  ;;  %822 = vst [vmem:[#allocation2 + $0x34] sm:$0x1] %v821_v38  ;;  %v922_v44 = vshll.u32 %v4726_v27, 16  ;;  %v1665_v16 = vshrl.u32 %v1648_v34, 16  ;;  %v905_v47 = vor.u32 %v904_v42, %v901_v32  ;;  %v3241_v23 = vcombine.low %v4623_v1, %v4693_v51 }
 0x1a0   : > { %v1668_v45 = vshll.u32 %v1648_v34, 16  ;;  %v897_v46 = vsel %vm4707_vm9, %v892_v41, %v896_v31  ;;  %v1674_v4 = vshll.u32 %v4738_v39, 16  ;;  %v1679_v48 = vshrl.u32 %v1650_v40, 16  ;;  %v4754_v9 = vld [vmem:[#allocation2 + $0x28] sm:$0xf]  ;;  %v4024_v38 = vld [vmem:[#allocation8 + $0x8] sm:$0xff]  }
 0x1a1   : > { %v3229_v53 = vcombine.low %v883_v11, %v897_v46  ;;  %v918_v17 = vrot.slane %v916_v49, 5  ;;  %v1667_v29 = vrot.slane %v1665_v16, 4  ;;  %v906_v56 = vrot.slane %v905_v47, 4  ;;  %3703 = vmatpush3.bf16.msra.mxu1 %v4022_v61  ;;  %v4027_v11 = vld [vmem:[#allocation8 + $0x120] sm:$0xff]   ;;  %v4770_v61 = vld [vmem:[#allocation2 + $0x2c] sm:$0x1] }
 0x1a2   : > { %v910_v57 = vrot.slane %v908_v2, 5  ;;  %v924_v58 = vrot.slane %v922_v44, 5  ;;  %v1670_v59 = vrot.slane %v1668_v45, 5  ;;  %v1681_v62 = vrot.slane %v1679_v48, 4  ;;  %3704 = vmatprep.subr.bf16.mxu1 %v4025_v55  ;;  %v4030_v49 = vld [vmem:[#allocation8 + $0x128] sm:$0xff]  }
 0x1a3   : > { %3618 = vmatprep.mubr.bf16.mxu0 %v3229_v53  ;;  %v919_v60 = vor.u32 %v918_v17, %v915_v43  ;;  %v1682_v63 = vshll.u32 %v1650_v40, 16  ;;  %v927_v5 = vshrl.u32 %v4746_v50, 16  ;;  %v1676_v7 = vrot.slane %v1674_v4, 5  ;;  %v1652_v44 = vld [vmem:[#allocation2 + $0x18] sm:$0xf] }
 0x1a4   : > { %v1671_v6 = vor.u32 %v1670_v59, %v1667_v29  ;;  %v1688_v8 = vshll.u32 %v4748_v18, 16  ;;  %v930_v10 = vshll.u32 %v4746_v50, 16  ;;  %v911_v14 = vsel %vm4707_vm9, %v906_v56, %v910_v57  ;;  %v4775_v45 = vld [vmem:[#allocation2 + $0x38] sm:$0xf] }
 0x1a5   : > { %v920_v15 = vrot.slane %v919_v60, 4  ;;  %v1684_v19 = vrot.slane %v1682_v63, 5  ;;  %v4023_v20 = vld [vmem:[#allocation2 + $0x38] ss:$8 sps:$4 sm:$0xff]   ;;  %v936_v22 = vshll.u32 %v4750_v3, 16  ;;  %v929_v31 = vrot.slane %v927_v5, 4  ;;  %3705 = vmatpush3.bf16.msra.mxu1 %v4025_v55 }
 0x1a6   : > { %v4021_v13 = vld [vmem:[#allocation2 + $0x28] ss:$8 sps:$4 sm:$0xff]   ;;  %v1672_v21 = vrot.slane %v1671_v6, 4  ;;  %v932_v32 = vrot.slane %v930_v10, 5  ;;  %v4766_v34 = vld [vmem:[#allocation2 + $0x34] sm:$0x1]  ;;  %3706 = vmatprep.subr.bf16.mxu1 %v4027_v11 }
 0x1a7   : > { %3694 = vmatprep.mubr.bf16.mxu1 %v4021_v13  ;;  %v925_v24 = vsel %vm4707_vm9, %v920_v15, %v924_v58  ;;  %v1685_v28 = vor.u32 %v1684_v19, %v1681_v62  ;;  %v4764_v33 = vld [vmem:[#allocation2 + $0x30] sm:$0xf]  ;;  %v1690_v37 = vrot.slane %v1688_v8, 5  ;;  %v941_v40 = vshrl.u32 %v4754_v9, 16  ;;  %v4783_v55 = vld [vmem:[#allocation2 + $0x3c] sm:$0x1] }
 0x1a8   : > { %v3230_v35 = vcombine.low %v911_v14, %v925_v24  ;;  %3695 = vmatmul.mubr.bf16.gmra.mrb[4].mxu1 %v4023_v20  ;;  %v1677_v36 = vsel %vm4707_vm9, %v1672_v21, %v1676_v7  ;;  %v933_v42 = vor.u32 %v932_v32, %v929_v31  ;;  %v944_v2 = vshll.u32 %v4754_v9, 16  ;;  %v4026_v58 = vld [vmem:[#allocation8 + $0x10] sm:$0xff]   ;;  %v4787_v6 = vld [vmem:[#allocation2 + $0x1c] sm:$0x1]  ;;  %v4029_v24 = vld [vmem:[#allocation8 + $0x18] sm:$0xff]  }
 0x1a9   : > { %v1686_v41 = vrot.slane %v1685_v28, 4  ;;  %v950_v43 = vshll.u32 %v4770_v61, 16  ;;  %v943_v16 = vrot.slane %v941_v40, 4  ;;  %v955_v46 = vshrl.u32 %v4764_v33, 16  ;;  %3707 = vmatpush3.bf16.msra.mxu1 %v4027_v11  ;;  %v4032_v10 = vld [vmem:[#allocation8 + $0x130] sm:$0xff]  }
 0x1aa   : > { %3619 = vmatmul.mubr.bf16.vlgmr.msra.gmra.mrb[8].mxu0 %v3230_v35  ;;  %v958_v47 = vshll.u32 %v4764_v33, 16  ;;  %v964_v4 = vshll.u32 %v4766_v34, 16  ;;  %v934_v53 = vrot.slane %v933_v42, 4  ;;  %v938_v17 = vrot.slane %v936_v22, 5  ;;  %3708 = vmatprep.subr.bf16.mxu1 %v4030_v49  ;;  %v1654_v13 = vld [vmem:[#allocation2 + $0x20] sm:$0xf] }
 0x1ab   : > { %3627 = vmatpush3.bf16.msra.mxu0 %v4620_v0  ;;  %v1691_v48 = vsel %vm4707_vm9, %v1686_v41, %v1690_v37  ;;  %v946_v29 = vrot.slane %v944_v2, 5  ;;  %v952_v57 = vrot.slane %v950_v43, 5  ;;  %v957_v59 = vrot.slane %v955_v46, 4  ;;  %v4792_v11 = vld [vmem:[#allocation2 + $0x24] sm:$0x1]  ;;  %v4034_v43 = vld [vmem:[#allocation8 + $0x138] sm:$0xff]  }
 0x1ac   : > { %v3285_v56 = vcombine.low %v1677_v36, %v1691_v48  ;;  %3628 = vmatprep.subr.bf16.mxu0 %v4024_v38  ;;  %v960_v60 = vrot.slane %v958_v47, 5  ;;  %v966_v63 = vrot.slane %v964_v4, 5  ;;  %v969_v5 = vshrl.u32 %v4775_v45, 16  ;;  %v1656_v36 = vld [vmem:[#allocation2 + $0x28] sm:$0xf]  ;;  %v4031_v4 = vld [vmem:[#allocation8 + $0x20] sm:$0xff]  }
 0x1ad   : > { %v947_v62 = vor.u32 %v946_v29, %v943_v16  ;;  %v972_v0 = vshll.u32 %v4775_v45, 16  ;;  %v978_v8 = vshll.u32 %v4783_v55, 16  ;;  %v1693_v14 = vshrl.u32 %v1652_v44, 16  ;;  %3709 = vmatpush3.bf16.msra.mxu1 %v4030_v49  ;;  %v1658_v46 = vld [vmem:[#allocation2 + $0x30] sm:$0xf] }
 0x1ae   : > { %3714 = vmatprep.mubr.bf16.mxu1 %v3285_v56  ;;  %v961_v7 = vor.u32 %v960_v60, %v957_v59  ;;  %v1696_v15 = vshll.u32 %v1652_v44, 16  ;;  %v939_v19 = vsel %vm4707_vm9, %v934_v53, %v938_v17  ;;  %v971_v21 = vrot.slane %v969_v5, 4  ;;  %3710 = vmatprep.subr.bf16.mxu1 %v4032_v10  ;;  %v4818_v51 = vld [vmem:[#allocation2 + $0x44] sm:$0x1] }
 0x1af   : > { %3629 = vmatpush3.bf16.msra.mxu0 %v4024_v38  ;;  %v948_v20 = vrot.slane %v947_v62, 4  ;;  %v974_v22 = vrot.slane %v972_v0, 5  ;;  %v1695_v31 = vrot.slane %v1693_v14, 4  ;;  %v1702_v35 = vshll.u32 %v4787_v6, 16  ;;  %v4036_v62 = vld [vmem:[#allocation8 + $0x140] sm:$0xff]  }
 0x1b0   : > { %3630 = vmatprep.subr.bf16.mxu0 %v4026_v58  ;;  %v962_v28 = vrot.slane %v961_v7, 4  ;;  %v1698_v32 = vrot.slane %v1696_v15, 5  ;;  %v980_v40 = vrot.slane %v978_v8, 5  ;;  %v1707_v41 = vshrl.u32 %v1654_v13, 16  ;;  %v1660_v0 = vld [vmem:[#allocation2 + $0x38] sm:$0xf] }
 0x1b1   : > { %v953_v37 = vsel %vm4707_vm9, %v948_v20, %v952_v57  ;;  %v975_v38 = vor.u32 %v974_v22, %v971_v21  ;;  %v1710_v16 = vshll.u32 %v1654_v13, 16  ;;  %v1716_v53 = vshll.u32 %v4792_v11, 16  ;;  %v4800_v57 = vld [vmem:[#allocation2 + $0x2c] sm:$0x1]  ;;  %3711 = vmatpush3.bf16.msra.mxu1 %v4032_v10  ;;  %v4805_v14 = vld [vmem:[#allocation2 + $0x34] sm:$0x1] }
 0x1b2   : > { %v3231_v42 = vcombine.low %v939_v19, %v953_v37  ;;  %v967_v2 = vsel %vm4707_vm9, %v962_v28, %v966_v63  ;;  %v1699_v44 = vor.u32 %v1698_v32, %v1695_v31  ;;  %v1709_v48 = vrot.slane %v1707_v41, 4  ;;  %3712 = vmatprep.subr.bf16.mxu1 %v4034_v43  ;;  %v1662_v19 = vld [vmem:[#allocation2 + $0x40] sm:$0xf]  ;;  %v4810_v28 = vld [vmem:[#allocation2 + $0x3c] sm:$0x1] }
 0x1b3   : > { %v976_v47 = vrot.slane %v975_v38, 4  ;;  %3631 = vmatpush3.bf16.msra.mxu0 %v4026_v58  ;;  %v1721_v17 = vshrl.u32 %v1656_v36, 16  ;;  %v1704_v29 = vrot.slane %v1702_v35, 5  ;;  %v1712_v56 = vrot.slane %v1710_v16, 5  ;;  %v4033_v31 = vld [vmem:[#allocation8 + $0x28] sm:$0xff]  }
 0x1b4   : > { %3622 = vmatprep.mubr.bf16.mxu0 %v3231_v42  ;;  %3632 = vmatprep.subr.bf16.mxu0 %v4029_v24  ;;  %v1700_v49 = vrot.slane %v1699_v44, 4  ;;  %v1724_v59 = vshll.u32 %v1656_v36, 16  ;;  %v1730_v58 = vshll.u32 %v4800_v57, 16  ;;  %v1735_v5 = vshrl.u32 %v1658_v46, 16  ;;  %v4035_v42 = vld [vmem:[#allocation8 + $0x30] sm:$0xff]   ;;  %v4038_v16 = vld [vmem:[#allocation8 + $0x148] sm:$0xff]  }
 0x1b5   : > { %v981_v60 = vsel %vm4707_vm9, %v976_v47, %v980_v40  ;;  %v1723_v63 = vrot.slane %v1721_v17, 4  ;;  %v1713_v8 = vor.u32 %v1712_v56, %v1709_v48  ;;  %v1718_v13 = vrot.slane %v1716_v53, 5  ;;  %3713 = vmatpush3.bf16.msra.mxu1 %v4034_v43  ;;  %v1931_v43 = vld [vmem:[#allocation2 + $0x10] sm:$0xe] }
 0x1b6   : > { %v3232_v7 = vcombine.low %v967_v2, %v981_v60  ;;  %v1726_v15 = vrot.slane %v1724_v59, 5  ;;  %v1705_v20 = vsel %vm4707_vm9, %v1700_v49, %v1704_v29  ;;  %v1737_v21 = vrot.slane %v1735_v5, 4  ;;  %3722 = vmatprep.subr.bf16.mxu1 %v4036_v62  ;;  %v1930_v60 = vld [vmem:[#allocation2 + $0x8] sm:$0xe] }
 0x1b7   : > { %3633 = vmatpush3.bf16.msra.mxu0 %v4029_v24  ;;  %v1738_v10 = vshll.u32 %v1658_v46, 16  ;;  %v1744_v22 = vshll.u32 %v4805_v14, 16  ;;  %v1714_v32 = vrot.slane %v1713_v8, 4  ;;  %v1749_v36 = vshrl.u32 %v1660_v0, 16 }
 0x1b8   : > { %3623 = vmatmul.mubr.bf16.gmra.mrb[12].mxu0 %v3232_v7  ;;  %3634 = vmatprep.subr.bf16.mxu0 %v4031_v4  ;;  %v1727_v35 = vor.u32 %v1726_v15, %v1723_v63  ;;  %v1752_v37 = vshll.u32 %v1660_v0, 16  ;;  %v1732_v24 = vrot.slane %v1730_v58, 5  ;;  %v1758_v40 = vshll.u32 %v4810_v28, 16  ;;  %v4041_v0 = vld [vmem:[#allocation8 + $0x150] sm:$0xff]   ;;  %v4037_v15 = vld [vmem:[#allocation8 + $0x38] sm:$0xff]  }
 0x1b9   : > { %3642 = vmatprep.mubr.bf16.mxu0 %v3241_v23  ;;  %v1740_v38 = vrot.slane %v1738_v10, 5  ;;  %v1763_v41 = vshrl.u32 %v1662_v19, 16  ;;  %v1719_v2 = vsel %vm4707_vm9, %v1714_v32, %v1718_v13  ;;  %v1751_v46 = vrot.slane %v1749_v36, 4 }
 0x1ba   : > { %v1728_v44 = vrot.slane %v1727_v35, 4  ;;  %v1754_v47 = vrot.slane %v1752_v37, 5  ;;  %v3286_v48 = vcombine.low %v1705_v20, %v1719_v2  ;;  %v1746_v1 = vrot.slane %v1744_v22, 5  ;;  %v1268_v35 = vld [vmem:[#allocation2 + $0x18] sm:$0xe] }
 0x1bb   : > { %3635 = vmatpush3.bf16.msra.mxu0 %v4031_v4  ;;  %v1741_v53 = vor.u32 %v1740_v38, %v1737_v21  ;;  %v1765_v23 = vrot.slane %v1763_v41, 4  ;;  %v1766_v49 = vshll.u32 %v1662_v19, 16  ;;  %v1772_v29 = vshll.u32 %v4818_v51, 16  ;;  %v4044_v38 = vld [vmem:[#allocation8 + $0x158] sm:$0xff]  }
 0x1bc   : > { %3636 = vmatprep.subr.bf16.mxu0 %v4033_v31  ;;  %v1755_v17 = vor.u32 %v1754_v47, %v1751_v46  ;;  %3715 = vmatmul.mubr.bf16.vlgmr.msra.gmra.mrb[0].mxu1 %v3286_v48  ;;  %v1733_v56 = vsel %vm4707_vm9, %v1728_v44, %v1732_v24  ;;  %v1760_v63 = vrot.slane %v1758_v40, 5  ;;  %v3298_v7 = vrot.slane %v1931_v43, 9  ;;  %v1266_v46 = vld [vmem:[#allocation2 + $0x8] sm:$0xe]  ;;  %v4043_v48 = vld [vmem:[#allocation8 + $0x88] sm:$0xff]  }
 0x1bd   : > { %v1742_v59 = vrot.slane %v1741_v53, 4  ;;  %3723 = vmatpush3.bf16.msra.mxu1 %v4036_v62  ;;  %v1768_v58 = vrot.slane %v1766_v49, 5  ;;  %v1960_v8 = vrot.slane %v4748_v18, 5  ;;  %v1774_v20 = vrot.slane %v1772_v29, 5  ;;  %v1267_v18 = vld [vmem:[#allocation2 + $0x10] sm:$0xe] }
 0x1be   : > { %v1756_v4 = vrot.slane %v1755_v17, 4  ;;  %3724 = vmatprep.subr.bf16.mxu1 %v4038_v16  ;;  %v3297_v62 = vrot.slane %v1930_v60, 9  ;;  %v1956_v21 = vrot.slane %v4738_v39, 5  ;;  %v4040_v39 = vld [vmem:[#allocation8 + $0x80] sm:$0xff]   ;;  %v3255_v40 = vrot.slane %v1267_v18, 9  ;;  %v4049_v49 = vld [vmem:[#allocation8 + $0x168] sm:$0xff]  }
 0x1bf   : > { %3637 = vmatpush3.bf16.msra.mxu0 %v4033_v31  ;;  %v1747_v5 = vsel %vm4707_vm9, %v1742_v59, %v1746_v1  ;;  %v1769_v19 = vor.u32 %v1768_v58, %v1765_v23  ;;  %v1961_v32 = vsel %vm4830_vm12, %v3298_v7, %v1960_v8  ;;  %v3256_v2 = vrot.slane %v1268_v35, 9  ;;  %v4047_v53 = vld [vmem:[#allocation8 + $0x160] sm:$0xff]   ;;  %v4046_v29 = vld [vmem:[#allocation8 + $0x90] sm:$0xff]   ;;  %v4053_v58 = vld [vmem:[#allocation8 + $0x178] sm:$0xff]  }
 0x1c0   : > { %3638 = vmatprep.subr.bf16.mxu0 %v4035_v42  ;;  %v3287_v13 = vcombine.low %v1733_v56, %v1747_v5  ;;  %v1761_v10 = vsel %vm4707_vm9, %v1756_v4, %v1760_v63  ;;  %v1957_v24 = vsel %vm4830_vm12, %v3297_v62, %v1956_v21  ;;  %v1306_v44 = vrot.slane %v4726_v27, 5  ;;  %v4051_v56 = vld [vmem:[#allocation8 + $0x170] sm:$0xff]   ;;  %v1934_v4 = vld [vmem:[#allocation2 + $0x28] sm:$0xe]  ;;  %v1935_v63 = vld [vmem:[#allocation2 + $0x30] sm:$0xe] }
 0x1c1   : > { %3725 = vmatpush3.bf16.msra.mxu1 %v4038_v16  ;;  %v1770_v22 = vrot.slane %v1769_v19, 4  ;;  %v3305_v41 = vcombine.low %v1957_v24, %v1961_v32  ;;  %v1265_v16 = vld [vmem:[#allocation2] sm:$0xe]  ;;  %v3242_v47 = vcombine.low %v4720_v12, %v4711_v54  ;;  %v3243_v27 = vcombine.low %v4746_v50, %v4754_v9  ;;  %v1932_v5 = vld [vmem:[#allocation2 + $0x18] sm:$0xe]  ;;  %v4050_v8 = vld [vmem:[#allocation8 + $0xa0] sm:$0xff]  }
 0x1c2   : > { %3718 = vmatprep.mubr.bf16.mxu1 %v3287_v13  ;;  %3726 = vmatprep.subr.bf16.mxu1 %v4041_v0  ;;  %v3253_v54 = vrot.slane %v1265_v16, 9  ;;  %v1294_v12 = vrot.slane %v4649_v25, 5  ;;  %v3254_v43 = vrot.slane %v1266_v46, 9  ;;  %v1298_v17 = vrot.slane %v4695_v52, 5  ;;  %v4048_v52 = vld [vmem:[#allocation8 + $0x98] sm:$0xff]   ;;  %v4055_v62 = vld [vmem:[#allocation8 + $0x180] sm:$0xff]  }
 0x1c3   : > { %3639 = vmatpush3.bf16.msra.mxu0 %v4035_v42  ;;  %v1775_v36 = vsel %vm4707_vm9, %v1770_v22, %v1774_v20  ;;  %v1302_v42 = vrot.slane %v4724_v26, 5  ;;  %v4850_v26 = vsel %vm4830_vm12, %v3256_v2, %v1306_v44  ;;  %v3244_v25 = vcombine.low %v4764_v33, %v4775_v45  ;;  %v1933_v59 = vld [vmem:[#allocation2 + $0x20] sm:$0xe]  ;;  %v4052_v21 = vld [vmem:[#allocation8 + $0xa8] sm:$0xff]  }
 0x1c4   : > { %3640 = vmatprep.subr.bf16.mxu0 %v4037_v15  ;;  %v3288_v37 = vcombine.low %v1761_v10, %v1775_v36  ;;  %v1295_v50 = vsel %vm4830_vm12, %v3253_v54, %v1294_v12  ;;  %v1299_v9 = vsel %vm4830_vm12, %v3254_v43, %v1298_v17  ;;  %v1968_v7 = vrot.slane %v4792_v11, 5  ;;  %v1936_v22 = vld [vmem:[#allocation2 + $0x38] sm:$0xe]  ;;  %v1269_v16 = vld [vmem:[#allocation2 + $0x20] sm:$0xe] }
 0x1c5   : > { %3727 = vmatpush3.bf16.msra.mxu1 %v4041_v0  ;;  %v4846_v1 = vsel %vm4830_vm12, %v3255_v40, %v1302_v42  ;;  %v3261_v60 = vcombine.low %v1295_v50, %v1299_v9  ;;  %v3300_v0 = vrot.slane %v1933_v59, 9  ;;  %v3301_v33 = vrot.slane %v1934_v4, 9  ;;  %v4057_v35 = vld [vmem:[#allocation8 + $0x188] sm:$0xff]   ;;  %v4058_v40 = vld [vmem:[#allocation8 + $0x190] sm:$0xff]   ;;  %v4056_v42 = vld [vmem:[#allocation8 + $0xb8] sm:$0xff]  }
 0x1c6   : > { %3719 = vmatmul.mubr.bf16.gmra.mrb[4].mxu1 %v3288_v37  ;;  %3728 = vmatprep.subr.bf16.mxu1 %v4044_v38  ;;  %v3262_v23 = vcombine.low %v4846_v1, %v4850_v26  ;;  %v1972_v45 = vrot.slane %v4800_v57, 5  ;;  %v3302_v13 = vrot.slane %v1935_v63, 9  ;;  %v3299_v19 = vrot.slane %v1932_v5, 9  ;;  %v1271_v54 = vld [vmem:[#allocation2 + $0x30] sm:$0xe]  ;;  %v4064_v1 = vld [vmem:[#allocation8 + $0x1b8] sm:$0xff]  }
 0x1c7   : > { %3641 = vmatpush3.bf16.msra.mxu0 %v4037_v15  ;;  %3738 = vmatprep.mubr.bf16.mxu1 %v3305_v41  ;;  %v1976_v15 = vrot.slane %v4805_v14, 5  ;;  %v1964_v20 = vrot.slane %v4787_v6, 5  ;;  %v1969_v11 = vsel %vm4830_vm12, %v3300_v0, %v1968_v7  ;;  %v1937_v14 = vld [vmem:[#allocation2 + $0x40] sm:$0xe]  ;;  %v3303_v36 = vrot.slane %v1936_v22, 9  ;;  %v4066_v0 = vld [vmem:[#allocation8 + $0x1c0] sm:$0xff]  }
 0x1c8   : > { %3650 = vmatprep.subr.bf16.mxu0 %v4040_v39  ;;  %v1973_v10 = vsel %vm4830_vm12, %v3301_v33, %v1972_v45  ;;  %v1980_v37 = vrot.slane %v4810_v28, 5  ;;  %v3304_v24 = vrot.slane %v1937_v14, 9  ;;  %v1270_v41 = vld [vmem:[#allocation2 + $0x28] sm:$0xe]  ;;  %v1272_v43 = vld [vmem:[#allocation2 + $0x38] sm:$0xe] }
 0x1c9   : > { %3729 = vmatpush3.bf16.msra.mxu1 %v4044_v38  ;;  %v1977_v57 = vsel %vm4830_vm12, %v3302_v13, %v1976_v15  ;;  %v1965_v6 = vsel %vm4830_vm12, %v3299_v19, %v1964_v20  ;;  %v1984_v38 = vrot.slane %v4818_v51, 5  ;;  %v3258_v28 = vrot.slane %v1270_v41, 9  ;;  %v2311_v59 = vld [vmem:[#allocation2 + $0x10] sm:$0xf]  ;;  %v4897_v33 = vld [vmem:[#allocation2 + $0x14] sm:$0x1] }
 0x1ca   : > { %3643 = vmatmul.mubr.bf16.vlgmr.msra.gmra.mrb[8].mxu0 %v3242_v47  ;;  %3730 = vmatprep.subr.bf16.mxu1 %v4047_v53  ;;  %v3306_v18 = vcombine.low %v1965_v6, %v1969_v11  ;;  %v3307_v32 = vcombine.low %v1973_v10, %v1977_v57  ;;  %v1981_v2 = vsel %vm4830_vm12, %v3303_v36, %v1980_v37  ;;  %v1314_v51 = vrot.slane %v4770_v61, 5  ;;  %v4060_v47 = vld [vmem:[#allocation8 + $0x198] sm:$0xff]   ;;  %v4061_v61 = vld [vmem:[#allocation8 + $0x1a0] sm:$0xff]   ;;  %v4899_v13 = vld [vmem:[#allocation2 + $0x1c] sm:$0x1] }
 0x1cb   : > { %3646 = vmatprep.mubr.bf16.mxu0 %v3243_v27  ;;  %3651 = vmatpush3.bf16.msra.mxu0 %v4040_v39  ;;  %v4054_v39 = vld [vmem:[#allocation8 + $0xb0] sm:$0xff]   ;;  %v1985_v44 = vsel %vm4830_vm12, %v3304_v24, %v1984_v38  ;;  %v4059_v27 = vld [vmem:[#allocation2 + $0x10] ss:$8 sps:$4 sm:$0xff]   ;;  %v1318_v50 = vrot.slane %v4766_v34, 5  ;;  %v1322_v9 = vrot.slane %v4783_v55, 5  ;;  %v2328_v4 = vshrl.u32 %v2311_v59, 16 }
 0x1cc   : > { %3652 = vmatprep.subr.bf16.mxu0 %v4043_v48  ;;  %v3308_v46 = vcombine.low %v1981_v2, %v1985_v44  ;;  %v1315_v12 = vsel %vm4830_vm12, %v3258_v28, %v1314_v51  ;;  %v4063_v34 = vld [vmem:[#allocation8 + $0x1b0] sm:$0xff]   ;;  %v2313_v55 = vld [vmem:[#allocation2 + $0x18] sm:$0xf]  ;;  %v2331_v63 = vshll.u32 %v2311_v59, 16  ;;  %v2337_v20 = vshll.u32 %v4897_v33, 16 }
 0x1cd   : > { %3731 = vmatpush3.bf16.msra.mxu1 %v4047_v53  ;;  %v1310_v53 = vrot.slane %v4750_v3, 5  ;;  %v3260_v3 = vrot.slane %v1272_v43, 9  ;;  %v2342_v26 = vshrl.u32 %v2313_v55, 16  ;;  %v4065_v15 = vld [vmem:[#allocation2 + $0x20] ss:$8 sps:$4 sm:$0xff]   ;;  %v4068_v19 = vld [vmem:[#allocation8 + $0x1c8] sm:$0xff]  }
 0x1ce   : > { %3732 = vmatprep.subr.bf16.mxu1 %v4049_v49  ;;  %v2333_v5 = vrot.slane %v2331_v63, 5  ;;  %v2351_v10 = vshll.u32 %v4899_v13, 16  ;;  %v4070_v57 = vld [vmem:[#allocation8 + $0x1d0] sm:$0xff]   ;;  %v2339_v22 = vrot.slane %v2337_v20, 5  ;;  %v2317_v37 = vld [vmem:[#allocation2 + $0x28] sm:$0xf] }
 0x1cf   : > { %3653 = vmatpush3.bf16.msra.mxu0 %v4043_v48  ;;  %v3257_v48 = vrot.slane %v1269_v16, 9  ;;  %v2344_v7 = vrot.slane %v2342_v26, 4  ;;  %v2319_v24 = vld [vmem:[#allocation2 + $0x30] sm:$0xf]  ;;  %v2321_v38 = vld [vmem:[#allocation2 + $0x38] sm:$0xf] }
 0x1d0   : > { %3654 = vmatprep.subr.bf16.mxu0 %v4046_v29  ;;  %v2315_v41 = vld [vmem:[#allocation2 + $0x20] sm:$0xf]  ;;  %v2373_v2 = vshll.u32 %v2317_v37, 16  ;;  %v2384_v44 = vshrl.u32 %v2319_v24, 16  ;;  %v2387_v16 = vshll.u32 %v2319_v24, 16  ;;  %v2398_v28 = vshrl.u32 %v2321_v38, 16 }
 0x1d1   : > { %3733 = vmatpush3.bf16.msra.mxu1 %v4049_v49  ;;  %v1311_v17 = vsel %vm4830_vm12, %v3257_v48, %v1310_v53  ;;  %v3259_v49 = vrot.slane %v1271_v54, 9  ;;  %v2401_v51 = vshll.u32 %v2321_v38, 16  ;;  %v4073_v48 = vld [vmem:[#allocation8 + $0x1e8] sm:$0xff]   ;;  %v2325_v53 = vld [vmem:[#allocation2 + $0x48] sm:$0xf]  ;;  %v4090_v31 = vld [vmem:[#allocation9 + $0x30] sm:$0xff]  }
 0x1d2   : > { %3647 = vmatmul.mubr.bf16.gmra.mrb[12].mxu0 %v3244_v25  ;;  %3734 = vmatprep.subr.bf16.mxu1 %v4051_v56  ;;  %v4062_v25 = vld [vmem:[#allocation8 + $0x1a8] sm:$0xff]   ;;  %v2375_v54 = vrot.slane %v2373_v2, 5  ;;  %v2389_v43 = vrot.slane %v2387_v16, 5  ;;  %v4911_v59 = vld [vmem:[#allocation2 + $0x34] sm:$0x1] }
 0x1d3   : > { %3655 = vmatpush3.bf16.msra.mxu0 %v4046_v29  ;;  %3666 = vmatprep.mubr.bf16.mxu0 %v3261_v60  ;;  %v3263_v29 = vcombine.low %v1311_v17, %v1315_v12  ;;  %v2386_v12 = vrot.slane %v2384_v44, 4  ;;  %v2403_v17 = vrot.slane %v2401_v51, 5  ;;  %v2393_v26 = vshll.u32 %v4911_v59, 16  ;;  %v4077_v44 = vld [vmem:[#allocation8 + $0x208] sm:$0xff]  }
 0x1d4   : > { %3656 = vmatprep.subr.bf16.mxu0 %v4048_v52 }
 0x1d5   : > { %3735 = vmatpush3.bf16.msra.mxu1 %v4051_v56  ;;  %v1323_v56 = vsel %vm4830_vm12, %v3260_v3, %v1322_v9  ;;  %v2426_v9 = vshrl.u32 %v2325_v53, 16 }
 0x1d6   : > { %3736 = vmatprep.subr.bf16.mxu1 %v4053_v58 }
 0x1d7   : > { %3657 = vmatpush3.bf16.msra.mxu0 %v4048_v52  ;;  %v1319_v52 = vsel %vm4830_vm12, %v3259_v49, %v1318_v50  ;;  %v2323_v49 = vld [vmem:[#allocation2 + $0x40] sm:$0xf] }
 0x1d8   : > { %3658 = vmatprep.subr.bf16.mxu0 %v4050_v8  ;;  %v3264_v60 = vcombine.low %v1319_v52, %v1323_v56  ;;  %v4907_v52 = vld [vmem:[#allocation2 + $0x24] sm:$0x1]  ;;  %v4909_v56 = vld [vmem:[#allocation2 + $0x2c] sm:$0x1]  ;;  %v2415_v63 = vshll.u32 %v2323_v49, 16 }
 0x1d9   : > { %3737 = vmatpush3.bf16.msra.mxu1 %v4053_v58  ;;  %v2330_v58 = vrot.slane %v2328_v4, 4  ;;  %v2412_v4 = vshrl.u32 %v2323_v49, 16 }
 0x1da   : > { %3746 = vmatprep.subr.bf16.mxu1 %v4055_v62 }
 0x1db   : > { %3659 = vmatpush3.bf16.msra.mxu0 %v4050_v8  ;;  %v2334_v45 = vor.u32 %v2333_v5, %v2330_v58  ;;  %v2414_v20 = vrot.slane %v2412_v4, 4  ;;  %v4083_v4 = vld [vmem:[#allocation8 + $0x238] sm:$0xff]  }
 0x1dc   : > { %3660 = vmatprep.subr.bf16.mxu0 %v4052_v21  ;;  %3739 = vmatmul.mubr.bf16.vlgmr.msra.gmra.mrb[0].mxu1 %v3306_v18  ;;  %v2353_v18 = vrot.slane %v2351_v10, 5 }
 0x1dd   : > { %3742 = vmatprep.mubr.bf16.mxu1 %v3307_v32  ;;  %3747 = vmatpush3.bf16.msra.mxu1 %v4055_v62  ;;  %v2335_v11 = vrot.slane %v2334_v45, 4  ;;  %v4069_v32 = vld [vmem:[#allocation2 + $0x40] ss:$8 sps:$4 sm:$0xff]  }
 0x1de   : > { %3748 = vmatprep.subr.bf16.mxu1 %v4057_v35 }
 0x1df   : > { %3661 = vmatpush3.bf16.msra.mxu0 %v4052_v21  ;;  %v4067_v21 = vld [vmem:[#allocation2 + $0x30] ss:$8 sps:$4 sm:$0xff]   ;;  %v2340_v6 = vsel %vm4707_vm9, %v2335_v11, %v2339_v22  ;;  %v2395_v11 = vrot.slane %v2393_v26, 5  ;;  %v2631_v26 = vrot.slane %v4909_v56, 5 }
 0x1e0   : > { %3662 = vmatprep.subr.bf16.mxu0 %v4054_v39 }
 0x1e1   : > { %3749 = vmatpush3.bf16.msra.mxu1 %v4057_v35 }
 0x1e2   : > { %3750 = vmatprep.subr.bf16.mxu1 %v4058_v40 }
 0x1e3   : > { %3663 = vmatpush3.bf16.msra.mxu0 %v4054_v39  ;;  %v4071_v39 = vld [vmem:[#allocation8 + $0x1d8] sm:$0xff]  }
 0x1e4   : > { %3664 = vmatprep.subr.bf16.mxu0 %v4056_v42  ;;  %3743 = vmatmul.mubr.bf16.gmra.mrb[4].mxu1 %v3308_v46  ;;  %v2356_v46 = vshrl.u32 %v2315_v41, 16 }
 0x1e5   : > { %3751 = vmatpush3.bf16.msra.mxu1 %v4058_v40  ;;  %3762 = vmatprep.mubr.bf16.mxu1 %v4059_v27  ;;  %v4072_v40 = vld [vmem:[#allocation8 + $0x1e0] sm:$0xff]  }
 0x1e6   : > { %3752 = vmatprep.subr.bf16.mxu1 %v4060_v47  ;;  %v2358_v50 = vrot.slane %v2356_v46, 4 }
 0x1e7   : > { %3665 = vmatpush3.bf16.msra.mxu0 %v4056_v42  ;;  %v2370_v42 = vshrl.u32 %v2317_v37, 16 }
 0x1e9   : > { %3753 = vmatpush3.bf16.msra.mxu1 %v4060_v47  ;;  %v2359_v47 = vshll.u32 %v2315_v41, 16  ;;  %v2372_v27 = vrot.slane %v2370_v42, 4  ;;  %v2593_v42 = vld [vmem:[#allocation2 + $0x10] sm:$0xe] }
 0x1ea   : > { %3667 = vmatmul.mubr.bf16.vlgmr.msra.gmra.mrb[8].mxu0 %v3262_v23  ;;  %3754 = vmatprep.subr.bf16.mxu1 %v4061_v61  ;;  %v2345_v23 = vshll.u32 %v2313_v55, 16  ;;  %v4914_v55 = vld [vmem:[#allocation2 + $0x3c] sm:$0x1] }
 0x1eb   : > { %3670 = vmatprep.mubr.bf16.mxu0 %v3263_v29  ;;  %v4074_v29 = vld [vmem:[#allocation8 + $0x1f0] sm:$0xff]   ;;  %v2361_v3 = vrot.slane %v2359_v47, 5  ;;  %v2407_v58 = vshll.u32 %v4914_v55, 16 }
 0x1ec   : > { %v2347_v8 = vrot.slane %v2345_v23, 5 }
 0x1ed   : > { %3755 = vmatpush3.bf16.msra.mxu1 %v4061_v61  ;;  %v2400_v61 = vrot.slane %v2398_v28, 4  ;;  %v2362_v5 = vor.u32 %v2361_v3, %v2358_v50  ;;  %v4079_v50 = vld [vmem:[#allocation8 + $0x218] sm:$0xff]  }
 0x1ee   : > { %3756 = vmatprep.subr.bf16.mxu1 %v4062_v25  ;;  %v2348_v62 = vor.u32 %v2347_v8, %v2344_v7  ;;  %v2365_v7 = vshll.u32 %v4907_v52, 16  ;;  %v2428_v8 = vrot.slane %v2426_v9, 4  ;;  %v4082_v9 = vld [vmem:[#allocation8 + $0x230] sm:$0xff]  }
 0x1ef   : > { %v2404_v23 = vor.u32 %v2403_v17, %v2400_v61  ;;  %v2363_v22 = vrot.slane %v2362_v5, 4 }
 0x1f0   : > { %v2349_v14 = vrot.slane %v2348_v62, 4  ;;  %v2417_v62 = vrot.slane %v2415_v63, 5  ;;  %v2595_v63 = vld [vmem:[#allocation2 + $0x20] sm:$0xe] }
 0x1f1   : > { %3757 = vmatpush3.bf16.msra.mxu1 %v4062_v25  ;;  %v2429_v25 = vshll.u32 %v2325_v53, 16  ;;  %v2405_v10 = vrot.slane %v2404_v23, 4  ;;  %v3341_v53 = vrot.slane %v2593_v42, 9 }
 0x1f2   : > { %3671 = vmatmul.mubr.bf16.gmra.mrb[12].mxu0 %v3264_v60  ;;  %3758 = vmatprep.subr.bf16.mxu1 %v4063_v34  ;;  %v2354_v35 = vsel %vm4707_vm9, %v2349_v14, %v2353_v18  ;;  %v2379_v60 = vshll.u32 %v4909_v56, 16  ;;  %v4919_v14 = vld [vmem:[#allocation2 + $0x4c] sm:$0x1]  ;;  %v4921_v18 = vld [vmem:[#allocation2 + $0x44] sm:$0x1]  ;;  %v2418_v37 = vor.u32 %v2417_v62, %v2414_v20 }
 0x1f3   : > { %v3329_v36 = vcombine.low %v2340_v6, %v2354_v35  ;;  %v2431_v45 = vrot.slane %v2429_v25, 5  ;;  %v4076_v6 = vld [vmem:[#allocation8 + $0x200] sm:$0xff]   ;;  %v2435_v35 = vshll.u32 %v4919_v14, 16  ;;  %v2421_v24 = vshll.u32 %v4921_v18, 16  ;;  %v2596_v25 = vld [vmem:[#allocation2 + $0x28] sm:$0xe] }
 0x1f4   : > { %v2419_v51 = vrot.slane %v2418_v37, 4  ;;  %v2600_v20 = vld [vmem:[#allocation2 + $0x48] sm:$0xe]  ;;  %v2647_v62 = vrot.slane %v4919_v14, 5  ;;  %v4086_v14 = vld [vmem:[#allocation9 + $0x10] sm:$0xff]  }
 0x1f5   : > { %3759 = vmatpush3.bf16.msra.mxu1 %v4063_v34  ;;  %v2376_v34 = vor.u32 %v2375_v54, %v2372_v27  ;;  %v2423_v46 = vrot.slane %v2421_v24, 5  ;;  %v2437_v47 = vrot.slane %v2435_v35, 5  ;;  %v2619_v27 = vrot.slane %v4897_v33, 5  ;;  %v4078_v54 = vld [vmem:[#allocation8 + $0x210] sm:$0xff]   ;;  %v4085_v35 = vld [vmem:[#allocation9 + $0x8] sm:$0xff]   ;;  %v4091_v37 = vld [vmem:[#allocation9 + $0x38] sm:$0xff]  }
 0x1f6   : > { %3760 = vmatprep.subr.bf16.mxu1 %v4064_v1 }
 0x1f7   : > { %v2424_v61 = vsel %vm4707_vm9, %v2419_v51, %v2423_v46  ;;  %v2620_v49 = vsel %vm4830_vm12, %v3341_v53, %v2619_v27  ;;  %v3361_v51 = vld [vmem:[%s5034_s5] ss:$0 sm:$0xff] }
 0x1f9   : > { %3761 = vmatpush3.bf16.msra.mxu1 %v4064_v1  ;;  %v2390_v1 = vor.u32 %v2389_v43, %v2386_v12  ;;  %v2623_v43 = vrot.slane %v4899_v13, 5  ;;  %v4080_v13 = vld [vmem:[#allocation8 + $0x220] sm:$0xff]  }
 0x1fa   : > { %3770 = vmatprep.subr.bf16.mxu1 %v4066_v0 }
 0x1fc   : > { %3763 = vmatmul.mubr.bf16.vlgmr.msra.gmra.mrb[0].mxu1 %v4065_v15  ;;  %v2377_v15 = vrot.slane %v2376_v34, 4  ;;  %v2597_v34 = vld [vmem:[#allocation2 + $0x30] sm:$0xe] }
 0x1fd   : > { %3766 = vmatprep.mubr.bf16.mxu1 %v4067_v21  ;;  %3771 = vmatpush3.bf16.msra.mxu1 %v4066_v0  ;;  %v4075_v0 = vld [vmem:[#allocation8 + $0x1f8] sm:$0xff]   ;;  %v2391_v21 = vrot.slane %v2390_v1, 4  ;;  %v3344_v1 = vrot.slane %v2596_v25, 9  ;;  %v3345_v23 = vrot.slane %v2597_v34, 9 }
 0x1fe   : > { %3772 = vmatprep.subr.bf16.mxu1 %v4068_v19 }
 0x1ff   : > { %v2396_v38 = vsel %vm4707_vm9, %v2391_v21, %v2395_v11  ;;  %v2643_v11 = vrot.slane %v4921_v18, 5  ;;  %v4087_v18 = vld [vmem:[#allocation9 + $0x18] sm:$0xff]  }
 0x201   : > { %3773 = vmatpush3.bf16.msra.mxu1 %v4068_v19  ;;  %v2381_v19 = vrot.slane %v2379_v60, 5  ;;  %v2598_v60 = vld [vmem:[#allocation2 + $0x38] sm:$0xe] }
 0x202   : > { %3774 = vmatprep.subr.bf16.mxu1 %v4070_v57  ;;  %v3346_v5 = vrot.slane %v2598_v60, 9 }
 0x204   : > { %3767 = vmatmul.mubr.bf16.gmra.mrb[4].mxu1 %v4069_v32  ;;  %v2432_v32 = vor.u32 %v2431_v45, %v2428_v8  ;;  %v2627_v8 = vrot.slane %v4907_v52, 5  ;;  %v2632_v45 = vsel %vm4830_vm12, %v3344_v1, %v2631_v26 }
 0x205   : > { %3775 = vmatpush3.bf16.msra.mxu1 %v4070_v57  ;;  %3786 = vmatprep.mubr.bf16.mxu1 %v3329_v36  ;;  %v2409_v57 = vrot.slane %v2407_v58, 5  ;;  %v2382_v36 = vsel %vm4707_vm9, %v2377_v15, %v2381_v19  ;;  %v2635_v58 = vrot.slane %v4911_v59, 5  ;;  %v2599_v19 = vld [vmem:[#allocation2 + $0x40] sm:$0xe] }
 0x206   : > { %3776 = vmatprep.subr.bf16.mxu1 %v4071_v39  ;;  %v2433_v16 = vrot.slane %v2432_v32, 4  ;;  %v3347_v21 = vrot.slane %v2599_v19, 9  ;;  %v4084_v32 = vld [vmem:[#allocation9] sm:$0xff]  }
 0x207   : > { %v2636_v15 = vsel %vm4830_vm12, %v3345_v23, %v2635_v58  ;;  %3818 = vmatprep.subr.bf16.mxu0 %v4084_v32 }
 0x208   : > { %v2438_v17 = vsel %vm4707_vm9, %v2433_v16, %v2437_v47  ;;  %3819 = vmatpush3.bf16.msra.mxu0 %v4084_v32  ;;  %v3405_v32 = vld [vmem:[%s4558_s9] sm:$0xff]  }
 0x209   : > { %3777 = vmatpush3.bf16.msra.mxu1 %v4071_v39  ;;  %v2367_v39 = vrot.slane %v2365_v7, 5  ;;  %v3343_v7 = vrot.slane %v2595_v63, 9  ;;  %3820 = vmatprep.subr.bf16.mxu0 %v4085_v35 }
 0x20a   : > { %3778 = vmatprep.subr.bf16.mxu1 %v4072_v40 }
 0x20b   : > { %v2368_v41 = vsel %vm4707_vm9, %v2363_v22, %v2367_v39  ;;  %v2628_v59 = vsel %vm4830_vm12, %v3343_v7, %v2627_v8  ;;  %v4088_v39 = vld [vmem:[#allocation9 + $0x20] sm:$0xff]  }
 0x20c   : > { %v3330_v2 = vcombine.low %v2368_v41, %v2382_v36  ;;  %3821 = vmatpush3.bf16.msra.mxu0 %v4085_v35  ;;  %v4089_v36 = vld [vmem:[#allocation9 + $0x28] sm:$0xff]  }
 0x20d   : > { %3779 = vmatpush3.bf16.msra.mxu1 %v4072_v40  ;;  %v2410_v40 = vsel %vm4707_vm9, %v2405_v10, %v2409_v57  ;;  %v3348_v10 = vrot.slane %v2600_v20, 9  ;;  %v2644_v57 = vsel %vm4830_vm12, %v3347_v21, %v2643_v11  ;;  %3822 = vmatprep.subr.bf16.mxu0 %v4086_v14 }
 0x20e   : > { %3780 = vmatprep.subr.bf16.mxu1 %v4073_v48  ;;  %v3331_v28 = vcombine.low %v2396_v38, %v2410_v40 }
 0x20f   : > { %v2648_v22 = vsel %vm4830_vm12, %v3348_v10, %v2647_v62 }
 0x210   : > { %3823 = vmatpush3.bf16.msra.mxu0 %v4086_v14  ;;  %v3372_v14 = vld [vmem:[%s5074_s19] ss:$0 sm:$0xff] }
 0x211   : > { %3781 = vmatpush3.bf16.msra.mxu1 %v4073_v48  ;;  %v2594_v48 = vld [vmem:[#allocation2 + $0x18] sm:$0xe]  ;;  %3824 = vmatprep.subr.bf16.mxu0 %v4087_v18 }
 0x212   : > { %3782 = vmatprep.subr.bf16.mxu1 %v4074_v29  ;;  %v3342_v12 = vrot.slane %v2594_v48, 9  ;;  %v3362_v48 = vld [vmem:[%s5035_s6] ss:$0 sm:$0xff] }
 0x214   : > { %v2624_v33 = vsel %vm4830_vm12, %v3342_v12, %v2623_v43  ;;  %3825 = vmatpush3.bf16.msra.mxu0 %v4087_v18 }
 0x215   : > { %3783 = vmatpush3.bf16.msra.mxu1 %v4074_v29  ;;  %v3332_v29 = vcombine.low %v2424_v61, %v2438_v17  ;;  %v3349_v3 = vcombine.low %v2620_v49, %v2624_v33  ;;  %3826 = vmatprep.subr.bf16.mxu0 %v4088_v39 }
 0x216   : > { %3784 = vmatprep.subr.bf16.mxu1 %v4075_v0 }
 0x218   : > { %3827 = vmatpush3.bf16.msra.mxu0 %v4088_v39 }
 0x219   : > { %3785 = vmatpush3.bf16.msra.mxu1 %v4075_v0  ;;  %v2639_v0 = vrot.slane %v4914_v55, 5  ;;  %v3350_v55 = vcombine.low %v2628_v59, %v2632_v45  ;;  %3828 = vmatprep.subr.bf16.mxu0 %v4089_v36 }
 0x21a   : > { %3794 = vmatprep.subr.bf16.mxu1 %v4076_v6 }
 0x21b   : > { %v2640_v56 = vsel %vm4830_vm12, %v3346_v5, %v2639_v0 }
 0x21c   : > { %3787 = vmatmul.mubr.bf16.vlgmr.msra.gmra.mrb[0].mxu1 %v3330_v2  ;;  %v3351_v52 = vcombine.low %v2636_v15, %v2640_v56  ;;  %3829 = vmatpush3.bf16.msra.mxu0 %v4089_v36 }
 0x21d   : > { %3790 = vmatprep.mubr.bf16.mxu1 %v3331_v28  ;;  %3795 = vmatpush3.bf16.msra.mxu1 %v4076_v6  ;;  %v3352_v6 = vcombine.low %v2644_v57, %v2648_v22  ;;  %v3371_v22 = vld [vmem:[%s5037_s8] ss:$0 sm:$0xff] }
 0x21e   : > { %3796 = vmatprep.subr.bf16.mxu1 %v4077_v44  ;;  %3830 = vmatprep.subr.bf16.mxu0 %v4090_v31 }
 0x220   : > { %3831 = vmatpush3.bf16.msra.mxu0 %v4090_v31 }
 0x221   : > { %3797 = vmatpush3.bf16.msra.mxu1 %v4077_v44  ;;  %3832 = vmatprep.subr.bf16.mxu0 %v4091_v37 }
 0x222   : > { %3798 = vmatprep.subr.bf16.mxu1 %v4078_v54 }
 0x224   : > { %3791 = vmatmul.mubr.bf16.gmra.mrb[4].mxu1 %v3332_v29  ;;  %3833 = vmatpush3.bf16.msra.mxu0 %v4091_v37  ;;  %v3406_v37 = vunpack.c.l.bf16 %v3405_v32 }
 0x225   : > { %3799 = vmatpush3.bf16.msra.mxu1 %v4078_v54  ;;  %3810 = vmatprep.mubr.bf16.mxu1 %v3349_v3 }
 0x226   : > { %3800 = vmatprep.subr.bf16.mxu1 %v4079_v50 }
 0x229   : > { %3801 = vmatpush3.bf16.msra.mxu1 %v4079_v50 }
 0x22a   : > { %3802 = vmatprep.subr.bf16.mxu1 %v4080_v13 }
 0x22d   : > { %3803 = vmatpush3.bf16.msra.mxu1 %v4080_v13 }
 0x22e   : > { %3804 = vmatprep.subr.bf16.mxu1 %v4081_v30 }
 0x231   : > { %3805 = vmatpush3.bf16.msra.mxu1 %v4081_v30 }
 0x232   : > { %3806 = vmatprep.subr.bf16.mxu1 %v4082_v9 }
 0x235   : > { %3807 = vmatpush3.bf16.msra.mxu1 %v4082_v9 }
 0x236   : > { %3808 = vmatprep.subr.bf16.mxu1 %v4083_v4 }
 0x239   : > { %3809 = vmatpush3.bf16.msra.mxu1 %v4083_v4 }
 0x23c   : > { %3811 = vmatmul.mubr.bf16.vlgmr.msra.gmra.mrb[0].mxu1 %v3350_v55 }
 0x23d   : > { %3814 = vmatprep.mubr.bf16.mxu1 %v3351_v52 }
 0x244   : > { %3815 = vmatmul.mubr.bf16.gmra.mrb[4].mxu1 %v3352_v6  ;;  %v3440_v6 = vld [vmem:[%s4558_s9 + $0x8] sm:$0xff]  }
 0x245   : > { %v3410_v39 = vunpack.c.l.bf16 %v3440_v6 }
 0x2bd   : > { %v3668_v24 = vpop.f32.mrb[8].mxu0 }
 0x2be   : > { %v1439_v38 = vpop.f32.mrb[9].mxu0 }
 0x2bf   : > { %v3669_v40 = vpop.f32.mrb[10].mxu0 }
 0x2c0   : > { %v1442_v41 = vpop.f32.mrb[11].mxu0 }
 0x2c5   : > { %v3672_v42 = vpop.f32.mrb[12].mxu0 }
 0x2c6   : > { %v1455_v2 = vpop.f32.mrb[13].mxu0 }
 0x2c7   : > { %v3673_v44 = vpop.f32.mrb[14].mxu0 }
 0x2c8   : > { %v1458_v16 = vpop.f32.mrb[15].mxu0 }
 0x30f   : > { %v3812_v28 = vpop.f32.mrb[0].mxu1 }
 0x310   : > { %v3842_v46 = vadd.f32 %v3812_v28, %v3668_v24  ;;  %v2764_v47 = vpop.f32.mrb[1].mxu1 }
 0x311   : > { %v3843_v53 = vadd.f32 %v2764_v47, %v1439_v38  ;;  %v3813_v27 = vpop.f32.mrb[2].mxu1 }
 0x312   : > { %v2812_v54 = vmul.f32 %v3842_v46, %v3361_v51  ;;  %v3844_v12 = vadd.f32 %v3813_v27, %v3669_v40  ;;  %v2767_v43 = vpop.f32.mrb[3].mxu1  ;;  %v3441_v27 = vld [vmem:[%s4558_s9 + $0x10] sm:$0xff]  }
 0x313   : > { %v2810_v61 = vmul.f32 %v3843_v53, %v3361_v51  ;;  %v3845_v17 = vadd.f32 %v2767_v43, %v1442_v41  ;;  %v3411_v41 = vunpack.c.h.bf16 %v3440_v6 }
 0x314   : > { %v2827_v49 = vadd.f32 %v3362_v48, %v2812_v54  ;;  %v2813_v29 = vmul.f32 %v3844_v12, %v3361_v51 }
 0x315   : > { %v2825_v33 = vadd.f32 %v3362_v48, %v2810_v61  ;;  %v2811_v50 = vmul.f32 %v3845_v17, %v3361_v51 }
 0x316   : > { %v2828_v3 = vadd.f32 %v3362_v48, %v2813_v29  ;;  %v2835_v9 = vmax.f32 %v2827_v49, 0.0 }
 0x317   : > { %v2826_v13 = vadd.f32 %v3362_v48, %v2811_v50  ;;  %v3816_v30 = vpop.f32.mrb[4].mxu1  ;;  %v2833_v4 = vmax.f32 %v2825_v33, 0.0 }
 0x318   : > { %v2836_v25 = vmax.f32 %v2828_v3, 0.0  ;;  %v3846_v34 = vadd.f32 %v3816_v30, %v3672_v42  ;;  %v2780_v60 = vpop.f32.mrb[5].mxu1 }
 0x319   : > { %v2834_v63 = vmax.f32 %v2826_v13, 0.0  ;;  %v3847_v1 = vadd.f32 %v2780_v60, %v1455_v2  ;;  %v3817_v26 = vpop.f32.mrb[6].mxu1  ;;  %v3414_v13 = vunpack.c.l.bf16 %v3441_v27 }
 0x31a   : > { %v2842_v23 = vpack.c.bf16 %v2836_v25, %v2835_v9  ;;  %v2816_v58 = vmul.f32 %v3846_v34, %v3361_v51  ;;  %v3848_v5 = vadd.f32 %v3817_v26, %v3673_v44  ;;  %v2783_v0 = vpop.f32.mrb[7].mxu1 }
 0x31b   : > { %v2814_v7 = vmul.f32 %v3847_v1, %v3361_v51  ;;  %v3849_v8 = vadd.f32 %v2783_v0, %v1458_v16  ;;  %v2841_v45 = vpack.c.bf16 %v2834_v63, %v2833_v4  ;;  %v3407_v16 = vunpack.c.h.bf16 %v3405_v32 }
 0x31c   : > { %v2831_v15 = vadd.f32 %v3362_v48, %v2816_v58  ;;  %v2817_v56 = vmul.f32 %v3848_v5, %v3361_v51 }
 0x31d   : > { %v2829_v19 = vadd.f32 %v3362_v48, %v2814_v7  ;;  %v2815_v20 = vmul.f32 %v3849_v8, %v3361_v51  ;;  %3834 = vmatprep.mubr.bf16.mxu0 %v2841_v45 }
 0x31e   : > { %v2832_v59 = vadd.f32 %v3362_v48, %v2817_v56  ;;  %3835 = vmatmul.mubr.bf16.vlgmr.msra.gmra.mrb[16].mxu0 %v2842_v23  ;;  %v2839_v62 = vmax.f32 %v2831_v15, 0.0  ;;  %v3415_v23 = vunpack.c.h.bf16 %v3441_v27 }
 0x31f   : > { %v2830_v55 = vadd.f32 %v3362_v48, %v2815_v20  ;;  %v2837_v21 = vmax.f32 %v2829_v19, 0.0  ;;  %v3442_v48 = vld [vmem:[%s4558_s9 + $0x18] sm:$0xff]   ;;  %s421_s9 = scalar_lea.vmem [#allocation11], %s3202_s25 }
 0x320   : > { %v2840_v52 = vmax.f32 %v2832_v59, 0.0  ;;  %v3418_v49 = vunpack.c.l.bf16 %v3442_v48  ;;  %v3419_v60 = vunpack.c.h.bf16 %v3442_v48  ;;  %s3090_s21 = sshll.u32 %s421_s9, 4  ;;  %s4980_s21 = int_to_ptr.vmem [resolvable:$true] %s3090_s21 }
 0x321   : > { %v2838_v11 = vmax.f32 %v2830_v55, 0.0  ;;  %s4206_s17 = scalar_lea.vmem %s4980_s21, 512  ;;  %p4213_p12 = scmp.lt.s32.totalorder %s4980_s21, %s4211_s18 }
 0x322   : > { %v2844_v10 = vpack.c.bf16 %v2840_v52, %v2839_v62  ;;  %p4207_p10 = scmp.ne.s32.totalorder %s4980_s21, %s4206_s17  ;;  %p4214_p1 = scmp.lt.s32.totalorder %s4212_s28, %s4206_s17 }
 0x323   : > { %v2843_v57 = vpack.c.bf16 %v2838_v11, %v2837_v21 }
 0x324   : > { %p4208_p3 = pnand %p4207_p10, %p4501_p5  ;;  %p4215_p2 = por %p4214_p1, %p4213_p12 }
 0x325   : > { %3838 = vmatprep.mubr.bf16.mxu0 %v2843_v57 }
 0x326   : > { %3839 = vmatmul.mubr.bf16.gmra.mrb[20].mxu0 %v2844_v10  ;;  %p4209_p7 = pneg %p4208_p3 }
 0x328   : > { %p4216_p4 = pnand %p4215_p2, %p4209_p7 }
 0x3f1   : > { %v3836_v35 = vpop.f32.mrb[16].mxu0 }
 0x3f2   : > { %v2983_v18 = vmul.f32 %v3836_v35, %v3371_v22  ;;  %v2943_v36 = vpop.f32.mrb[17].mxu0 }
 0x3f3   : > { %v2981_v31 = vmul.f32 %v3371_v22, %v2943_v36  ;;  %v3837_v24 = vpop.f32.mrb[18].mxu0 }
 0x3f4   : > { %v2998_v38 = vadd.f32 %v3372_v14, %v2983_v18  ;;  %v2984_v40 = vmul.f32 %v3837_v24, %v3371_v22  ;;  %v2946_v42 = vpop.f32.mrb[19].mxu0 }
 0x3f5   : > { %v2996_v2 = vadd.f32 %v3372_v14, %v2981_v31  ;;  %v2982_v44 = vmul.f32 %v3371_v22, %v2946_v42 }
 0x3f6   : > { %v3022_v28 = vadd.f32 %v3410_v39, %v2998_v38  ;;  %v2999_v51 = vadd.f32 %v3372_v14, %v2984_v40 }
 0x3f7   : > { %v3020_v46 = vadd.f32 %v3406_v37, %v2996_v2  ;;  %v2997_v47 = vadd.f32 %v3372_v14, %v2982_v44 }
 0x3f8   : > { %v3023_v53 = vadd.f32 %v3411_v41, %v2999_v51  ;;  %v3030_v43 = vmax.f32 %v3022_v28, 0.0 }
 0x3f9   : > { %v3021_v54 = vadd.f32 %v3407_v16, %v2997_v47  ;;  %v3840_v12 = vpop.f32.mrb[20].mxu0  ;;  %v3028_v33 = vmax.f32 %v3020_v46, 0.0 }
 0x3fa   : > { %v3031_v61 = vmax.f32 %v3023_v53, 0.0  ;;  %v2987_v17 = vmul.f32 %v3840_v12, %v3371_v22  ;;  %v2959_v29 = vpop.f32.mrb[21].mxu0 }
 0x3fb   : > { %v3029_v50 = vmax.f32 %v3021_v54, 0.0  ;;  %v2985_v3 = vmul.f32 %v3371_v22, %v2959_v29  ;;  %v3841_v30 = vpop.f32.mrb[22].mxu0 }
 0x3fc   : > { %v3428_v9 = vpack.c.bf16 %v3031_v61, %v3030_v43  ;;  %v3002_v25 = vadd.f32 %v3372_v14, %v2987_v17  ;;  %v2988_v34 = vmul.f32 %v3841_v30, %v3371_v22  ;;  %v2962_v4 = vpop.f32.mrb[23].mxu0 }
 0x3fd   : > { %v3423_v63 = vpack.c.bf16 %v3029_v50, %v3028_v33  ;;  %v3000_v1 = vadd.f32 %v3372_v14, %v2985_v3  ;;  %v2986_v26 = vmul.f32 %v3371_v22, %v2962_v4 }
 0x3fe   : > { %3443 = vst [vmem:[%s421_s9 + $0x8] sm:$0xff] %v3428_v9   ;;  %v3026_v58 = vadd.f32 %v3418_v49, %v3002_v25  ;;  %v3003_v5 = vadd.f32 %v3372_v14, %v2988_v34 }
 0x3ff   : > { %3424 = vst [vmem:[%s421_s9] sm:$0xff] %v3423_v63   ;;  %v3024_v0 = vadd.f32 %v3414_v13, %v3000_v1  ;;  %v3001_v7 = vadd.f32 %v3372_v14, %v2986_v26 }
 0x400   : > { %v3027_v8 = vadd.f32 %v3419_v60, %v3003_v5  ;;  %v3034_v15 = vmax.f32 %v3026_v58, 0.0 }
 0x401   : > { %v3025_v45 = vadd.f32 %v3415_v23, %v3001_v7  ;;  %v3032_v19 = vmax.f32 %v3024_v0, 0.0 }
 0x402   : > { %v3035_v56 = vmax.f32 %v3027_v8, 0.0 }
 0x403   : > { %v3033_v20 = vmax.f32 %v3025_v45, 0.0 }
 0x404   : > { %v3438_v59 = vpack.c.bf16 %v3035_v56, %v3034_v15 }
 0x405   : > { %v3433_v55 = vpack.c.bf16 %v3033_v20, %v3032_v19 }
 0x406   : > { %3445 = vst [vmem:[%s421_s9 + $0x18] sm:$0xff] %v3438_v59  }
 0x407   : > { %3444 = vst [vmem:[%s421_s9 + $0x10] sm:$0xff] %v3433_v55  }
 0x408   : > { %4219 = shalt.err (!%p4216_p4)
}
 0x409   : > { %s4220_s27 = scalar_lea.hbm %s4985_s26, 512  ;;  %s4224_s9 = scalar_lea.hbm %s5075_s29, 1024 }
 0x40a   : > { %p4221_p9 = scmp.ne.s32.totalorder %s4985_s26, %s4220_s27  ;;  %p4225_p8 = scmp.lt.u32.totalorder %s4985_s26, %s5075_s29 }
 0x40b   : > { %p4226_p13 = scmp.lt.u32.totalorder %s4224_s9, %s4220_s27  ;;  %p4228_p10 = scmp.lt.u32.totalorder %s4220_s27, %s4985_s26 }
 0x40c   : > { %p4222_p0 = pnand %p4221_p9, %p4501_p5 }
 0x40d   : > { %p4227_p6 = por %p4226_p13, %p4225_p8 }
 0x40e   : > { %p4223_p11 = pneg %p4222_p0 }
 0x40f   : > { %p4229_p3 = por %p4228_p10, %p4227_p6 }
 0x411   : > { %p4230_p7 = pnand %p4229_p3, %p4223_p11 }
 0x413   : > { %4233 = shalt.err (!%p4230_p7)
}
 0x414   : > { %s4290_s11 = smov 64   ;;  %s4291_s17 = smov 4  }
 0x415   : > { %3920 = dma.vmem_to_hbm [thread:$0]  (%p4501_p5), %s4980_s21, 512, %s4985_s26, %s3077_s24, %s4290_s11, %s4290_s11, %s4291_s17  }
 0x416 PF: > { %s5076_s12 = sld [smem:[#allocation16_spill]]  ;;  %s5077_s18 = sld [smem:[#allocation17_spill]] }
 0x417   : > { %p5079_p1 = scmp.ge.s32.totalorder %s4280_s16, 2 }
 0x41c   : > { %s3105_s28 = sand.u32 1, %s5076_s12   ;;  %p5078_p12 = scmp.ne.s32.totalorder %s5077_s18, 0 }
 0x41d   : > { %s3106_s27 = scalar_lea.sflag [#allocation5], %s3105_s28 }
 0x41e   : > { %p3937_p2 = pnand %p5079_p1, %p5078_p12 }
 0x420   : > { %4263 = dma.done.wait (!%p3937_p2), %s3106_s27, 512  }
 0x421   : > { %4265 = vsyncadd (!%p3937_p2), %s3106_s27, 4294966784  ;;  %s5080_s23 = smov %s4497_s13  ;;  %p25_p4 = scmp.ge.s32.totalorder %s4487_s22, 4  }
 0x422   : > { %s5081_s13 = smov %s4272_s14  ;;  %s5082_s14 = smov %s4276_s15 }
 0x423   : > { %s5083_s15 = smov %s5080_s23  ;;  %s5084_s16 = smov %s4487_s22 }
 0x424   :  { %27 = sbr.rel (!%p25_p4) target bundleno = 10 (0xa), region = 128 }
 0x42b   :  { %3111 = vsyncpa [#allocation4], 1 }
 0x42c   :  { %3113 = vsyncpa [#allocation4 + $0x1], 1 }
 0x42d   :  { %3114 = vsyncpa [#allocation7], 1 }
 0x42e   :  { %3115 = vsyncpa [#allocation10], 1 }
 0x42f   :  { %3116 = vsyncpa [#allocation5], 1 }
 0x430   :  { %3118 = vsyncpa [#allocation5 + $0x1], 1 }

</bundles_post_ra>
